<compile_context>
chip_gen: v6e
topology: v6e:2x2x1
jax: 0.10.0
libtpu: 0.0.40
codegen_flags: <defaults>
</compile_context>

<pallas_src>
import functools

import numpy as np
import jax
import jax.numpy as jnp
from jax.experimental import pallas as pl
from jax.experimental.pallas import tpu as pltpu


# ----------------------------------------------------------------------------
# Fused kernel: whole QNetwork forward for one batch tile of B images.
# Rows of every activation slab are ordered (h, b); lanes are (w, c).
# ----------------------------------------------------------------------------
def _qnet_kernel(x_ref, w1_ref, b1_ref, w2_ref, b2_ref,
                 wf1_ref, bf1_ref, wf2_ref, bf2_ref,
                 o_ref, xb_ref, acc1_ref, h1_ref, acc2_ref, h2_ref, *, H, B):
    HB = H * B
    cdt = xb_ref.dtype            # compute dtype for MXU operands (bf16 or f32)
    f32 = jnp.float32

    # Stage the input tile as (H*B, W*C) in compute dtype, rows = (h, b).
    for h in range(H):
        xb_ref[h * B:(h + 1) * B, :] = x_ref[h].astype(cdt)

    # ---------------- conv1 (3x3, stride 1, pad 1) + ReLU --------------------
    # One block-Toeplitz matmul per kh.  Vertical shift of one image row is a
    # row offset of B in the (h, b) slab; image-boundary rows simply receive no
    # contribution from the out-of-range tap (== zero "same" padding).
    acc1_ref[...] = jnp.dot(xb_ref[...], w1_ref[1], preferred_element_type=f32)
    acc1_ref[B:HB, :] += jnp.dot(xb_ref[0:HB - B, :], w1_ref[0],
                                 preferred_element_type=f32)
    acc1_ref[0:HB - B, :] += jnp.dot(xb_ref[B:HB, :], w1_ref[2],
                                     preferred_element_type=f32)
    h1_ref[...] = jnp.maximum(acc1_ref[...] + b1_ref[...], 0.0).astype(cdt)

    # ---------------- conv2 (3x3, stride 1, pad 1) + ReLU --------------------
    acc2_ref[...] = jnp.dot(h1_ref[...], w2_ref[1], preferred_element_type=f32)
    acc2_ref[B:HB, :] += jnp.dot(h1_ref[0:HB - B, :], w2_ref[0],
                                 preferred_element_type=f32)
    acc2_ref[0:HB - B, :] += jnp.dot(h1_ref[B:HB, :], w2_ref[2],
                                     preferred_element_type=f32)
    h2_ref[...] = jnp.maximum(acc2_ref[...] + b2_ref[...], 0.0).astype(cdt)

    # ---------------- fc1 + ReLU ---------------------------------------------
    # Torch's NCHW flatten is absorbed into the pre-permuted fc1 weight
    # (rows in (h, w, c) order), so "flatten" is H contiguous (B, W*C2) x
    # (W*C2, F1) matmuls with M = B and a clean static index on the h axis.
    acc3 = jnp.dot(h2_ref[0:B, :], wf1_ref[0], preferred_element_type=f32)
    for h in range(1, H):
        acc3 = acc3 + jnp.dot(h2_ref[h * B:(h + 1) * B, :], wf1_ref[h],
                              preferred_element_type=f32)
    h3 = jnp.maximum(acc3 + bf1_ref[...], 0.0).astype(cdt)

    # ---------------- fc2 (output pre-padded to 128 lanes) -------------------
    out = jnp.dot(h3, wf2_ref[...], preferred_element_type=f32) + bf2_ref[...]
    o_ref[...] = out.astype(o_ref.dtype)


# ----------------------------------------------------------------------------
# One-time parameter repack (outside the jitted forward).
# ----------------------------------------------------------------------------
def prepare_params(params, state_space, action_space, compute_dtype=jnp.bfloat16):
    H, W, C = state_space
    C1, C2, F1 = 32, 64, 128
    n_pad = ((action_space + 127) // 128) * 128   # lane-dense fc2 output width

    def conv_toeplitz(w_oihw, width):
        # (C_out, C_in, 3, 3) -> (3, width*C_in, width*C_out).
        # Tap kh is a banded block matrix: block (j_in, j_out) equals
        # W[:, :, kh, kw].T for kw = j_in - j_out + 1 in {0,1,2}, zero otherwise
        # (clipped at the edges == horizontal "same" zero padding).
        w = np.asarray(w_oihw, dtype=np.float32)
        c_out, c_in = w.shape[0], w.shape[1]
        t = np.zeros((3, width, c_in, width, c_out), np.float32)
        for kh in range(3):
            for kw in range(3):
                for j_out in range(width):
                    j_in = j_out + kw - 1
                    if 0 <= j_in < width:
                        t[kh, j_in, :, j_out, :] = w[:, :, kh, kw].T
        return jnp.asarray(t.reshape(3, width * c_in, width * c_out),
                           dtype=compute_dtype)

    # fc1: torch column index is c*H*W + h*W + w; repack rows to (h, w, c) order
    # and keep the h axis separate so the kernel indexes it statically.
    wf1 = params["fc1_w"].reshape(F1, C2, H, W)
    wf1 = jnp.transpose(wf1, (2, 3, 1, 0)).reshape(H, W * C2, F1)

    wf2 = jnp.zeros((F1, n_pad), jnp.float32).at[:, :action_space].set(
        params["fc2_w"].T)
    bf2 = jnp.zeros((1, n_pad), jnp.float32).at[:, :action_space].set(
        params["fc2_b"])

    return {
        "w1": conv_toeplitz(params["conv1_w"], W),
        "b1": jnp.tile(params["conv1_b"], W).reshape(1, W * C1).astype(jnp.float32),
        "w2": conv_toeplitz(params["conv2_w"], W),
        "b2": jnp.tile(params["conv2_b"], W).reshape(1, W * C2).astype(jnp.float32),
        "wf1": wf1.astype(compute_dtype),
        "bf1": params["fc1_b"].reshape(1, F1).astype(jnp.float32),
        "wf2": wf2.astype(compute_dtype),
        "bf2": bf2,
    }


# ----------------------------------------------------------------------------
# Forward pass: one fused pallas_call, gridded (parallel) over batch tiles.
# ----------------------------------------------------------------------------
def qnetwork_forward(x_nchw, prep, *, state_space, action_space, batch_tile=None):
    H, W, C = state_space
    C1, C2, F1 = 32, 64, 128
    WC, WC1, WC2 = W * C, W * C1, W * C2
    N = x_nchw.shape[0]
    n_pad = prep["wf2"].shape[1]
    cdt = prep["w1"].dtype

    if batch_tile is None:
        # Largest tile (big MXU M) while keeping >= 2 grid steps when N allows
        # (so v7x megacore can split the grid); always a multiple of 8.
        batch_tile = 32
        while batch_tile > 8 and N < 2 * batch_tile:
            batch_tile //= 2
    B = batch_tile
    n_blocks = -(-N // B)
    N_pad = n_blocks * B

    # NCHW -> (H, N, W*C): rows become (h, b), lanes (w, c) (tiny XLA transpose).
    x = jnp.transpose(x_nchw, (2, 0, 3, 1)).reshape(H, N, WC)
    if N_pad != N:
        x = jnp.pad(x, ((0, 0), (0, N_pad - N), (0, 0)))

    kernel = functools.partial(_qnet_kernel, H=H, B=B)

    def _c2(g): return (0, 0)
    def _c3(g): return (0, 0, 0)

    def const_spec(shape):
        # Grid-invariant blocks: single-buffer them to save VMEM.
        return pl.BlockSpec(shape, _c3 if len(shape) == 3 else _c2,
                            pipeline_mode=pl.Buffered(1))

    out = pl.pallas_call(
        kernel,
        out_shape=jax.ShapeDtypeStruct((N_pad, n_pad), jnp.float32),
        grid=(n_blocks,),
        in_specs=[
            pl.BlockSpec((H, B, WC), lambda g: (0, g, 0)),   # input tile
            const_spec((3, WC, WC1)),                        # conv1 Toeplitz W
            const_spec((1, WC1)),                            # conv1 bias
            const_spec((3, WC1, WC2)),                       # conv2 Toeplitz W
            const_spec((1, WC2)),                            # conv2 bias
            const_spec((H, WC2, F1)),                        # fc1 W (repacked)
            const_spec((1, F1)),                             # fc1 bias
            const_spec((F1, n_pad)),                         # fc2 W (padded)
            const_spec((1, n_pad)),                          # fc2 bias (padded)
        ],
        out_specs=pl.BlockSpec((B, n_pad), lambda g: (g, 0)),
        scratch_shapes=[
            pltpu.VMEM((H * B, WC), cdt),            # staged input (compute dtype)
            pltpu.VMEM((H * B, WC1), jnp.float32),   # conv1 accumulator
            pltpu.VMEM((H * B, WC1), cdt),           # conv1 activation
            pltpu.VMEM((H * B, WC2), jnp.float32),   # conv2 accumulator
            pltpu.VMEM((H * B, WC2), cdt),           # conv2 activation
        ],
        compiler_params=pltpu.CompilerParams(
            dimension_semantics=("parallel",),
            vmem_limit_bytes=32 * 1024 * 1024,
        ),
    )(x, prep["w1"], prep["b1"], prep["w2"], prep["b2"],
      prep["wf1"], prep["bf1"], prep["wf2"], prep["bf2"])

    return out[:N, :action_space]


# ----------------------------------------------------------------------------
# Pure-JAX reference (mirrors the PyTorch module exactly) for validation.
# ----------------------------------------------------------------------------
def qnetwork_reference(x_nchw, params):
    dn = jax.lax.conv_dimension_numbers(x_nchw.shape, params["conv1_w"].shape,
                                        ("NCHW", "OIHW", "NCHW"))
    h = jax.lax.conv_general_dilated(x_nchw, params["conv1_w"], (1, 1),
                                     ((1, 1), (1, 1)), dimension_numbers=dn)
    h = jax.nn.relu(h + params["conv1_b"][None, :, None, None])
    dn2 = jax.lax.conv_dimension_numbers(h.shape, params["conv2_w"].shape,
                                         ("NCHW", "OIHW", "NCHW"))
    h = jax.lax.conv_general_dilated(h, params["conv2_w"], (1, 1),
                                     ((1, 1), (1, 1)), dimension_numbers=dn2)
    h = jax.nn.relu(h + params["conv2_b"][None, :, None, None])
    h = h.reshape(h.shape[0], -1)
    h = jax.nn.relu(h @ params["fc1_w"].T + params["fc1_b"])
    return h @ params["fc2_w"].T + params["fc2_b"]


# ----------------------------------------------------------------------------
def init_params(key, state_space, action_space):
    H, W, C = state_space
    ks = jax.random.split(key, 8)
    scale = 0.05
    return {
        "conv1_w": scale * jax.random.normal(ks[0], (32, C, 3, 3), jnp.float32),
        "conv1_b": scale * jax.random.normal(ks[1], (32,), jnp.float32),
        "conv2_w": scale * jax.random.normal(ks[2], (64, 32, 3, 3), jnp.float32),
        "conv2_b": scale * jax.random.normal(ks[3], (64,), jnp.float32),
        "fc1_w": scale * jax.random.normal(ks[4], (128, 64 * H * W), jnp.float32),
        "fc1_b": scale * jax.random.normal(ks[5], (128,), jnp.float32),
        "fc2_w": scale * jax.random.normal(ks[6], (action_space, 128), jnp.float32),
        "fc2_b": scale * jax.random.normal(ks[7], (action_space,), jnp.float32),
    }


if __name__ == "__main__":
    state_space = (8, 8, 4)   # (H, W, C_in) as used by the torch module
    action_space = 4
    batch = 16                # small demo batch; kernel tiles it as 2 x B=8

    key = jax.random.PRNGKey(0)
    k_x, k_p = jax.random.split(key)
    params = init_params(k_p, state_space, action_space)
    H, W, C = state_space
    x = jax.random.normal(k_x, (batch, C, H, W), jnp.float32)   # NCHW like torch

    ref = qnetwork_reference(x, params)
    fwd = jax.jit(functools.partial(qnetwork_forward,
                                    state_space=state_space,
                                    action_space=action_space))

    # Tight check with f32 compute (validates layout / Toeplitz / fc1 repack).
    prep32 = prepare_params(params, state_space, action_space,
                            compute_dtype=jnp.float32)
    out32 = jax.block_until_ready(fwd(x, prep32))
    assert out32.shape == (batch, action_space), out32.shape
    assert jnp.allclose(out32, ref, atol=1e-3, rtol=1e-3), "f32 path mismatch"

    # Fast path: bf16 weights/operands, f32 accumulation (looser tolerance).
    prep16 = prepare_params(params, state_space, action_space,
                            compute_dtype=jnp.bfloat16)
    out16 = jax.block_until_ready(fwd(x, prep16))
    assert out16.shape == (batch, action_space), out16.shape
    assert jnp.allclose(out16, ref, atol=5e-2, rtol=5e-2), "bf16 path mismatch"

    print("KERNEL_OK")
</pallas_src>

<mosaic_0001>
module attributes {stable_mosaic.version = 11 : i64} {
  func.func @_qnet_kernel(%arg0: i32, %arg1: memref<8x8x32xf32, #tpu.memory_space<vmem>>, %arg2: memref<3x32x256xf32, #tpu.memory_space<vmem>>, %arg3: memref<1x256xf32, #tpu.memory_space<vmem>>, %arg4: memref<3x256x512xf32, #tpu.memory_space<vmem>>, %arg5: memref<1x512xf32, #tpu.memory_space<vmem>>, %arg6: memref<8x512x128xf32, #tpu.memory_space<vmem>>, %arg7: memref<1x128xf32, #tpu.memory_space<vmem>>, %arg8: memref<128x128xf32, #tpu.memory_space<vmem>>, %arg9: memref<1x128xf32, #tpu.memory_space<vmem>>, %arg10: memref<8x128xf32, #tpu.memory_space<vmem>>, %arg11: memref<64x32xf32, #tpu.memory_space<vmem>>, %arg12: memref<64x256xf32, #tpu.memory_space<vmem>>, %arg13: memref<64x256xf32, #tpu.memory_space<vmem>>, %arg14: memref<64x512xf32, #tpu.memory_space<vmem>>, %arg15: memref<64x512xf32, #tpu.memory_space<vmem>>) attributes {dimension_semantics = [#tpu.dimension_semantics<parallel>], iteration_bounds = array<i64: 2>, scalar_prefetch = 0 : i64, scratch_operands = 5 : i64, tpu.core_type = #tpu.core_type<tc>, window_params = [{transform_indices = @transform_0, window_bounds = array<i64: 8, 8, 32>}, {pipeline_mode = #tpu.pipeline_mode<synchronous>, transform_indices = @transform_1, window_bounds = array<i64: 3, 32, 256>}, {pipeline_mode = #tpu.pipeline_mode<synchronous>, transform_indices = @transform_2, window_bounds = array<i64: 1, 256>}, {pipeline_mode = #tpu.pipeline_mode<synchronous>, transform_indices = @transform_3, window_bounds = array<i64: 3, 256, 512>}, {pipeline_mode = #tpu.pipeline_mode<synchronous>, transform_indices = @transform_4, window_bounds = array<i64: 1, 512>}, {pipeline_mode = #tpu.pipeline_mode<synchronous>, transform_indices = @transform_5, window_bounds = array<i64: 8, 512, 128>}, {pipeline_mode = #tpu.pipeline_mode<synchronous>, transform_indices = @transform_6, window_bounds = array<i64: 1, 128>}, {pipeline_mode = #tpu.pipeline_mode<synchronous>, transform_indices = @transform_7, window_bounds = array<i64: 128, 128>}, {pipeline_mode = #tpu.pipeline_mode<synchronous>, transform_indices = @transform_8, window_bounds = array<i64: 1, 128>}, {transform_indices = @transform_9, window_bounds = array<i64: 8, 128>}]} {
    %c0 = arith.constant 0 : index
    %c0_0 = arith.constant 0 : index
    %c0_1 = arith.constant 0 : index
    %0 = vector.load %arg1[%c0, %c0_0, %c0_1] : memref<8x8x32xf32, #tpu.memory_space<vmem>>, vector<1x8x32xf32>
    %1 = vector.shape_cast %0 : vector<1x8x32xf32> to vector<8x32xf32>
    %c0_2 = arith.constant 0 : index
    %c0_3 = arith.constant 0 : index
    %2 = vector.load %arg11[%c0_2, %c0_3] : memref<64x32xf32, #tpu.memory_space<vmem>>, vector<8x32xf32>
    tpu.vector_store %arg11[%c0_2, %c0_3], %1 {strides = array<i32>} : memref<64x32xf32, #tpu.memory_space<vmem>>, vector<8x32xf32>,
    %c1 = arith.constant 1 : index
    %c0_4 = arith.constant 0 : index
    %c0_5 = arith.constant 0 : index
    %3 = vector.load %arg1[%c1, %c0_4, %c0_5] : memref<8x8x32xf32, #tpu.memory_space<vmem>>, vector<1x8x32xf32>
    %4 = vector.shape_cast %3 : vector<1x8x32xf32> to vector<8x32xf32>
    %c8 = arith.constant 8 : index
    %c0_6 = arith.constant 0 : index
    %5 = vector.load %arg11[%c8, %c0_6] : memref<64x32xf32, #tpu.memory_space<vmem>>, vector<8x32xf32>
    tpu.vector_store %arg11[%c8, %c0_6], %4 {strides = array<i32>} : memref<64x32xf32, #tpu.memory_space<vmem>>, vector<8x32xf32>,
    %c2 = arith.constant 2 : index
    %c0_7 = arith.constant 0 : index
    %c0_8 = arith.constant 0 : index
    %6 = vector.load %arg1[%c2, %c0_7, %c0_8] : memref<8x8x32xf32, #tpu.memory_space<vmem>>, vector<1x8x32xf32>
    %7 = vector.shape_cast %6 : vector<1x8x32xf32> to vector<8x32xf32>
    %c16 = arith.constant 16 : index
    %c0_9 = arith.constant 0 : index
    %8 = vector.load %arg11[%c16, %c0_9] : memref<64x32xf32, #tpu.memory_space<vmem>>, vector<8x32xf32>
    tpu.vector_store %arg11[%c16, %c0_9], %7 {strides = array<i32>} : memref<64x32xf32, #tpu.memory_space<vmem>>, vector<8x32xf32>,
    %c3 = arith.constant 3 : index
    %c0_10 = arith.constant 0 : index
    %c0_11 = arith.constant 0 : index
    %9 = vector.load %arg1[%c3, %c0_10, %c0_11] : memref<8x8x32xf32, #tpu.memory_space<vmem>>, vector<1x8x32xf32>
    %10 = vector.shape_cast %9 : vector<1x8x32xf32> to vector<8x32xf32>
    %c24 = arith.constant 24 : index
    %c0_12 = arith.constant 0 : index
    %11 = vector.load %arg11[%c24, %c0_12] : memref<64x32xf32, #tpu.memory_space<vmem>>, vector<8x32xf32>
    tpu.vector_store %arg11[%c24, %c0_12], %10 {strides = array<i32>} : memref<64x32xf32, #tpu.memory_space<vmem>>, vector<8x32xf32>,
    %c4 = arith.constant 4 : index
    %c0_13 = arith.constant 0 : index
    %c0_14 = arith.constant 0 : index
    %12 = vector.load %arg1[%c4, %c0_13, %c0_14] : memref<8x8x32xf32, #tpu.memory_space<vmem>>, vector<1x8x32xf32>
    %13 = vector.shape_cast %12 : vector<1x8x32xf32> to vector<8x32xf32>
    %c32 = arith.constant 32 : index
    %c0_15 = arith.constant 0 : index
    %14 = vector.load %arg11[%c32, %c0_15] : memref<64x32xf32, #tpu.memory_space<vmem>>, vector<8x32xf32>
    tpu.vector_store %arg11[%c32, %c0_15], %13 {strides = array<i32>} : memref<64x32xf32, #tpu.memory_space<vmem>>, vector<8x32xf32>,
    %c5 = arith.constant 5 : index
    %c0_16 = arith.constant 0 : index
    %c0_17 = arith.constant 0 : index
    %15 = vector.load %arg1[%c5, %c0_16, %c0_17] : memref<8x8x32xf32, #tpu.memory_space<vmem>>, vector<1x8x32xf32>
    %16 = vector.shape_cast %15 : vector<1x8x32xf32> to vector<8x32xf32>
    %c40 = arith.constant 40 : index
    %c0_18 = arith.constant 0 : index
    %17 = vector.load %arg11[%c40, %c0_18] : memref<64x32xf32, #tpu.memory_space<vmem>>, vector<8x32xf32>
    tpu.vector_store %arg11[%c40, %c0_18], %16 {strides = array<i32>} : memref<64x32xf32, #tpu.memory_space<vmem>>, vector<8x32xf32>,
    %c6 = arith.constant 6 : index
    %c0_19 = arith.constant 0 : index
    %c0_20 = arith.constant 0 : index
    %18 = vector.load %arg1[%c6, %c0_19, %c0_20] : memref<8x8x32xf32, #tpu.memory_space<vmem>>, vector<1x8x32xf32>
    %19 = vector.shape_cast %18 : vector<1x8x32xf32> to vector<8x32xf32>
    %c48 = arith.constant 48 : index
    %c0_21 = arith.constant 0 : index
    %20 = vector.load %arg11[%c48, %c0_21] : memref<64x32xf32, #tpu.memory_space<vmem>>, vector<8x32xf32>
    tpu.vector_store %arg11[%c48, %c0_21], %19 {strides = array<i32>} : memref<64x32xf32, #tpu.memory_space<vmem>>, vector<8x32xf32>,
    %c7 = arith.constant 7 : index
    %c0_22 = arith.constant 0 : index
    %c0_23 = arith.constant 0 : index
    %21 = vector.load %arg1[%c7, %c0_22, %c0_23] : memref<8x8x32xf32, #tpu.memory_space<vmem>>, vector<1x8x32xf32>
    %22 = vector.shape_cast %21 : vector<1x8x32xf32> to vector<8x32xf32>
    %c56 = arith.constant 56 : index
    %c0_24 = arith.constant 0 : index
    %23 = vector.load %arg11[%c56, %c0_24] : memref<64x32xf32, #tpu.memory_space<vmem>>, vector<8x32xf32>
    tpu.vector_store %arg11[%c56, %c0_24], %22 {strides = array<i32>} : memref<64x32xf32, #tpu.memory_space<vmem>>, vector<8x32xf32>,
    %c0_25 = arith.constant 0 : index
    %c0_26 = arith.constant 0 : index
    %24 = vector.load %arg11[%c0_25, %c0_26] : memref<64x32xf32, #tpu.memory_space<vmem>>, vector<64x32xf32>
    %c1_27 = arith.constant 1 : index
    %c0_28 = arith.constant 0 : index
    %c0_29 = arith.constant 0 : index
    %25 = vector.load %arg2[%c1_27, %c0_28, %c0_29] : memref<3x32x256xf32, #tpu.memory_space<vmem>>, vector<1x32x256xf32>
    %26 = vector.shape_cast %25 : vector<1x32x256xf32> to vector<32x256xf32>
    %cst = arith.constant dense<0.000000e+00> : vector<64x256xf32>
    %27 = tpu.matmul %24, %26, %cst {dimension_numbers = #tpu.dot_dimension_numbers<[1], [0], [0], [1], [0, 0, 1, 1], [], []>} : vector<64x32xf32>, vector<32x256xf32>, vector<64x256xf32> -> vector<64x256xf32>
    %c0_30 = arith.constant 0 : index
    %c0_31 = arith.constant 0 : index
    %28 = vector.load %arg12[%c0_30, %c0_31] : memref<64x256xf32, #tpu.memory_space<vmem>>, vector<64x256xf32>
    tpu.vector_store %arg12[%c0_30, %c0_31], %27 {strides = array<i32>} : memref<64x256xf32, #tpu.memory_space<vmem>>, vector<64x256xf32>,
    %c8_32 = arith.constant 8 : index
    %c0_33 = arith.constant 0 : index
    %29 = vector.load %arg12[%c8_32, %c0_33] : memref<64x256xf32, #tpu.memory_space<vmem>>, vector<56x256xf32>
    %c0_34 = arith.constant 0 : index
    %c0_35 = arith.constant 0 : index
    %30 = vector.load %arg11[%c0_34, %c0_35] : memref<64x32xf32, #tpu.memory_space<vmem>>, vector<56x32xf32>
    %c0_36 = arith.constant 0 : index
    %c0_37 = arith.constant 0 : index
    %c0_38 = arith.constant 0 : index
    %31 = vector.load %arg2[%c0_36, %c0_37, %c0_38] : memref<3x32x256xf32, #tpu.memory_space<vmem>>, vector<1x32x256xf32>
    %32 = vector.shape_cast %31 : vector<1x32x256xf32> to vector<32x256xf32>
    %cst_39 = arith.constant dense<0.000000e+00> : vector<56x256xf32>
    %33 = tpu.matmul %30, %32, %cst_39 {dimension_numbers = #tpu.dot_dimension_numbers<[1], [0], [0], [1], [0, 0, 1, 1], [], []>} : vector<56x32xf32>, vector<32x256xf32>, vector<56x256xf32> -> vector<56x256xf32>
    %34 = arith.addf %29, %33 : vector<56x256xf32>
    %c8_40 = arith.constant 8 : index
    %c0_41 = arith.constant 0 : index
    %35 = vector.load %arg12[%c8_40, %c0_41] : memref<64x256xf32, #tpu.memory_space<vmem>>, vector<56x256xf32>
    tpu.vector_store %arg12[%c8_40, %c0_41], %34 {strides = array<i32>} : memref<64x256xf32, #tpu.memory_space<vmem>>, vector<56x256xf32>,
    %c0_42 = arith.constant 0 : index
    %c0_43 = arith.constant 0 : index
    %36 = vector.load %arg12[%c0_42, %c0_43] : memref<64x256xf32, #tpu.memory_space<vmem>>, vector<56x256xf32>
    %c8_44 = arith.constant 8 : index
    %c0_45 = arith.constant 0 : index
    %37 = vector.load %arg11[%c8_44, %c0_45] : memref<64x32xf32, #tpu.memory_space<vmem>>, vector<56x32xf32>
    %c2_46 = arith.constant 2 : index
    %c0_47 = arith.constant 0 : index
    %c0_48 = arith.constant 0 : index
    %38 = vector.load %arg2[%c2_46, %c0_47, %c0_48] : memref<3x32x256xf32, #tpu.memory_space<vmem>>, vector<1x32x256xf32>
    %39 = vector.shape_cast %38 : vector<1x32x256xf32> to vector<32x256xf32>
    %cst_49 = arith.constant dense<0.000000e+00> : vector<56x256xf32>
    %40 = tpu.matmul %37, %39, %cst_49 {dimension_numbers = #tpu.dot_dimension_numbers<[1], [0], [0], [1], [0, 0, 1, 1], [], []>} : vector<56x32xf32>, vector<32x256xf32>, vector<56x256xf32> -> vector<56x256xf32>
    %41 = arith.addf %36, %40 : vector<56x256xf32>
    %c0_50 = arith.constant 0 : index
    %c0_51 = arith.constant 0 : index
    %42 = vector.load %arg12[%c0_50, %c0_51] : memref<64x256xf32, #tpu.memory_space<vmem>>, vector<56x256xf32>
    tpu.vector_store %arg12[%c0_50, %c0_51], %41 {strides = array<i32>} : memref<64x256xf32, #tpu.memory_space<vmem>>, vector<56x256xf32>,
    %c0_52 = arith.constant 0 : index
    %c0_53 = arith.constant 0 : index
    %43 = vector.load %arg12[%c0_52, %c0_53] : memref<64x256xf32, #tpu.memory_space<vmem>>, vector<64x256xf32>
    %c0_54 = arith.constant 0 : index
    %c0_55 = arith.constant 0 : index
    %44 = vector.load %arg3[%c0_54, %c0_55] : memref<1x256xf32, #tpu.memory_space<vmem>>, vector<1x256xf32>
    %45 = vector.broadcast %44 : vector<1x256xf32> to vector<64x256xf32>
    %46 = arith.addf %43, %45 : vector<64x256xf32>
    %cst_56 = arith.constant 0.000000e+00 : f32
    %47 = vector.broadcast %cst_56 : f32 to vector<64x256xf32>
    %48 = arith.maximumf %46, %47 : vector<64x256xf32>
    %c0_57 = arith.constant 0 : index
    %c0_58 = arith.constant 0 : index
    %49 = vector.load %arg13[%c0_57, %c0_58] : memref<64x256xf32, #tpu.memory_space<vmem>>, vector<64x256xf32>
    tpu.vector_store %arg13[%c0_57, %c0_58], %48 {strides = array<i32>} : memref<64x256xf32, #tpu.memory_space<vmem>>, vector<64x256xf32>,
    %c0_59 = arith.constant 0 : index
    %c0_60 = arith.constant 0 : index
    %50 = vector.load %arg13[%c0_59, %c0_60] : memref<64x256xf32, #tpu.memory_space<vmem>>, vector<64x256xf32>
    %c1_61 = arith.constant 1 : index
    %c0_62 = arith.constant 0 : index
    %c0_63 = arith.constant 0 : index
    %51 = vector.load %arg4[%c1_61, %c0_62, %c0_63] : memref<3x256x512xf32, #tpu.memory_space<vmem>>, vector<1x256x512xf32>
    %52 = vector.shape_cast %51 : vector<1x256x512xf32> to vector<256x512xf32>
    %cst_64 = arith.constant dense<0.000000e+00> : vector<64x512xf32>
    %53 = tpu.matmul %50, %52, %cst_64 {dimension_numbers = #tpu.dot_dimension_numbers<[1], [0], [0], [1], [0, 0, 1, 1], [], []>} : vector<64x256xf32>, vector<256x512xf32>, vector<64x512xf32> -> vector<64x512xf32>
    %c0_65 = arith.constant 0 : index
    %c0_66 = arith.constant 0 : index
    %54 = vector.load %arg14[%c0_65, %c0_66] : memref<64x512xf32, #tpu.memory_space<vmem>>, vector<64x512xf32>
    tpu.vector_store %arg14[%c0_65, %c0_66], %53 {strides = array<i32>} : memref<64x512xf32, #tpu.memory_space<vmem>>, vector<64x512xf32>,
    %c8_67 = arith.constant 8 : index
    %c0_68 = arith.constant 0 : index
    %55 = vector.load %arg14[%c8_67, %c0_68] : memref<64x512xf32, #tpu.memory_space<vmem>>, vector<56x512xf32>
    %c0_69 = arith.constant 0 : index
    %c0_70 = arith.constant 0 : index
    %56 = vector.load %arg13[%c0_69, %c0_70] : memref<64x256xf32, #tpu.memory_space<vmem>>, vector<56x256xf32>
    %c0_71 = arith.constant 0 : index
    %c0_72 = arith.constant 0 : index
    %c0_73 = arith.constant 0 : index
    %57 = vector.load %arg4[%c0_71, %c0_72, %c0_73] : memref<3x256x512xf32, #tpu.memory_space<vmem>>, vector<1x256x512xf32>
    %58 = vector.shape_cast %57 : vector<1x256x512xf32> to vector<256x512xf32>
    %cst_74 = arith.constant dense<0.000000e+00> : vector<56x512xf32>
    %59 = tpu.matmul %56, %58, %cst_74 {dimension_numbers = #tpu.dot_dimension_numbers<[1], [0], [0], [1], [0, 0, 1, 1], [], []>} : vector<56x256xf32>, vector<256x512xf32>, vector<56x512xf32> -> vector<56x512xf32>
    %60 = arith.addf %55, %59 : vector<56x512xf32>
    %c8_75 = arith.constant 8 : index
    %c0_76 = arith.constant 0 : index
    %61 = vector.load %arg14[%c8_75, %c0_76] : memref<64x512xf32, #tpu.memory_space<vmem>>, vector<56x512xf32>
    tpu.vector_store %arg14[%c8_75, %c0_76], %60 {strides = array<i32>} : memref<64x512xf32, #tpu.memory_space<vmem>>, vector<56x512xf32>,
    %c0_77 = arith.constant 0 : index
    %c0_78 = arith.constant 0 : index
    %62 = vector.load %arg14[%c0_77, %c0_78] : memref<64x512xf32, #tpu.memory_space<vmem>>, vector<56x512xf32>
    %c8_79 = arith.constant 8 : index
    %c0_80 = arith.constant 0 : index
    %63 = vector.load %arg13[%c8_79, %c0_80] : memref<64x256xf32, #tpu.memory_space<vmem>>, vector<56x256xf32>
    %c2_81 = arith.constant 2 : index
    %c0_82 = arith.constant 0 : index
    %c0_83 = arith.constant 0 : index
    %64 = vector.load %arg4[%c2_81, %c0_82, %c0_83] : memref<3x256x512xf32, #tpu.memory_space<vmem>>, vector<1x256x512xf32>
    %65 = vector.shape_cast %64 : vector<1x256x512xf32> to vector<256x512xf32>
    %cst_84 = arith.constant dense<0.000000e+00> : vector<56x512xf32>
    %66 = tpu.matmul %63, %65, %cst_84 {dimension_numbers = #tpu.dot_dimension_numbers<[1], [0], [0], [1], [0, 0, 1, 1], [], []>} : vector<56x256xf32>, vector<256x512xf32>, vector<56x512xf32> -> vector<56x512xf32>
    %67 = arith.addf %62, %66 : vector<56x512xf32>
    %c0_85 = arith.constant 0 : index
    %c0_86 = arith.constant 0 : index
    %68 = vector.load %arg14[%c0_85, %c0_86] : memref<64x512xf32, #tpu.memory_space<vmem>>, vector<56x512xf32>
    tpu.vector_store %arg14[%c0_85, %c0_86], %67 {strides = array<i32>} : memref<64x512xf32, #tpu.memory_space<vmem>>, vector<56x512xf32>,
    %c0_87 = arith.constant 0 : index
    %c0_88 = arith.constant 0 : index
    %69 = vector.load %arg14[%c0_87, %c0_88] : memref<64x512xf32, #tpu.memory_space<vmem>>, vector<64x512xf32>
    %c0_89 = arith.constant 0 : index
    %c0_90 = arith.constant 0 : index
    %70 = vector.load %arg5[%c0_89, %c0_90] : memref<1x512xf32, #tpu.memory_space<vmem>>, vector<1x512xf32>
    %71 = vector.broadcast %70 : vector<1x512xf32> to vector<64x512xf32>
    %72 = arith.addf %69, %71 : vector<64x512xf32>
    %cst_91 = arith.constant 0.000000e+00 : f32
    %73 = vector.broadcast %cst_91 : f32 to vector<64x512xf32>
    %74 = arith.maximumf %72, %73 : vector<64x512xf32>
    %c0_92 = arith.constant 0 : index
    %c0_93 = arith.constant 0 : index
    %75 = vector.load %arg15[%c0_92, %c0_93] : memref<64x512xf32, #tpu.memory_space<vmem>>, vector<64x512xf32>
    tpu.vector_store %arg15[%c0_92, %c0_93], %74 {strides = array<i32>} : memref<64x512xf32, #tpu.memory_space<vmem>>, vector<64x512xf32>,
    %c0_94 = arith.constant 0 : index
    %c0_95 = arith.constant 0 : index
    %76 = vector.load %arg15[%c0_94, %c0_95] : memref<64x512xf32, #tpu.memory_space<vmem>>, vector<8x512xf32>
    %c0_96 = arith.constant 0 : index
    %c0_97 = arith.constant 0 : index
    %c0_98 = arith.constant 0 : index
    %77 = vector.load %arg6[%c0_96, %c0_97, %c0_98] : memref<8x512x128xf32, #tpu.memory_space<vmem>>, vector<1x512x128xf32>
    %78 = vector.shape_cast %77 : vector<1x512x128xf32> to vector<512x128xf32>
    %cst_99 = arith.constant dense<0.000000e+00> : vector<8x128xf32>
    %79 = tpu.matmul %76, %78, %cst_99 {dimension_numbers = #tpu.dot_dimension_numbers<[1], [0], [0], [1], [0, 0, 1, 1], [], []>} : vector<8x512xf32>, vector<512x128xf32>, vector<8x128xf32> -> vector<8x128xf32>
    %c8_100 = arith.constant 8 : index
    %c0_101 = arith.constant 0 : index
    %80 = vector.load %arg15[%c8_100, %c0_101] : memref<64x512xf32, #tpu.memory_space<vmem>>, vector<8x512xf32>
    %c1_102 = arith.constant 1 : index
    %c0_103 = arith.constant 0 : index
    %c0_104 = arith.constant 0 : index
    %81 = vector.load %arg6[%c1_102, %c0_103, %c0_104] : memref<8x512x128xf32, #tpu.memory_space<vmem>>, vector<1x512x128xf32>
    %82 = vector.shape_cast %81 : vector<1x512x128xf32> to vector<512x128xf32>
    %cst_105 = arith.constant dense<0.000000e+00> : vector<8x128xf32>
    %83 = tpu.matmul %80, %82, %cst_105 {dimension_numbers = #tpu.dot_dimension_numbers<[1], [0], [0], [1], [0, 0, 1, 1], [], []>} : vector<8x512xf32>, vector<512x128xf32>, vector<8x128xf32> -> vector<8x128xf32>
    %84 = arith.addf %79, %83 : vector<8x128xf32>
    %c16_106 = arith.constant 16 : index
    %c0_107 = arith.constant 0 : index
    %85 = vector.load %arg15[%c16_106, %c0_107] : memref<64x512xf32, #tpu.memory_space<vmem>>, vector<8x512xf32>
    %c2_108 = arith.constant 2 : index
    %c0_109 = arith.constant 0 : index
    %c0_110 = arith.constant 0 : index
    %86 = vector.load %arg6[%c2_108, %c0_109, %c0_110] : memref<8x512x128xf32, #tpu.memory_space<vmem>>, vector<1x512x128xf32>
    %87 = vector.shape_cast %86 : vector<1x512x128xf32> to vector<512x128xf32>
    %cst_111 = arith.constant dense<0.000000e+00> : vector<8x128xf32>
    %88 = tpu.matmul %85, %87, %cst_111 {dimension_numbers = #tpu.dot_dimension_numbers<[1], [0], [0], [1], [0, 0, 1, 1], [], []>} : vector<8x512xf32>, vector<512x128xf32>, vector<8x128xf32> -> vector<8x128xf32>
    %89 = arith.addf %84, %88 : vector<8x128xf32>
    %c24_112 = arith.constant 24 : index
    %c0_113 = arith.constant 0 : index
    %90 = vector.load %arg15[%c24_112, %c0_113] : memref<64x512xf32, #tpu.memory_space<vmem>>, vector<8x512xf32>
    %c3_114 = arith.constant 3 : index
    %c0_115 = arith.constant 0 : index
    %c0_116 = arith.constant 0 : index
    %91 = vector.load %arg6[%c3_114, %c0_115, %c0_116] : memref<8x512x128xf32, #tpu.memory_space<vmem>>, vector<1x512x128xf32>
    %92 = vector.shape_cast %91 : vector<1x512x128xf32> to vector<512x128xf32>
    %cst_117 = arith.constant dense<0.000000e+00> : vector<8x128xf32>
    %93 = tpu.matmul %90, %92, %cst_117 {dimension_numbers = #tpu.dot_dimension_numbers<[1], [0], [0], [1], [0, 0, 1, 1], [], []>} : vector<8x512xf32>, vector<512x128xf32>, vector<8x128xf32> -> vector<8x128xf32>
    %94 = arith.addf %89, %93 : vector<8x128xf32>
    %c32_118 = arith.constant 32 : index
    %c0_119 = arith.constant 0 : index
    %95 = vector.load %arg15[%c32_118, %c0_119] : memref<64x512xf32, #tpu.memory_space<vmem>>, vector<8x512xf32>
    %c4_120 = arith.constant 4 : index
    %c0_121 = arith.constant 0 : index
    %c0_122 = arith.constant 0 : index
    %96 = vector.load %arg6[%c4_120, %c0_121, %c0_122] : memref<8x512x128xf32, #tpu.memory_space<vmem>>, vector<1x512x128xf32>
    %97 = vector.shape_cast %96 : vector<1x512x128xf32> to vector<512x128xf32>
    %cst_123 = arith.constant dense<0.000000e+00> : vector<8x128xf32>
    %98 = tpu.matmul %95, %97, %cst_123 {dimension_numbers = #tpu.dot_dimension_numbers<[1], [0], [0], [1], [0, 0, 1, 1], [], []>} : vector<8x512xf32>, vector<512x128xf32>, vector<8x128xf32> -> vector<8x128xf32>
    %99 = arith.addf %94, %98 : vector<8x128xf32>
    %c40_124 = arith.constant 40 : index
    %c0_125 = arith.constant 0 : index
    %100 = vector.load %arg15[%c40_124, %c0_125] : memref<64x512xf32, #tpu.memory_space<vmem>>, vector<8x512xf32>
    %c5_126 = arith.constant 5 : index
    %c0_127 = arith.constant 0 : index
    %c0_128 = arith.constant 0 : index
    %101 = vector.load %arg6[%c5_126, %c0_127, %c0_128] : memref<8x512x128xf32, #tpu.memory_space<vmem>>, vector<1x512x128xf32>
    %102 = vector.shape_cast %101 : vector<1x512x128xf32> to vector<512x128xf32>
    %cst_129 = arith.constant dense<0.000000e+00> : vector<8x128xf32>
    %103 = tpu.matmul %100, %102, %cst_129 {dimension_numbers = #tpu.dot_dimension_numbers<[1], [0], [0], [1], [0, 0, 1, 1], [], []>} : vector<8x512xf32>, vector<512x128xf32>, vector<8x128xf32> -> vector<8x128xf32>
    %104 = arith.addf %99, %103 : vector<8x128xf32>
    %c48_130 = arith.constant 48 : index
    %c0_131 = arith.constant 0 : index
    %105 = vector.load %arg15[%c48_130, %c0_131] : memref<64x512xf32, #tpu.memory_space<vmem>>, vector<8x512xf32>
    %c6_132 = arith.constant 6 : index
    %c0_133 = arith.constant 0 : index
    %c0_134 = arith.constant 0 : index
    %106 = vector.load %arg6[%c6_132, %c0_133, %c0_134] : memref<8x512x128xf32, #tpu.memory_space<vmem>>, vector<1x512x128xf32>
    %107 = vector.shape_cast %106 : vector<1x512x128xf32> to vector<512x128xf32>
    %cst_135 = arith.constant dense<0.000000e+00> : vector<8x128xf32>
    %108 = tpu.matmul %105, %107, %cst_135 {dimension_numbers = #tpu.dot_dimension_numbers<[1], [0], [0], [1], [0, 0, 1, 1], [], []>} : vector<8x512xf32>, vector<512x128xf32>, vector<8x128xf32> -> vector<8x128xf32>
    %109 = arith.addf %104, %108 : vector<8x128xf32>
    %c56_136 = arith.constant 56 : index
    %c0_137 = arith.constant 0 : index
    %110 = vector.load %arg15[%c56_136, %c0_137] : memref<64x512xf32, #tpu.memory_space<vmem>>, vector<8x512xf32>
    %c7_138 = arith.constant 7 : index
    %c0_139 = arith.constant 0 : index
    %c0_140 = arith.constant 0 : index
    %111 = vector.load %arg6[%c7_138, %c0_139, %c0_140] : memref<8x512x128xf32, #tpu.memory_space<vmem>>, vector<1x512x128xf32>
    %112 = vector.shape_cast %111 : vector<1x512x128xf32> to vector<512x128xf32>
    %cst_141 = arith.constant dense<0.000000e+00> : vector<8x128xf32>
    %113 = tpu.matmul %110, %112, %cst_141 {dimension_numbers = #tpu.dot_dimension_numbers<[1], [0], [0], [1], [0, 0, 1, 1], [], []>} : vector<8x512xf32>, vector<512x128xf32>, vector<8x128xf32> -> vector<8x128xf32>
    %114 = arith.addf %109, %113 : vector<8x128xf32>
    %c0_142 = arith.constant 0 : index
    %c0_143 = arith.constant 0 : index
    %115 = vector.load %arg7[%c0_142, %c0_143] : memref<1x128xf32, #tpu.memory_space<vmem>>, vector<1x128xf32>
    %116 = vector.broadcast %115 : vector<1x128xf32> to vector<8x128xf32>
    %117 = arith.addf %114, %116 : vector<8x128xf32>
    %cst_144 = arith.constant 0.000000e+00 : f32
    %118 = vector.broadcast %cst_144 : f32 to vector<8x128xf32>
    %119 = arith.maximumf %117, %118 : vector<8x128xf32>
    %c0_145 = arith.constant 0 : index
    %c0_146 = arith.constant 0 : index
    %120 = vector.load %arg8[%c0_145, %c0_146] : memref<128x128xf32, #tpu.memory_space<vmem>>, vector<128x128xf32>
    %cst_147 = arith.constant dense<0.000000e+00> : vector<8x128xf32>
    %121 = tpu.matmul %119, %120, %cst_147 {dimension_numbers = #tpu.dot_dimension_numbers<[1], [0], [0], [1], [0, 0, 1, 1], [], []>} : vector<8x128xf32>, vector<128x128xf32>, vector<8x128xf32> -> vector<8x128xf32>
    %c0_148 = arith.constant 0 : index
    %c0_149 = arith.constant 0 : index
    %122 = vector.load %arg9[%c0_148, %c0_149] : memref<1x128xf32, #tpu.memory_space<vmem>>, vector<1x128xf32>
    %123 = vector.broadcast %122 : vector<1x128xf32> to vector<8x128xf32>
    %124 = arith.addf %121, %123 : vector<8x128xf32>
    %c0_150 = arith.constant 0 : index
    %c0_151 = arith.constant 0 : index
    %125 = vector.load %arg10[%c0_150, %c0_151] : memref<8x128xf32, #tpu.memory_space<vmem>>, vector<8x128xf32>
    tpu.vector_store %arg10[%c0_150, %c0_151], %124 {strides = array<i32>} : memref<8x128xf32, #tpu.memory_space<vmem>>, vector<8x128xf32>,
    return
  }
  func.func @transform_0(%arg0: i32) -> (i32, i32, i32) {
    %c0_i32 = arith.constant 0 : i32
    %c0_i32_0 = arith.constant 0 : i32
    %c0_i32_1 = arith.constant 0 : i32
    return %c0_i32, %arg0, %c0_i32_0 : i32, i32, i32
  }
  func.func @transform_1(%arg0: i32) -> (i32, i32, i32) {
    %c0_i32 = arith.constant 0 : i32
    %c0_i32_0 = arith.constant 0 : i32
    %c0_i32_1 = arith.constant 0 : i32
    %c0_i32_2 = arith.constant 0 : i32
    return %c0_i32, %c0_i32_0, %c0_i32_1 : i32, i32, i32
  }
  func.func @transform_2(%arg0: i32) -> (i32, i32) {
    %c0_i32 = arith.constant 0 : i32
    %c0_i32_0 = arith.constant 0 : i32
    %c0_i32_1 = arith.constant 0 : i32
    return %c0_i32, %c0_i32_0 : i32, i32
  }
  func.func @transform_3(%arg0: i32) -> (i32, i32, i32) {
    %c0_i32 = arith.constant 0 : i32
    %c0_i32_0 = arith.constant 0 : i32
    %c0_i32_1 = arith.constant 0 : i32
    %c0_i32_2 = arith.constant 0 : i32
    return %c0_i32, %c0_i32_0, %c0_i32_1 : i32, i32, i32
  }
  func.func @transform_4(%arg0: i32) -> (i32, i32) {
    %c0_i32 = arith.constant 0 : i32
    %c0_i32_0 = arith.constant 0 : i32
    %c0_i32_1 = arith.constant 0 : i32
    return %c0_i32, %c0_i32_0 : i32, i32
  }
  func.func @transform_5(%arg0: i32) -> (i32, i32, i32) {
    %c0_i32 = arith.constant 0 : i32
    %c0_i32_0 = arith.constant 0 : i32
    %c0_i32_1 = arith.constant 0 : i32
    %c0_i32_2 = arith.constant 0 : i32
    return %c0_i32, %c0_i32_0, %c0_i32_1 : i32, i32, i32
  }
  func.func @transform_6(%arg0: i32) -> (i32, i32) {
    %c0_i32 = arith.constant 0 : i32
    %c0_i32_0 = arith.constant 0 : i32
    %c0_i32_1 = arith.constant 0 : i32
    return %c0_i32, %c0_i32_0 : i32, i32
  }
  func.func @transform_7(%arg0: i32) -> (i32, i32) {
    %c0_i32 = arith.constant 0 : i32
    %c0_i32_0 = arith.constant 0 : i32
    %c0_i32_1 = arith.constant 0 : i32
    return %c0_i32, %c0_i32_0 : i32, i32
  }
  func.func @transform_8(%arg0: i32) -> (i32, i32) {
    %c0_i32 = arith.constant 0 : i32
    %c0_i32_0 = arith.constant 0 : i32
    %c0_i32_1 = arith.constant 0 : i32
    return %c0_i32, %c0_i32_0 : i32, i32
  }
  func.func @transform_9(%arg0: i32) -> (i32, i32) {
    %c0_i32 = arith.constant 0 : i32
    %c0_i32_0 = arith.constant 0 : i32
    return %arg0, %c0_i32 : i32, i32
  }
}

</mosaic_0001>

<bundles_post_ra>
// kernel: qnetwork_forward.1
= control target key start
LH: loop header
LB: loop body
LE: loop exit
PB: predicated region body
PF: predicated region fallthrough
CT: control target
= control target key end

     0   :  { %14 = vsyncpa [#allocation9], 0  ;;  %s6303_s0 = inlined_call_operand.vmem [shape: f32[8,16,32], index: 0, kind: input, shape index: {}]   ;;  %s6304_s1 = inlined_call_operand.hbm [shape: f32[3,32,256], index: 1, kind: input, shape index: {}]   ;;  %s6305_s2 = inlined_call_operand.hbm [shape: f32[1,256], index: 2, kind: input, shape index: {}]   ;;  %s6306_s3 = inlined_call_operand.hbm [shape: f32[3,256,512], index: 3, kind: input, shape index: {}]   ;;  %s6307_s4 = inlined_call_operand.hbm [shape: f32[1,512], index: 4, kind: input, shape index: {}]   ;;  %s6308_s5 = inlined_call_operand.hbm [shape: f32[8,512,128], index: 5, kind: input, shape index: {}]   ;;  %s6309_s6 = inlined_call_operand.hbm [shape: f32[1,128], index: 6, kind: input, shape index: {}]   ;;  %s6310_s7 = inlined_call_operand.hbm [shape: f32[128,128], index: 7, kind: input, shape index: {}]   ;;  %s6311_s8 = inlined_call_operand.hbm [shape: f32[1,128], index: 8, kind: input, shape index: {}]   ;;  %s6312_s9 = inlined_call_operand.vmem [shape: f32[16,128], index: 9, kind: output, shape index: {}]  }
   0x1   :  { %15 = vsyncpa [#allocation11], 0 }
   0x2   :  { %16 = vsyncpa [#allocation14], 0 }
   0x3   :  { %17 = vsyncpa [#allocation17], 0 }
   0x4   :  { %18 = vsyncpa [#allocation20], 0  ;;  %s5597_s30 = smov 0   ;;  %s5599_s10 = smov 0  }
   0x5   :  { %s5601_s11 = smov 0  }
   0x6 LB: > { %s5613_s12 = sadd.s32 4294967295, %s5529_s11   ;;  %s5616_s13 = sadd.s32 1, %s5529_s11   ;;  %s5529_s11 = sphi %s5601_s11, %s6368_s11   ;;  %s5525_s10 = sphi %s5599_s10, %s6367_s10   ;;  %s5521_s30 = sphi %s5597_s30, %s6366_s30  }
   0x7   : > { %s28_s14 = ssub.s32 %s5529_s11, %s5616_s13  ;;  %s31_s15 = sadd.s32 1, %s5525_s10 }
   0x8   : > { %p29_p0 = scmp.eq.s32.totalorder %s28_s14, 0  ;;  %p38_p1 = scmp.ne.s32.totalorder %s5525_s10, %s5521_s30 }
   0x9   : > { %p39_p2 = scmp.eq.s32.totalorder %s5529_s11, 0  ;;  %p4498_p3 = scmp.ge.s32.totalorder %s5529_s11, 1 }
   0xa   : > { %s5626_s16 = scalar_select %p29_p0, %s5525_s10, %s31_s15  }
   0xb   : > { %p5628_p4 = por %p39_p2, %p38_p1  ;;  %p249_p5 = scmp.lt.s32.totalorder %s5529_s11, 3 }
   0xc   : > { %p6313_p6 = scmp.eq.s32.totalorder %s5613_s12, 0  ;;  %s5531_s19 = smov [#allocation10]  }
   0xd   : > { %s6319_s17 = scalar_select %p5628_p4, 1, 0 }
   0xe   : > { %p5634_p7 = pnand %p4498_p3, %p249_p5  ;;  %s275_s20 = sshll.u32 %s5531_s19, 4  ;;  %s276_s20 = int_to_ptr.vmem [resolvable:$true] %s275_s20 }
   0xf   : > { %s5532_s21 = smov [#allocation13]   ;;  %s5533_s24 = smov [#allocation16]  }
  0x10   : > { %s6320_s18 = scalar_select %p5634_p7, 1, 0 }
  0x11   : > { %p5198_p8 = pneg %p5634_p7  ;;  %s299_s22 = sshll.u32 %s5532_s21, 4  ;;  %s300_s22 = int_to_ptr.vmem [resolvable:$true] %s299_s22 }
  0x12   : > { %s323_s25 = sshll.u32 %s5533_s24, 4  ;;  %s5290_s27 = scalar_lea.vmem %s276_s20, 32  ;;  %s5646_s25 = int_to_ptr.vmem [resolvable:$true] %s323_s25 }
  0x13   : > { %p5642_p9 = pnand %p6313_p6, %p5198_p8  ;;  %p5291_p11 = scmp.ne.s32.totalorder %s276_s20, %s5290_s27 }
  0x14   : > { %p5298_p0 = scmp.lt.s32.totalorder %s276_s20, %s276_s20  ;;  %p5299_p1 = scmp.lt.s32.totalorder %s5290_s27, %s5290_s27 }
  0x15   : > { %p5650_p10 = pneg %p5642_p9 }
  0x16   : > { %p5300_p2 = por %p5299_p1, %p5298_p0 }
  0x17   : > { %p5293_p12 = pnand %p5291_p11, %p5650_p10 }
  0x19   : > { %p5294_p13 = pneg %p5293_p12 }
  0x1b   : > { %p5301_p3 = pnand %p5300_p2, %p5294_p13 }
  0x1d   : > { %5304 = shalt.err (!%p5301_p3)
}
  0x1e   : > { %5204 = dma.hbm_to_vmem [thread:$0]  (!%p5642_p9), %s6305_s2, 32, %s276_s20, [#allocation11]  }
  0x1f   : > { %s5316_s14 = scalar_lea.vmem %s300_s22, 64  ;;  %p5324_p7 = scmp.lt.s32.totalorder %s300_s22, %s300_s22 }
  0x20   : > { %p5317_p5 = scmp.ne.s32.totalorder %s300_s22, %s5316_s14  ;;  %p5325_p11 = scmp.lt.s32.totalorder %s5316_s14, %s5316_s14 }
  0x22   : > { %p5319_p8 = pnand %p5317_p5, %p5650_p10  ;;  %p5326_p12 = por %p5325_p11, %p5324_p7 }
  0x24   : > { %p5320_p6 = pneg %p5319_p8 }
  0x26   : > { %p5327_p4 = pnand %p5326_p12, %p5320_p6 }
  0x28   : > { %5330 = shalt.err (!%p5327_p4)
}
  0x29   : > { %5210 = dma.hbm_to_vmem [thread:$0]  (!%p5642_p9), %s6307_s4, 64, %s300_s22, [#allocation14]  }
  0x2a   : > { %s5342_s20 = scalar_lea.vmem %s5646_s25, 16  ;;  %s5349_s21 = scalar_lea.vmem %s5646_s25, 32 }
  0x2b   : > { %p5343_p13 = scmp.ne.s32.totalorder %s5646_s25, %s5342_s20  ;;  %p5350_p6 = scmp.lt.s32.totalorder %s5646_s25, %s5646_s25 }
  0x2c   : > { %p5351_p4 = scmp.lt.s32.totalorder %s5349_s21, %s5342_s20 }
  0x2d   : > { %p5345_p0 = pnand %p5343_p13, %p5650_p10 }
  0x2e   : > { %p5352_p7 = por %p5351_p4, %p5350_p6 }
  0x2f   : > { %p5346_p1 = pneg %p5345_p0 }
  0x31   : > { %p5353_p2 = pnand %p5352_p7, %p5346_p1 }
  0x33   : > { %5356 = shalt.err (!%p5353_p2)
}
  0x34   : > { %5216 = dma.hbm_to_vmem [thread:$0]  (!%p5642_p9), %s6309_s6, 16, %s5646_s25, [#allocation17]  }
  0x35   : > { %s5534_s22 = smov [#allocation8]  }
  0x36   : > { %s261_s28 = sshll.u32 %s5534_s22, 4  ;;  %s262_s28 = int_to_ptr.vmem [resolvable:$true] %s261_s28 }
  0x37   : > { %s5368_s29 = scalar_lea.vmem %s262_s28, 3072  ;;  %p5376_p11 = scmp.lt.s32.totalorder %s262_s28, %s262_s28 }
  0x38   : > { %p5369_p3 = scmp.ne.s32.totalorder %s262_s28, %s5368_s29  ;;  %p5377_p12 = scmp.lt.s32.totalorder %s5368_s29, %s5368_s29 }
  0x3a   : > { %p5371_p5 = pnand %p5369_p3, %p5650_p10  ;;  %p5378_p13 = por %p5377_p12, %p5376_p11 }
  0x3c   : > { %p5372_p8 = pneg %p5371_p5 }
  0x3e   : > { %p5379_p0 = pnand %p5378_p13, %p5372_p8 }
  0x40   : > { %5382 = shalt.err (!%p5379_p0)
}
  0x41   : > { %s5535_s14 = smov 256   ;;  %s5536_s15 = smov 16  }
  0x42   : > { %5201 = dma.hbm_to_vmem [thread:$0]  (!%p5642_p9), %s6304_s1, 3072, %s262_s28, [#allocation9], %s5535_s14, %s5535_s14, %s5536_s15  }
  0x43   : > { %s5537_s20 = smov [#allocation12]  }
  0x44   : > { %s285_s21 = sshll.u32 %s5537_s20, 4  ;;  %s286_s21 = int_to_ptr.vmem [resolvable:$true] %s285_s21 }
  0x45   : > { %s5394_s24 = scalar_lea.vmem %s286_s21, 49152  ;;  %p5402_p7 = scmp.lt.s32.totalorder %s286_s21, %s286_s21 }
  0x46   : > { %p5395_p1 = scmp.ne.s32.totalorder %s286_s21, %s5394_s24  ;;  %p5403_p2 = scmp.lt.s32.totalorder %s5394_s24, %s5394_s24 }
  0x48   : > { %p5397_p6 = pnand %p5395_p1, %p5650_p10  ;;  %p5404_p3 = por %p5403_p2, %p5402_p7 }
  0x4a   : > { %p5398_p4 = pneg %p5397_p6 }
  0x4c   : > { %p5405_p5 = pnand %p5404_p3, %p5398_p4 }
  0x4e   : > { %5408 = shalt.err (!%p5405_p5)
}
  0x4f   : > { %s5538_s27 = smov 512   ;;  %s5539_s22 = smov 32  }
  0x50   : > { %5207 = dma.hbm_to_vmem [thread:$0]  (!%p5642_p9), %s6306_s3, 49152, %s286_s21, [#allocation11], %s5538_s27, %s5538_s27, %s5539_s22  }
  0x51   : > { %s5540_s14 = smov [#allocation15]  }
  0x52   : > { %s309_s15 = sshll.u32 %s5540_s14, 4  ;;  %s310_s15 = int_to_ptr.vmem [resolvable:$true] %s309_s15 }
  0x53   : > { %s5420_s19 = scalar_lea.vmem %s310_s15, 65536  ;;  %p5428_p13 = scmp.lt.s32.totalorder %s310_s15, %s310_s15 }
  0x54   : > { %p5421_p8 = scmp.ne.s32.totalorder %s310_s15, %s5420_s19  ;;  %p5429_p0 = scmp.lt.s32.totalorder %s5420_s19, %s5420_s19 }
  0x56   : > { %p5423_p11 = pnand %p5421_p8, %p5650_p10  ;;  %p5430_p1 = por %p5429_p0, %p5428_p13 }
  0x58   : > { %p5424_p12 = pneg %p5423_p11 }
  0x5a   : > { %p5431_p6 = pnand %p5430_p1, %p5424_p12 }
  0x5c   : > { %5434 = shalt.err (!%p5431_p6)
}
  0x5d   : > { %s5541_s25 = smov 128   ;;  %s5542_s20 = smov 8  }
  0x5e   : > { %5213 = dma.hbm_to_vmem [thread:$0]  (!%p5642_p9), %s6308_s5, 65536, %s310_s15, [#allocation14], %s5541_s25, %s5541_s25, %s5542_s20  }
  0x5f   : > { %s5543_s27 = smov [#allocation18]   ;;  %s5544_s29 = smov [#allocation19]  }
  0x60   : > { %s333_s22 = sshll.u32 %s5543_s27, 4  ;;  %s347_s28 = sshll.u32 %s5544_s29, 4  ;;  %s334_s22 = int_to_ptr.vmem [resolvable:$true] %s333_s22  ;;  %s348_s28 = int_to_ptr.vmem [resolvable:$true] %s347_s28 }
  0x61   : > { %s5446_s14 = scalar_lea.vmem %s334_s22, 2048  ;;  %p5454_p3 = scmp.lt.s32.totalorder %s334_s22, %s334_s22 }
  0x62   : > { %p5447_p4 = scmp.ne.s32.totalorder %s334_s22, %s5446_s14  ;;  %p5455_p5 = scmp.lt.s32.totalorder %s5446_s14, %s5446_s14 }
  0x64   : > { %p5449_p7 = pnand %p5447_p4, %p5650_p10  ;;  %p5456_p8 = por %p5455_p5, %p5454_p3 }
  0x66   : > { %p5450_p2 = pneg %p5449_p7 }
  0x68   : > { %p5457_p11 = pnand %p5456_p8, %p5450_p2 }
  0x6a   : > { %5460 = shalt.err (!%p5457_p11)
}
  0x6b   : > { %5219 = dma.hbm_to_vmem [thread:$0]  (!%p5642_p9), %s6310_s7, 2048, %s334_s22, [#allocation17], %s5541_s25, %s5541_s25, %s5542_s20  }
  0x6c   : > { %s5472_s24 = scalar_lea.vmem %s348_s28, 16  ;;  %s5479_s21 = scalar_lea.vmem %s348_s28, 32 }
  0x6d   : > { %p5473_p12 = scmp.ne.s32.totalorder %s348_s28, %s5472_s24  ;;  %p5480_p1 = scmp.lt.s32.totalorder %s348_s28, %s348_s28 }
  0x6e   : > { %p5481_p6 = scmp.lt.s32.totalorder %s5479_s21, %s5472_s24 }
  0x6f   : > { %p5475_p13 = pnand %p5473_p12, %p5650_p10 }
  0x70   : > { %p5482_p4 = por %p5481_p6, %p5480_p1 }
  0x71   : > { %p5476_p0 = pneg %p5475_p13 }
  0x73   : > { %p5483_p7 = pnand %p5482_p4, %p5476_p0 }
  0x75   : > { %5486 = shalt.err (!%p5483_p7)
}
  0x76   : > { %5222 = dma.hbm_to_vmem [thread:$0]  (!%p5642_p9), %s6311_s8, 16, %s348_s28, [#allocation20]  }
  0x77   : > { %p4507_p2 = scmp.ge.s32.totalorder %s5529_s11, 2 }
  0x78   : > { %p6323_p3 = scmp.ne.s32.totalorder (!%p4507_p2), %s6319_s17, 0 }
  0x79   : > { %354 = sbr.rel (%p4507_p2) target bundleno = 134 (0x86), region = 48 }
  0x7e   : > { %357 = sbr.rel (!%p6323_p3) target bundleno = 134 (0x86), region = 52  ;;  %s359_s26 = sand.u32 (%p6323_p3), 1, %s5525_s10  }
  0x7f   : > { %s4509_s25 = sshll.u32 (%p6323_p3), %s5529_s11, 3  ;;  %s4508_s20 = sshll.u32 (%p6323_p3), %s359_s26, 6 }
  0x80   : > { %s363_s19 = scalar_lea.vmem (%p6323_p3), %s6303_s0, %s4509_s25  ;;  %s361_s23 = scalar_lea.vmem (%p6323_p3), [#allocation7], %s4508_s20 }
  0x81   : > { %v406_v0 = vld [vmem:[%s363_s19] sm:$0xff] (%p6323_p3)  ;;  %v408_v1 = vld [vmem:[%s363_s19 + $0x10] sm:$0xff] (%p6323_p3) }
  0x82   : > { %v410_v2 = vld [vmem:[%s363_s19 + $0x20] sm:$0xff] (%p6323_p3)  ;;  %407 = vst [vmem:[%s361_s23] sm:$0xff] (%p6323_p3), %v406_v0  ;;  %409 = vst [vmem:[%s361_s23 + $0x8] sm:$0xff] (%p6323_p3), %v408_v1  ;;  %v412_v3 = vld [vmem:[%s363_s19 + $0x30] sm:$0xff] (%p6323_p3) }
  0x83   : > { %411 = vst [vmem:[%s361_s23 + $0x10] sm:$0xff] %v410_v2  ;;  %v414_v4 = vld [vmem:[%s363_s19 + $0x40] sm:$0xff]  ;;  %v416_v5 = vld [vmem:[%s363_s19 + $0x50] sm:$0xff]  ;;  %413 = vst [vmem:[%s361_s23 + $0x18] sm:$0xff] %v412_v3 }
  0x84   : > { %415 = vst [vmem:[%s361_s23 + $0x20] sm:$0xff] %v414_v4  ;;  %417 = vst [vmem:[%s361_s23 + $0x28] sm:$0xff] %v416_v5  ;;  %v418_v6 = vld [vmem:[%s363_s19 + $0x60] sm:$0xff]  ;;  %v420_v7 = vld [vmem:[%s363_s19 + $0x70] sm:$0xff] }
  0x85   : > { %419 = vst [vmem:[%s361_s23 + $0x30] sm:$0xff] %v418_v6  ;;  %421 = vst [vmem:[%s361_s23 + $0x38] sm:$0xff] %v420_v7 }
  0x86 PF: > { %p6324_p9 = scmp.ne.s32.totalorder %s6320_s18, 0 }
  0x88   : > { %430 = sbr.rel (%p6324_p9) target bundleno = 1404 (0x57c), region = 90 }
  0x8d   : > { %s433_s11 = sand.u32 1, %s5521_s30   ;;  %p6325_p10 = scmp.eq.s32.totalorder %s5613_s12, 0 }
  0x8e   : > { %s4511_s17 = sshll.u32 %s433_s11, 6 }
  0x8f   : > { %s5727_s28 = scalar_lea.vmem [#allocation7], %s4511_s17 }
  0x90   : > { %5500 = dma.done.wait (%p6325_p10), [#allocation9], 3072   ;;  %p6326_p5 = pmov %p6325_p10 }
  0x92   : > { %5502 = vsyncadd (%p6326_p5), [#allocation9], 4294964224  ;;  %p6327_p8 = pmov %p6326_p5 }
  0x93   : > { %p6328_p11 = pmov %p6326_p5 }
  0x94   : > { %5504 = dma.done.wait (%p6327_p8), [#allocation11], 49184  }
  0x95   : > { %5506 = vsyncadd (%p6328_p11), [#allocation11], 4294918112  ;;  %p6329_p12 = pmov %p6326_p5 }
  0x96   : > { %p6330_p13 = pmov %p6326_p5 }
  0x97   : > { %5508 = dma.done.wait (%p6329_p12), [#allocation14], 65600  }
  0x98   : > { %5510 = vsyncadd (%p6330_p13), [#allocation14], 4294901696  ;;  %p6331_p0 = pmov %p6326_p5 }
  0x9a   : > { %5512 = dma.done.wait (%p6331_p0), [#allocation17], 2064   ;;  %p6332_p1 = pmov %p6331_p0 }
  0x9b   : > { %p6333_p6 = pmov %p6331_p0 }
  0x9c   : > { %5514 = vsyncadd (%p6332_p1), [#allocation17], 4294965232 }
  0x9d   : > { %5516 = dma.done.wait (%p6333_p6), [#allocation20], 16   ;;  %p6334_p4 = pmov %p6331_p0 }
  0x9e   : > { %v6315_v8 = vmov 0.0   ;;  %v543_v9 = vld [vmem:[#allocation8 + $0x78] sm:$0xff]  ;;  %v542_v11 = vld [vmem:[#allocation8 + $0x70] sm:$0xff]  ;;  %v541_v13 = vld [vmem:[#allocation8 + $0x68] sm:$0xff]  ;;  %vm504_vm0 = vcmask 261120   ;;  %vm5546_vm1 = vmmov 0  }
  0x9f   : > { %5518 = vsyncadd (%p6334_p4), [#allocation20], 4294967280  ;;  %632 = vmatprep.mubr.f32.mxu0 %v6315_v8  ;;  %811 = vmatprep.mubr.f32.mxu1 %v6315_v8  ;;  %v725_v10 = vld [vmem:[#allocation8 + $0x38] sm:$0xff]  ;;  %v724_v12 = vld [vmem:[#allocation8 + $0x30] sm:$0xff]  ;;  %p499_p7 = scmp.lt.s32.totalorder %s5613_s12, 1 }
  0xa0   : > { %592 = vmatprep.subr.mxu0 %v543_v9  ;;  %771 = vmatprep.subr.mxu1 %v725_v10  ;;  %v723_v14 = vld [vmem:[#allocation8 + $0x28] sm:$0xff]  ;;  %v540_v15 = vld [vmem:[#allocation8 + $0x60] sm:$0xff]  ;;  %v539_v17 = vld [vmem:[#allocation8 + $0x58] sm:$0xff] }
  0xa1   : > { %593 = vmatpush1.msra.mxu0 %v542_v11  ;;  %772 = vmatpush1.msra.mxu1 %v724_v12  ;;  %v722_v16 = vld [vmem:[#allocation8 + $0x20] sm:$0xff]  ;;  %v721_v18 = vld [vmem:[#allocation8 + $0x18] sm:$0xff]  ;;  %v538_v19 = vld [vmem:[#allocation8 + $0x50] sm:$0xff]  ;;  %s6370_s12 = smov (!%p499_p7, %s5613_s12), 1 }
  0xa2   : > { %594 = vmatprep.subr.mxu0 %v541_v13  ;;  %773 = vmatprep.subr.mxu1 %v723_v14  ;;  %v720_v20 = vld [vmem:[#allocation8 + $0x10] sm:$0xff]  ;;  %v537_v21 = vld [vmem:[#allocation8 + $0x48] sm:$0xff]  ;;  %v536_v23 = vld [vmem:[#allocation8 + $0x40] sm:$0xff]  ;;  %s4520_s30 = sshll.u32 %s6370_s12, 3 }
  0xa3   : > { %595 = vmatpush1.msra.mxu0 %v540_v15  ;;  %774 = vmatpush1.msra.mxu1 %v722_v16  ;;  %v719_v22 = vld [vmem:[#allocation8 + $0x8] sm:$0xff]  ;;  %v718_v24 = vld [vmem:[#allocation8] sm:$0xff]  ;;  %v911_v26 = vld [vmem:[#allocation8 + $0xb8] sm:$0xff]  ;;  %s502_s24 = scalar_lea.vmem %s6312_s9, %s4520_s30 }
  0xa4   : > { %596 = vmatprep.subr.mxu0 %v539_v17  ;;  %775 = vmatprep.subr.mxu1 %v721_v18  ;;  %v503_v25 = vld [vmem:[%s5727_s28] sm:$0xff]  ;;  %v4521_v27 = vld [vmem:[%s5727_s28 + $0x8] sm:$0xff]  ;;  %v4522_v28 = vld [vmem:[%s5727_s28 + $0x10] sm:$0xff] }
  0xa5   : > { %597 = vmatpush1.msra.mxu0 %v538_v19  ;;  %776 = vmatpush1.msra.mxu1 %v720_v20  ;;  %505 = vst.msk [vmem:[#allocation2] sm:$0xff] %vm504_vm0, %v503_v25  ;;  %508 = vst.msk [vmem:[#allocation2 + $0x8] sm:$0xff] %vm504_vm0, %v4521_v27  ;;  %v4523_v29 = vld [vmem:[%s5727_s28 + $0x18] sm:$0xff]  ;;  %v4524_v30 = vld [vmem:[%s5727_s28 + $0x20] sm:$0xff] }
  0xa6   : > { %598 = vmatprep.subr.mxu0 %v537_v21  ;;  %777 = vmatprep.subr.mxu1 %v719_v22  ;;  %511 = vst.msk [vmem:[#allocation2 + $0x10] sm:$0xff] %vm504_vm0, %v4522_v28  ;;  %514 = vst.msk [vmem:[#allocation2 + $0x18] sm:$0xff] %vm504_vm0, %v4523_v29  ;;  %v4525_v31 = vld [vmem:[%s5727_s28 + $0x28] sm:$0xff]  ;;  %v4526_v32 = vld [vmem:[%s5727_s28 + $0x30] sm:$0xff] }
  0xa7   : > { %599 = vmatpush1.msra.mxu0 %v536_v23  ;;  %778 = vmatpush1.msra.mxu1 %v718_v24  ;;  %517 = vst.msk [vmem:[#allocation2 + $0x20] sm:$0xff] %vm504_vm0, %v4524_v30  ;;  %520 = vst.msk [vmem:[#allocation2 + $0x28] sm:$0xff] %vm504_vm0, %v4525_v31  ;;  %v4527_v33 = vld [vmem:[%s5727_s28 + $0x38] sm:$0xff]  ;;  %v1222_v34 = vld [vmem:[#allocation12 + $0x5e8] sm:$0xff] }
  0xa8   : > { %957 = vmatprep.subr.mxu1 %v911_v26  ;;  %523 = vst.msk [vmem:[#allocation2 + $0x30] sm:$0xff] %vm504_vm0, %v4526_v32  ;;  %526 = vst.msk [vmem:[#allocation2 + $0x38] sm:$0xff] %vm504_vm0, %v4527_v33  ;;  %1289 = vmatprep.subr.mxu0 %v1222_v34  ;;  %v910_v35 = vld [vmem:[#allocation8 + $0xb0] sm:$0xff]  ;;  %v909_v37 = vld [vmem:[#allocation8 + $0xa8] sm:$0xff] }
  0xa9   : > { %v908_v38 = vld [vmem:[#allocation8 + $0xa0] sm:$0xff]  ;;  %v907_v41 = vld [vmem:[#allocation8 + $0x98] sm:$0xff]  ;;  %v1218_v42 = vld [vmem:[#allocation12 + $0x5c8] sm:$0xff] }
  0xaa   : > { %v1221_v39 = vld [vmem:[#allocation12 + $0x5e0] sm:$0xff]  ;;  %v906_v43 = vld [vmem:[#allocation8 + $0x90] sm:$0xff]  ;;  %v1224_v51 = vld [vmem:[#allocation12 + $0x5f8] sm:$0xff] }
  0xab   : > { %v1217_v44 = vld [vmem:[#allocation12 + $0x5c0] sm:$0xff]  ;;  %v1214_v47 = vld [vmem:[#allocation12 + $0x5a8] sm:$0xff]  ;;  %v1223_v0 = vld [vmem:[#allocation12 + $0x5f0] sm:$0xff] }
  0xac   : > { %v527_v36 = vld [vmem:[#allocation2] sm:$0xff]  ;;  %v5770_v40 = vld [vmem:[#allocation2 + $0x8] sm:$0xff]  ;;  %v1219_v3 = vld [vmem:[#allocation12 + $0x5d0] sm:$0xff] }
  0xad   : > { %4528 = vmatmul.mubr.msk.f32.vlgmr.msra.gmra.mxu0 %vm504_vm0, %v527_v36  ;;  %4536 = vmatmul.mubr.msk.f32.vlgmr.msra.gmra.mxu1 %vm504_vm0, %v527_v36  ;;  %v5779_v45 = vld [vmem:[#allocation2 + $0x10] sm:$0xff]  ;;  %v905_v46 = vld [vmem:[#allocation8 + $0x88] sm:$0xff]  ;;  %v904_v48 = vld [vmem:[#allocation8 + $0x80] sm:$0xff] }
  0xae   : > { %958 = vmatpush1.msra.mxu1 %v910_v35  ;;  %638 = vmatprep.mubr.f32.mxu0 %v6315_v8  ;;  %v1213_v49 = vld [vmem:[#allocation12 + $0x5a0] sm:$0xff]  ;;  %v5787_v50 = vld [vmem:[#allocation2 + $0x18] sm:$0xff]  ;;  %v1210_v52 = vld [vmem:[#allocation12 + $0x588] sm:$0xff] }
  0xaf   : > { %817 = vmatprep.mubr.f32.mxu1 %v6315_v8  ;;  %959 = vmatprep.subr.mxu1 %v909_v37  ;;  %v1209_v53 = vld [vmem:[#allocation12 + $0x580] sm:$0xff]  ;;  %v1206_v55 = vld [vmem:[#allocation12 + $0x568] sm:$0xff]  ;;  %v5819_v63 = vld [vmem:[#allocation2 + $0x38] sm:$0xff] }
  0xb0   : > { %960 = vmatpush1.msra.mxu1 %v908_v38  ;;  %1290 = vmatpush1.msra.mxu0 %v1221_v39  ;;  %v5795_v54 = vld [vmem:[#allocation2 + $0x20] sm:$0xff]  ;;  %v5803_v57 = vld [vmem:[#allocation2 + $0x28] sm:$0xff]  ;;  %v5811_v60 = vld [vmem:[#allocation2 + $0x30] sm:$0xff] }
  0xb1   : > { %4529 = vmatmul.mubr.msk.f32.gmra.mxu0 %vm504_vm0, %v5770_v40  ;;  %4537 = vmatmul.mubr.msk.f32.gmra.mxu1 %vm504_vm0, %v5770_v40  ;;  %v1205_v56 = vld [vmem:[#allocation12 + $0x560] sm:$0xff]  ;;  %v1202_v58 = vld [vmem:[#allocation12 + $0x548] sm:$0xff]  ;;  %v1220_v1 = vld [vmem:[#allocation12 + $0x5d8] sm:$0xff] }
  0xb2   : > { %644 = vmatprep.mubr.f32.mxu0 %v6315_v8  ;;  %823 = vmatprep.mubr.f32.mxu1 %v6315_v8  ;;  %v1201_v59 = vld [vmem:[#allocation12 + $0x540] sm:$0xff]  ;;  %v1198_v61 = vld [vmem:[#allocation12 + $0x528] sm:$0xff]  ;;  %v1216_v5 = vld [vmem:[#allocation12 + $0x5b8] sm:$0xff] }
  0xb3   : > { %961 = vmatprep.subr.mxu1 %v907_v41  ;;  %1291 = vmatprep.subr.mxu0 %v1218_v42  ;;  %v1197_v62 = vld [vmem:[#allocation12 + $0x520] sm:$0xff]  ;;  %v1194_v2 = vld [vmem:[#allocation12 + $0x508] sm:$0xff]  ;;  %v1215_v6 = vld [vmem:[#allocation12 + $0x5b0] sm:$0xff] }
  0xb4   : > { %962 = vmatpush1.msra.mxu1 %v906_v43  ;;  %1292 = vmatpush1.msra.mxu0 %v1217_v44  ;;  %v1193_v4 = vld [vmem:[#allocation12 + $0x500] sm:$0xff]  ;;  %v1212_v7 = vld [vmem:[#allocation12 + $0x598] sm:$0xff]  ;;  %v1190_v9 = vld [vmem:[#allocation12 + $0x4e8] sm:$0xff] }
  0xb5   : > { %4530 = vmatmul.mubr.msk.f32.gmra.mxu0 %vm504_vm0, %v5779_v45  ;;  %4538 = vmatmul.mubr.msk.f32.gmra.mxu1 %vm504_vm0, %v5779_v45  ;;  %v1211_v10 = vld [vmem:[#allocation12 + $0x590] sm:$0xff]  ;;  %v1189_v11 = vld [vmem:[#allocation12 + $0x4e0] sm:$0xff]  ;;  %v1208_v12 = vld [vmem:[#allocation12 + $0x578] sm:$0xff] }
  0xb6   : > { %650 = vmatprep.mubr.f32.mxu0 %v6315_v8  ;;  %829 = vmatprep.mubr.f32.mxu1 %v6315_v8  ;;  %v1207_v13 = vld [vmem:[#allocation12 + $0x570] sm:$0xff]  ;;  %v1204_v14 = vld [vmem:[#allocation12 + $0x558] sm:$0xff]  ;;  %v1186_v15 = vld [vmem:[#allocation12 + $0x4c8] sm:$0xff] }
  0xb7   : > { %963 = vmatprep.subr.mxu1 %v905_v46  ;;  %1293 = vmatprep.subr.mxu0 %v1214_v47  ;;  %v1203_v16 = vld [vmem:[#allocation12 + $0x550] sm:$0xff]  ;;  %v1185_v17 = vld [vmem:[#allocation12 + $0x4c0] sm:$0xff]  ;;  %v1200_v18 = vld [vmem:[#allocation12 + $0x538] sm:$0xff] }
  0xb8   : > { %964 = vmatpush1.msra.mxu1 %v904_v48  ;;  %1294 = vmatpush1.msra.mxu0 %v1213_v49  ;;  %v1199_v19 = vld [vmem:[#allocation12 + $0x530] sm:$0xff]  ;;  %v1196_v20 = vld [vmem:[#allocation12 + $0x518] sm:$0xff]  ;;  %v1182_v21 = vld [vmem:[#allocation12 + $0x4a8] sm:$0xff] }
  0xb9   : > { %4531 = vmatmul.mubr.msk.f32.gmra.mxu0 %vm504_vm0, %v5787_v50  ;;  %4539 = vmatmul.mubr.msk.f32.gmra.mxu1 %vm504_vm0, %v5787_v50  ;;  %v1195_v22 = vld [vmem:[#allocation12 + $0x510] sm:$0xff]  ;;  %v1181_v23 = vld [vmem:[#allocation12 + $0x4a0] sm:$0xff]  ;;  %v1192_v24 = vld [vmem:[#allocation12 + $0x4f8] sm:$0xff] }
  0xba   : > { %656 = vmatprep.mubr.f32.mxu0 %v6315_v8  ;;  %835 = vmatprep.mubr.f32.mxu1 %v6315_v8  ;;  %v1191_v25 = vld [vmem:[#allocation12 + $0x4f0] sm:$0xff]  ;;  %v1188_v26 = vld [vmem:[#allocation12 + $0x4d8] sm:$0xff]  ;;  %v1178_v27 = vld [vmem:[#allocation12 + $0x488] sm:$0xff] }
  0xbb   : > { %1402 = vmatprep.subr.mxu1 %v1224_v51  ;;  %1295 = vmatprep.subr.mxu0 %v1210_v52  ;;  %v1187_v28 = vld [vmem:[#allocation12 + $0x4d0] sm:$0xff]  ;;  %v1177_v29 = vld [vmem:[#allocation12 + $0x480] sm:$0xff]  ;;  %v1184_v30 = vld [vmem:[#allocation12 + $0x4b8] sm:$0xff] }
  0xbc   : > { %1296 = vmatpush1.msra.mxu0 %v1209_v53  ;;  %v1183_v31 = vld [vmem:[#allocation12 + $0x4b0] sm:$0xff]  ;;  %v1180_v32 = vld [vmem:[#allocation12 + $0x498] sm:$0xff]  ;;  %v1174_v33 = vld [vmem:[#allocation12 + $0x468] sm:$0xff] }
  0xbd   : > { %4532 = vmatmul.mubr.msk.f32.gmra.mxu0 %vm504_vm0, %v5795_v54  ;;  %4540 = vmatmul.mubr.msk.f32.gmra.mxu1 %vm504_vm0, %v5795_v54  ;;  %v1179_v34 = vld [vmem:[#allocation12 + $0x490] sm:$0xff]  ;;  %v1173_v35 = vld [vmem:[#allocation12 + $0x460] sm:$0xff]  ;;  %v1176_v36 = vld [vmem:[#allocation12 + $0x478] sm:$0xff] }
  0xbe   : > { %662 = vmatprep.mubr.f32.mxu0 %v6315_v8  ;;  %841 = vmatprep.mubr.f32.mxu1 %v6315_v8  ;;  %v1175_v37 = vld [vmem:[#allocation12 + $0x470] sm:$0xff]  ;;  %v1170_v38 = vld [vmem:[#allocation12 + $0x448] sm:$0xff]  ;;  %v1172_v39 = vld [vmem:[#allocation12 + $0x458] sm:$0xff] }
  0xbf   : > { %1297 = vmatprep.subr.mxu0 %v1206_v55  ;;  %v1171_v41 = vld [vmem:[#allocation12 + $0x450] sm:$0xff]  ;;  %v1166_v42 = vld [vmem:[#allocation12 + $0x428] sm:$0xff]  ;;  %v1168_v43 = vld [vmem:[#allocation12 + $0x438] sm:$0xff] }
  0xc0   : > { %1298 = vmatpush1.msra.mxu0 %v1205_v56  ;;  %v1165_v44 = vld [vmem:[#allocation12 + $0x420] sm:$0xff]  ;;  %v1162_v46 = vld [vmem:[#allocation12 + $0x408] sm:$0xff]  ;;  %v1164_v47 = vld [vmem:[#allocation12 + $0x418] sm:$0xff] }
  0xc1   : > { %4533 = vmatmul.mubr.msk.f32.gmra.mxu0 %vm504_vm0, %v5803_v57  ;;  %4541 = vmatmul.mubr.msk.f32.gmra.mxu1 %vm504_vm0, %v5803_v57  ;;  %v1161_v48 = vld [vmem:[#allocation12 + $0x400] sm:$0xff]  ;;  %v1163_v49 = vld [vmem:[#allocation12 + $0x410] sm:$0xff]  ;;  %v1288_v51 = vld [vmem:[#allocation12 + $0x7f8] sm:$0xff] }
  0xc2   : > { %668 = vmatprep.mubr.f32.mxu0 %v6315_v8  ;;  %847 = vmatprep.mubr.f32.mxu1 %v6315_v8  ;;  %v1285_v52 = vld [vmem:[#allocation12 + $0x7e0] sm:$0xff]  ;;  %v1287_v53 = vld [vmem:[#allocation12 + $0x7f0] sm:$0xff]  ;;  %v1284_v55 = vld [vmem:[#allocation12 + $0x7d8] sm:$0xff] }
  0xc3   : > { %1299 = vmatprep.subr.mxu0 %v1202_v58  ;;  %v1281_v56 = vld [vmem:[#allocation12 + $0x7c0] sm:$0xff]  ;;  %v1278_v58 = vld [vmem:[#allocation12 + $0x7a8] sm:$0xff] }
  0xc4   : > { %1300 = vmatpush1.msra.mxu0 %v1201_v59  ;;  %v1280_v59 = vld [vmem:[#allocation12 + $0x7b8] sm:$0xff] }
  0xc5   : > { %4534 = vmatmul.mubr.msk.f32.gmra.mxu0 %vm504_vm0, %v5811_v60  ;;  %4542 = vmatmul.mubr.msk.f32.gmra.mxu1 %vm504_vm0, %v5811_v60 }
  0xc6   : > { %674 = vmatprep.mubr.f32.mxu0 %v6315_v8  ;;  %997 = vmatprep.mubr.f32.mxu1 %v6315_v8 }
  0xc7   : > { %1301 = vmatprep.subr.mxu0 %v1198_v61  ;;  %v1279_v61 = vld [vmem:[#allocation12 + $0x7b0] sm:$0xff] }
  0xc8   : > { %1302 = vmatpush1.msra.mxu0 %v1197_v62  ;;  %v1274_v62 = vld [vmem:[#allocation12 + $0x788] sm:$0xff] }
  0xc9   : > { %4535 = vmatmul.mubr.msk.f32.gmra.mxu0 %vm504_vm0, %v5819_v63  ;;  %4543 = vmatmul.mubr.msk.f32.vlgmr.msra.gmra.mxu1 %vm504_vm0, %v5770_v40  ;;  %v1169_v40 = vld [vmem:[#allocation12 + $0x440] sm:$0xff] }
  0xca   : > { %1003 = vmatprep.mubr.f32.mxu1 %v6315_v8  ;;  %1403 = vmatpush1.msra.mxu1 %v1223_v0  ;;  %v1273_v0 = vld [vmem:[#allocation12 + $0x780] sm:$0xff] }
  0xcb   : > { %1404 = vmatprep.subr.mxu1 %v1220_v1  ;;  %1303 = vmatprep.subr.mxu0 %v1194_v2  ;;  %v1275_v1 = vld [vmem:[#allocation12 + $0x790] sm:$0xff]  ;;  %v1270_v2 = vld [vmem:[#allocation12 + $0x768] sm:$0xff] }
  0xcc   : > { %1405 = vmatpush1.msra.mxu1 %v1219_v3  ;;  %1304 = vmatpush1.msra.mxu0 %v1193_v4  ;;  %v1272_v3 = vld [vmem:[#allocation12 + $0x778] sm:$0xff]  ;;  %v1269_v4 = vld [vmem:[#allocation12 + $0x760] sm:$0xff] }
  0xcd   : > { %4544 = vmatmul.mubr.msk.f32.gmra.mxu1 %vm504_vm0, %v5779_v45  ;;  %1406 = vmatprep.subr.mxu1 %v1216_v5  ;;  %v1167_v45 = vld [vmem:[#allocation12 + $0x430] sm:$0xff] }
  0xce   : > { %1009 = vmatprep.mubr.f32.mxu1 %v6315_v8  ;;  %1407 = vmatpush1.msra.mxu1 %v1215_v6  ;;  %v1271_v5 = vld [vmem:[#allocation12 + $0x770] sm:$0xff]  ;;  %v1266_v6 = vld [vmem:[#allocation12 + $0x748] sm:$0xff] }
  0xcf   : > { %1408 = vmatprep.subr.mxu1 %v1212_v7  ;;  %1305 = vmatprep.subr.mxu0 %v1190_v9  ;;  %v1268_v7 = vld [vmem:[#allocation12 + $0x758] sm:$0xff]  ;;  %v1265_v9 = vld [vmem:[#allocation12 + $0x740] sm:$0xff] }
  0xd0   : > { %1409 = vmatpush1.msra.mxu1 %v1211_v10  ;;  %1306 = vmatpush1.msra.mxu0 %v1189_v11  ;;  %v1267_v10 = vld [vmem:[#allocation12 + $0x750] sm:$0xff]  ;;  %v1262_v11 = vld [vmem:[#allocation12 + $0x728] sm:$0xff] }
  0xd1   : > { %4545 = vmatmul.mubr.msk.f32.gmra.mxu1 %vm504_vm0, %v5787_v50  ;;  %1410 = vmatprep.subr.mxu1 %v1208_v12  ;;  %v1286_v50 = vld [vmem:[#allocation12 + $0x7e8] sm:$0xff]  ;;  %v1264_v12 = vld [vmem:[#allocation12 + $0x738] sm:$0xff] }
  0xd2   : > { %1015 = vmatprep.mubr.f32.mxu1 %v6315_v8  ;;  %1411 = vmatpush1.msra.mxu1 %v1207_v13  ;;  %v1261_v13 = vld [vmem:[#allocation12 + $0x720] sm:$0xff] }
  0xd3   : > { %1412 = vmatprep.subr.mxu1 %v1204_v14  ;;  %1307 = vmatprep.subr.mxu0 %v1186_v15  ;;  %v1263_v14 = vld [vmem:[#allocation12 + $0x730] sm:$0xff]  ;;  %v1258_v15 = vld [vmem:[#allocation12 + $0x708] sm:$0xff] }
  0xd4   : > { %1413 = vmatpush1.msra.mxu1 %v1203_v16  ;;  %1308 = vmatpush1.msra.mxu0 %v1185_v17  ;;  %v1260_v16 = vld [vmem:[#allocation12 + $0x718] sm:$0xff]  ;;  %v1257_v17 = vld [vmem:[#allocation12 + $0x700] sm:$0xff] }
  0xd5   : > { %4546 = vmatmul.mubr.msk.f32.gmra.mxu1 %vm504_vm0, %v5795_v54  ;;  %1414 = vmatprep.subr.mxu1 %v1200_v18  ;;  %v1282_v54 = vld [vmem:[#allocation12 + $0x7c8] sm:$0xff]  ;;  %v1259_v18 = vld [vmem:[#allocation12 + $0x710] sm:$0xff] }
  0xd6   : > { %1021 = vmatprep.mubr.f32.mxu1 %v6315_v8  ;;  %1415 = vmatpush1.msra.mxu1 %v1199_v19  ;;  %v1254_v19 = vld [vmem:[#allocation12 + $0x6e8] sm:$0xff] }
  0xd7   : > { %1416 = vmatprep.subr.mxu1 %v1196_v20  ;;  %1309 = vmatprep.subr.mxu0 %v1182_v21  ;;  %v1256_v20 = vld [vmem:[#allocation12 + $0x6f8] sm:$0xff]  ;;  %v1253_v21 = vld [vmem:[#allocation12 + $0x6e0] sm:$0xff] }
  0xd8   : > { %1417 = vmatpush1.msra.mxu1 %v1195_v22  ;;  %1310 = vmatpush1.msra.mxu0 %v1181_v23  ;;  %v1255_v22 = vld [vmem:[#allocation12 + $0x6f0] sm:$0xff]  ;;  %v1250_v23 = vld [vmem:[#allocation12 + $0x6c8] sm:$0xff] }
  0xd9   : > { %4547 = vmatmul.mubr.msk.f32.gmra.mxu1 %vm504_vm0, %v5803_v57  ;;  %1418 = vmatprep.subr.mxu1 %v1192_v24  ;;  %v1283_v57 = vld [vmem:[#allocation12 + $0x7d0] sm:$0xff]  ;;  %v1252_v24 = vld [vmem:[#allocation12 + $0x6d8] sm:$0xff] }
  0xda   : > { %1027 = vmatprep.mubr.f32.mxu1 %v6315_v8  ;;  %1419 = vmatpush1.msra.mxu1 %v1191_v25  ;;  %v1249_v25 = vld [vmem:[#allocation12 + $0x6c0] sm:$0xff] }
  0xdb   : > { %1420 = vmatprep.subr.mxu1 %v1188_v26  ;;  %1311 = vmatprep.subr.mxu0 %v1178_v27  ;;  %v1251_v26 = vld [vmem:[#allocation12 + $0x6d0] sm:$0xff]  ;;  %v1246_v27 = vld [vmem:[#allocation12 + $0x6a8] sm:$0xff] }
  0xdc   : > { %1421 = vmatpush1.msra.mxu1 %v1187_v28  ;;  %1312 = vmatpush1.msra.mxu0 %v1177_v29  ;;  %v1248_v28 = vld [vmem:[#allocation12 + $0x6b8] sm:$0xff]  ;;  %v1245_v29 = vld [vmem:[#allocation12 + $0x6a0] sm:$0xff] }
  0xdd   : > { %4548 = vmatmul.mubr.msk.f32.gmra.mxu1 %vm504_vm0, %v5811_v60  ;;  %1422 = vmatprep.subr.mxu1 %v1184_v30  ;;  %v1277_v60 = vld [vmem:[#allocation12 + $0x7a0] sm:$0xff]  ;;  %v1247_v30 = vld [vmem:[#allocation12 + $0x6b0] sm:$0xff] }
  0xde   : > { %1033 = vmatprep.mubr.f32.mxu1 %v6315_v8  ;;  %1423 = vmatpush1.msra.mxu1 %v1183_v31  ;;  %v1242_v31 = vld [vmem:[#allocation12 + $0x688] sm:$0xff] }
  0xdf   : > { %1424 = vmatprep.subr.mxu1 %v1180_v32  ;;  %1313 = vmatprep.subr.mxu0 %v1174_v33  ;;  %v1244_v32 = vld [vmem:[#allocation12 + $0x698] sm:$0xff]  ;;  %v1241_v33 = vld [vmem:[#allocation12 + $0x680] sm:$0xff] }
  0xe0   : > { %1425 = vmatpush1.msra.mxu1 %v1179_v34  ;;  %1314 = vmatpush1.msra.mxu0 %v1173_v35  ;;  %v1243_v34 = vld [vmem:[#allocation12 + $0x690] sm:$0xff]  ;;  %v1238_v35 = vld [vmem:[#allocation12 + $0x668] sm:$0xff] }
  0xe1   : > { %4549 = vmatmul.mubr.msk.f32.gmra.mxu1 %vm504_vm0, %v5819_v63  ;;  %1426 = vmatprep.subr.mxu1 %v1176_v36  ;;  %v1276_v63 = vld [vmem:[#allocation12 + $0x798] sm:$0xff] }
  0xe2   : > { %1427 = vmatpush1.msra.mxu1 %v1175_v37  ;;  %1315 = vmatprep.subr.mxu0 %v1170_v38  ;;  %v1240_v36 = vld [vmem:[#allocation12 + $0x678] sm:$0xff]  ;;  %v1237_v37 = vld [vmem:[#allocation12 + $0x660] sm:$0xff]  ;;  %v1239_v38 = vld [vmem:[#allocation12 + $0x670] sm:$0xff] }
  0xe3   : > { %1428 = vmatprep.subr.mxu1 %v1172_v39  ;;  %1316 = vmatpush1.msra.mxu0 %v1169_v40  ;;  %v1234_v39 = vld [vmem:[#allocation12 + $0x648] sm:$0xff]  ;;  %v1236_v40 = vld [vmem:[#allocation12 + $0x658] sm:$0xff] }
  0xe4   : > { %1429 = vmatpush1.msra.mxu1 %v1171_v41  ;;  %1317 = vmatprep.subr.mxu0 %v1166_v42  ;;  %v1233_v41 = vld [vmem:[#allocation12 + $0x640] sm:$0xff]  ;;  %v1235_v42 = vld [vmem:[#allocation12 + $0x650] sm:$0xff] }
  0xe5   : > { %1430 = vmatprep.subr.mxu1 %v1168_v43  ;;  %1318 = vmatpush1.msra.mxu0 %v1165_v44  ;;  %v1230_v43 = vld [vmem:[#allocation12 + $0x628] sm:$0xff]  ;;  %v1232_v44 = vld [vmem:[#allocation12 + $0x638] sm:$0xff] }
  0xe6   : > { %1431 = vmatpush1.msra.mxu1 %v1167_v45  ;;  %1319 = vmatprep.subr.mxu0 %v1162_v46  ;;  %v1229_v45 = vld [vmem:[#allocation12 + $0x620] sm:$0xff]  ;;  %v1231_v46 = vld [vmem:[#allocation12 + $0x630] sm:$0xff] }
  0xe7   : > { %1432 = vmatprep.subr.mxu1 %v1164_v47  ;;  %1320 = vmatpush1.msra.mxu0 %v1161_v48  ;;  %v1226_v47 = vld [vmem:[#allocation12 + $0x608] sm:$0xff]  ;;  %v1228_v48 = vld [vmem:[#allocation12 + $0x618] sm:$0xff] }
  0xe8   : > { %1433 = vmatpush1.msra.mxu1 %v1163_v49  ;;  %1321 = vmatprep.subr.mxu0 %v1286_v50  ;;  %v1225_v49 = vld [vmem:[#allocation12 + $0x600] sm:$0xff]  ;;  %v1227_v50 = vld [vmem:[#allocation12 + $0x610] sm:$0xff] }
  0xe9   : > { %1434 = vmatprep.subr.mxu1 %v1288_v51  ;;  %1322 = vmatpush2.msra.mxu0 %v1285_v52  ;;  %v1650_v51 = vld [vmem:[#allocation12 + $0x1e8] sm:$0xff]  ;;  %v1652_v52 = vld [vmem:[#allocation12 + $0x1f8] sm:$0xff] }
  0xea   : > { %1435 = vmatpush2.msra.mxu1 %v1287_v53  ;;  %1323 = vmatprep.subr.mxu0 %v1282_v54 }
  0xeb   : > { %1436 = vmatprep.subr.mxu1 %v1284_v55  ;;  %1324 = vmatpush2.msra.mxu0 %v1281_v56 }
  0xec   : > { %1437 = vmatpush2.msra.mxu1 %v1283_v57  ;;  %1325 = vmatprep.subr.mxu0 %v1278_v58 }
  0xed   : > { %1438 = vmatprep.subr.mxu1 %v1280_v59  ;;  %1326 = vmatpush2.msra.mxu0 %v1277_v60 }
  0xee   : > { %1439 = vmatpush2.msra.mxu1 %v1279_v61  ;;  %1327 = vmatprep.subr.mxu0 %v1274_v62 }
  0xef   : > { %1440 = vmatprep.subr.mxu1 %v1276_v63  ;;  %1328 = vmatpush2.msra.mxu0 %v1273_v0 }
  0xf0   : > { %1441 = vmatpush2.msra.mxu1 %v1275_v1  ;;  %1329 = vmatprep.subr.mxu0 %v1270_v2  ;;  %v1086_v2 = vlaneseq }
  0xf1   : > { %1442 = vmatprep.subr.mxu1 %v1272_v3  ;;  %1330 = vmatpush2.msra.mxu0 %v1269_v4 }
  0xf2   : > { %1443 = vmatpush2.msra.mxu1 %v1271_v5  ;;  %1331 = vmatprep.subr.mxu0 %v1266_v6  ;;  %v5857_v6 = vshrl.u32 %v1086_v2, 7  ;;  %v1638_v2 = vld [vmem:[#allocation12 + $0x188] sm:$0xff] }
  0xf3   : > { %1444 = vmatprep.subr.mxu1 %v1268_v7  ;;  %1332 = vmatpush2.msra.mxu0 %v1265_v9 }
  0xf4   : > { %1445 = vmatpush2.msra.mxu1 %v1267_v10  ;;  %1333 = vmatprep.subr.mxu0 %v1262_v11  ;;  %v6318_v11 = vsub.s32 0, %v5857_v6 }
  0xf5   : > { %1446 = vmatprep.subr.mxu1 %v1264_v12  ;;  %1334 = vmatpush2.msra.mxu0 %v1261_v13  ;;  %v1084_v12 = vld [vmem:[#allocation10] sm:$0x3]  ;;  %v6317_v13 = vsub.s32 1, %v5857_v6 }
  0xf6   : > { %1447 = vmatpush2.msra.mxu1 %v1263_v14  ;;  %1335 = vmatprep.subr.mxu0 %v1258_v15 }
  0xf7   : > { %1448 = vmatprep.subr.mxu1 %v1260_v16  ;;  %1336 = vmatpush2.msra.mxu0 %v1257_v17  ;;  %v5869_v16 = vrot.slane %v1084_v12, %v6318_v11 }
  0xf8   : > { %1449 = vmatpush2.msra.mxu1 %v1259_v18  ;;  %1337 = vmatprep.subr.mxu0 %v1254_v19  ;;  %v5873_v19 = vrot.slane %v1084_v12, %v6317_v13 }
  0xf9   : > { %1450 = vmatprep.subr.mxu1 %v1256_v20  ;;  %1338 = vmatpush2.msra.mxu0 %v1253_v21 }
  0xfa   : > { %1451 = vmatpush2.msra.mxu1 %v1255_v22  ;;  %1339 = vmatprep.subr.mxu0 %v1250_v23 }
  0xfb   : > { %1452 = vmatprep.subr.mxu1 %v1252_v24  ;;  %1340 = vmatpush2.msra.mxu0 %v1249_v25 }
  0xfc   : > { %1453 = vmatpush2.msra.mxu1 %v1251_v26  ;;  %1341 = vmatprep.subr.mxu0 %v1246_v27 }
  0xfd   : > { %1454 = vmatprep.subr.mxu1 %v1248_v28  ;;  %1342 = vmatpush2.msra.mxu0 %v1245_v29 }
  0xfe   : > { %1455 = vmatpush2.msra.mxu1 %v1247_v30  ;;  %1343 = vmatprep.subr.mxu0 %v1242_v31 }
  0xff   : > { %1456 = vmatprep.subr.mxu1 %v1244_v32  ;;  %1344 = vmatpush2.msra.mxu0 %v1241_v33 }
 0x100   : > { %1457 = vmatpush2.msra.mxu1 %v1243_v34  ;;  %1345 = vmatprep.subr.mxu0 %v1238_v35  ;;  %v1649_v35 = vld [vmem:[#allocation12 + $0x1e0] sm:$0xff] }
 0x101   : > { %1458 = vmatprep.subr.mxu1 %v1240_v36  ;;  %1346 = vmatpush2.msra.mxu0 %v1237_v37  ;;  %v1651_v36 = vld [vmem:[#allocation12 + $0x1f0] sm:$0xff] }
 0x102   : > { %1459 = vmatpush2.msra.mxu1 %v1239_v38  ;;  %1347 = vmatprep.subr.mxu0 %v1234_v39  ;;  %v1646_v39 = vld [vmem:[#allocation12 + $0x1c8] sm:$0xff] }
 0x103   : > { %1460 = vmatprep.subr.mxu1 %v1236_v40  ;;  %1348 = vmatpush2.msra.mxu0 %v1233_v41  ;;  %v1648_v40 = vld [vmem:[#allocation12 + $0x1d8] sm:$0xff] }
 0x104   : > { %1461 = vmatpush2.msra.mxu1 %v1235_v42  ;;  %1349 = vmatprep.subr.mxu0 %v1230_v43 }
 0x105   : > { %1462 = vmatprep.subr.mxu1 %v1232_v44  ;;  %1350 = vmatpush2.msra.mxu0 %v1229_v45  ;;  %v1645_v44 = vld [vmem:[#allocation12 + $0x1c0] sm:$0xff]  ;;  %v1647_v45 = vld [vmem:[#allocation12 + $0x1d0] sm:$0xff] }
 0x106   : > { %1463 = vmatpush2.msra.mxu1 %v1231_v46  ;;  %1351 = vmatprep.subr.mxu0 %v1226_v47 }
 0x107   : > { %1464 = vmatprep.subr.mxu1 %v1228_v48  ;;  %1352 = vmatpush2.msra.mxu0 %v1225_v49 }
 0x108   : > { %1465 = vmatpush2.msra.mxu1 %v1227_v50  ;;  %1717 = vmatprep.subr.mxu0 %v1650_v51  ;;  %v1642_v51 = vld [vmem:[#allocation12 + $0x1a8] sm:$0xff] }
 0x109   : > { %1824 = vmatprep.subr.mxu1 %v1652_v52  ;;  %v1644_v52 = vld [vmem:[#allocation12 + $0x1b8] sm:$0xff] }
 0x16d   : > { %v813_v53 = vpop.f32.mrf.mxu1  ;;  %v634_v55 = vpop.f32.mrf.mxu0 }
 0x16f   : > { %v815_v54 = vpop.f32.mrf.mxu1  ;;  %v636_v58 = vpop.f32.mrf.mxu0 }
 0x171   : > { %v819_v56 = vpop.f32.mrf.mxu1  ;;  %v640_v61 = vpop.f32.mrf.mxu0 }
 0x172   : > { %v854_v23 = vadd.f32 %v813_v53, %v640_v61 }
 0x173   : > { %v821_v57 = vpop.f32.mrf.mxu1  ;;  %v642_v0 = vpop.f32.mrf.mxu0 }
 0x174   : > { %v855_v26 = vadd.f32 %v815_v54, %v642_v0 }
 0x175   : > { %v5843_v59 = vpop.f32.mrf.mxu1  ;;  %v646_v4 = vpop.f32.mrf.mxu0 }
 0x176   : > { %v856_v41 = vadd.f32 %v819_v56, %v646_v4 }
 0x177   : > { %v5845_v60 = vpop.f32.mrf.mxu1  ;;  %v648_v9 = vpop.f32.mrf.mxu0 }
 0x178   : > { %v857_v37 = vadd.f32 %v821_v57, %v648_v9  ;;  %v1641_v57 = vld [vmem:[#allocation12 + $0x1a0] sm:$0xff] }
 0x179   : > { %v5847_v62 = vpop.f32.mrf.mxu1  ;;  %v652_v15 = vpop.f32.mrf.mxu0 }
 0x17a   : > { %v858_v4 = vadd.f32 %v5843_v59, %v652_v15  ;;  %v1634_v59 = vld [vmem:[#allocation12 + $0x168] sm:$0xff]  ;;  %v1636_v15 = vld [vmem:[#allocation12 + $0x178] sm:$0xff] }
 0x17b   : > { %v5849_v63 = vpop.f32.mrf.mxu1  ;;  %v654_v21 = vpop.f32.mrf.mxu0 }
 0x17c   : > { %v859_v53 = vadd.f32 %v5845_v60, %v654_v21  ;;  %v1640_v60 = vld [vmem:[#allocation12 + $0x198] sm:$0xff] }
 0x17d   : > { %v5851_v1 = vpop.f32.mrf.mxu1  ;;  %v5877_v30 = vpop.f32.mrf.mxu0 }
 0x17f   : > { %v5853_v3 = vpop.f32.mrf.mxu1  ;;  %v660_v46 = vpop.f32.mrf.mxu0 }
 0x180   : > { %v861_v21 = vadd.f32 %v5849_v63, %v660_v46  ;;  %v1635_v63 = vld [vmem:[#allocation12 + $0x170] sm:$0xff] }
 0x181   : > { %v5855_v5 = vpop.f32.mrf.mxu1  ;;  %v5897_v61 = vpop.f32.mrf.mxu0 }
 0x183   : > { %v5859_v7 = vpop.f32.mrf.mxu1 }
 0x185   : > { %v5861_v10 = vpop.f32.mrf.mxu1 }
 0x187   : > { %v5865_v14 = vpop.f32.mrf.mxu1 }
 0x189   : > { %v999_v17 = vpop.f32.mrf.mxu1 }
 0x18a   : > { %v1040_v18 = vadd.f32 %v999_v17, %v634_v55 }
 0x18b   : > { %v1001_v20 = vpop.f32.mrf.mxu1 }
 0x18c   : > { %v1041_v22 = vadd.f32 %v1001_v20, %v636_v58  ;;  %v1096_v24 = vadd.f32 %v5869_v16, %v1040_v18  ;;  %v1643_v58 = vld [vmem:[#allocation12 + $0x1b0] sm:$0xff]  ;;  %v1637_v18 = vld [vmem:[#allocation12 + $0x180] sm:$0xff] }
 0x18d   : > { %v1005_v25 = vpop.f32.mrf.mxu1  ;;  %v1639_v20 = vld [vmem:[#allocation12 + $0x190] sm:$0xff] }
 0x18e   : > { %v1097_v27 = vadd.f32 %v5873_v19, %v1041_v22  ;;  %v1042_v28 = vadd.f32 %v1005_v25, %v854_v23  ;;  %v5881_v33 = vmax.f32 %v1096_v24, 0.0  ;;  %v666_v25 = vpop.f32.mrf.mxu0 }
 0x18f   : > { %v1007_v29 = vpop.f32.mrf.mxu1 }
 0x190   : > { %v5879_v31 = vmax.f32 %v1097_v27, 0.0  ;;  %v1043_v32 = vadd.f32 %v1007_v29, %v855_v26  ;;  %v1098_v42 = vadd.f32 %v5869_v16, %v1042_v28  ;;  %v1633_v28 = vld [vmem:[#allocation12 + $0x160] sm:$0xff] }
 0x191   : > { %v1011_v34 = vpop.f32.mrf.mxu1 }
 0x192   : > { %v1099_v38 = vadd.f32 %v5873_v19, %v1043_v32  ;;  %1353 = vmatprep.mubr.f32.mxu0 %v5879_v31  ;;  %1466 = vmatprep.mubr.f32.mxu1 %v5879_v31  ;;  %v1044_v49 = vadd.f32 %v1011_v34, %v856_v41  ;;  %v5893_v55 = vmax.f32 %v1098_v42, 0.0  ;;  %v1630_v32 = vld [vmem:[#allocation12 + $0x148] sm:$0xff]  ;;  %v1632_v34 = vld [vmem:[#allocation12 + $0x158] sm:$0xff]  ;;  %v670_v41 = vpop.f32.mrf.mxu0  ;;  %v863_v42 = vadd.f32 %v5853_v3, %v666_v25  ;;  %v1615_v25 = vld [vmem:[#allocation12 + $0xd0] sm:$0xff] }
 0x193   : > { %v1013_v43 = vpop.f32.mrf.mxu1  ;;  %1354 = vmatmul.mubr.f32.vlgmr.msra.gmra.mxu0 %v5881_v33  ;;  %1467 = vmatmul.mubr.f32.vlgmr.msra.gmra.mxu1 %v5881_v33 }
 0x194   : > { %v5889_v47 = vmax.f32 %v1099_v38, 0.0  ;;  %v1045_v48 = vadd.f32 %v1013_v43, %v857_v37  ;;  %1718 = vmatpush1.msra.mxu0 %v1649_v35  ;;  %1825 = vmatpush1.msra.mxu1 %v1651_v36  ;;  %v1100_v9 = vadd.f32 %v5869_v16, %v1044_v49  ;;  %v860_v35 = vadd.f32 %v5847_v62, %v5877_v30  ;;  %v1629_v38 = vld [vmem:[#allocation12 + $0x140] sm:$0xff]  ;;  %v1626_v62 = vld [vmem:[#allocation12 + $0x128] sm:$0xff]  ;;  %v1628_v30 = vld [vmem:[#allocation12 + $0x138] sm:$0xff]  ;;  %v672_v3 = vpop.f32.mrf.mxu0 }
 0x195   : > { %1719 = vmatprep.subr.mxu0 %v1646_v39  ;;  %1826 = vmatprep.subr.mxu1 %v1648_v40  ;;  %v1017_v50 = vpop.f32.mrf.mxu1  ;;  %v1631_v39 = vld [vmem:[#allocation12 + $0x150] sm:$0xff]  ;;  %v1625_v49 = vld [vmem:[#allocation12 + $0x120] sm:$0xff] }
 0x196   : > { %v1101_v54 = vadd.f32 %v5873_v19, %v1045_v48  ;;  %1720 = vmatpush1.msra.mxu0 %v1645_v44  ;;  %1827 = vmatpush1.msra.mxu1 %v1647_v45  ;;  %v1046_v22 = vadd.f32 %v1017_v50, %v858_v4  ;;  %v5907_v26 = vmax.f32 %v1100_v9, 0.0  ;;  %v1627_v50 = vld [vmem:[#allocation12 + $0x130] sm:$0xff]  ;;  %v676_v9 = vpop.f32.mrf.mxu0 }
 0x197   : > { %1359 = vmatprep.mubr.f32.mxu0 %v5889_v47  ;;  %1472 = vmatprep.mubr.f32.mxu1 %v5889_v47  ;;  %v1019_v56 = vpop.f32.mrf.mxu1 }
 0x198   : > { %1721 = vmatprep.subr.mxu0 %v1642_v51  ;;  %1828 = vmatprep.subr.mxu1 %v1644_v52  ;;  %v1047_v0 = vadd.f32 %v1019_v56, %v859_v53  ;;  %v5901_v12 = vmax.f32 %v1101_v54, 0.0  ;;  %v1102_v36 = vadd.f32 %v5869_v16, %v1046_v22  ;;  %v1622_v51 = vld [vmem:[#allocation12 + $0x108] sm:$0xff]  ;;  %v1624_v52 = vld [vmem:[#allocation12 + $0x118] sm:$0xff]  ;;  %v862_v53 = vadd.f32 %v5851_v1, %v5897_v61 }
 0x199   : > { %1360 = vmatmul.mubr.f32.gmra.mxu0 %v5893_v55  ;;  %1473 = vmatmul.mubr.f32.gmra.mxu1 %v5893_v55  ;;  %v1023_v17 = vpop.f32.mrf.mxu1  ;;  %v1618_v1 = vld [vmem:[#allocation12 + $0xe8] sm:$0xff]  ;;  %v1620_v61 = vld [vmem:[#allocation12 + $0xf8] sm:$0xff] }
 0x19a   : > { %1722 = vmatpush1.msra.mxu0 %v1641_v57  ;;  %1829 = vmatpush1.msra.mxu1 %v1643_v58  ;;  %v1103_v23 = vadd.f32 %v5873_v19, %v1047_v0  ;;  %v1048_v43 = vadd.f32 %v1023_v17, %v860_v35  ;;  %v5920_v46 = vmax.f32 %v1102_v36, 0.0  ;;  %v1621_v57 = vld [vmem:[#allocation12 + $0x100] sm:$0xff]  ;;  %v1623_v58 = vld [vmem:[#allocation12 + $0x110] sm:$0xff]  ;;  %v1616_v22 = vld [vmem:[#allocation12 + $0xd8] sm:$0xff] }
 0x19b   : > { %1723 = vmatprep.subr.mxu0 %v1638_v2  ;;  %1830 = vmatprep.subr.mxu1 %v1640_v60  ;;  %v1025_v24 = vpop.f32.mrf.mxu1  ;;  %v865_v2 = vadd.f32 %v5859_v7, %v672_v3  ;;  %v1614_v7 = vld [vmem:[#allocation12 + $0xc8] sm:$0xff]  ;;  %v1609_v35 = vld [vmem:[#allocation12 + $0xa0] sm:$0xff]  ;;  %v1611_v36 = vld [vmem:[#allocation12 + $0xb0] sm:$0xff] }
 0x19c   : > { %1724 = vmatpush1.msra.mxu0 %v1637_v18  ;;  %1831 = vmatpush1.msra.mxu1 %v1639_v20  ;;  %v1049_v27 = vadd.f32 %v1025_v24, %v861_v21  ;;  %v5914_v37 = vmax.f32 %v1103_v23, 0.0  ;;  %v1104_v54 = vadd.f32 %v5869_v16, %v1048_v43  ;;  %v1617_v20 = vld [vmem:[#allocation12 + $0xe0] sm:$0xff]  ;;  %v1619_v21 = vld [vmem:[#allocation12 + $0xf0] sm:$0xff]  ;;  %v864_v23 = vadd.f32 %v5855_v5, %v670_v41  ;;  %v1612_v5 = vld [vmem:[#allocation12 + $0xb8] sm:$0xff] }
 0x19d   : > { %1365 = vmatprep.mubr.f32.mxu0 %v5901_v12  ;;  %1478 = vmatprep.mubr.f32.mxu1 %v5901_v12  ;;  %v1029_v29 = vpop.f32.mrf.mxu1  ;;  %v1613_v24 = vld [vmem:[#allocation12 + $0xc0] sm:$0xff]  ;;  %v866_v43 = vadd.f32 %v5861_v10, %v676_v9  ;;  %v1600_v3 = vld [vmem:[#allocation12 + $0x58] sm:$0xff] }
 0x19e   : > { %1725 = vmatprep.subr.mxu0 %v1634_v59  ;;  %1832 = vmatprep.subr.mxu1 %v1636_v15  ;;  %v1105_v44 = vadd.f32 %v5873_v19, %v1049_v27  ;;  %v1050_v60 = vadd.f32 %v1029_v29, %v862_v53  ;;  %v5933_v17 = vmax.f32 %v1104_v54, 0.0  ;;  %v678_v27 = vpop.f32.mrf.mxu0  ;;  %v1610_v29 = vld [vmem:[#allocation12 + $0xa8] sm:$0xff]  ;;  %v1596_v54 = vld [vmem:[#allocation12 + $0x38] sm:$0xff]  ;;  %v1713_v9 = vld [vmem:[#allocation12 + $0x3e0] sm:$0xff] }
 0x19f   : > { %1366 = vmatmul.mubr.f32.gmra.mxu0 %v5907_v26  ;;  %1479 = vmatmul.mubr.f32.gmra.mxu1 %v5907_v26  ;;  %v1031_v40 = vpop.f32.mrf.mxu1  ;;  %v1110_v10 = vadd.f32 %v5869_v16, %v866_v43  ;;  %v1594_v53 = vld [vmem:[#allocation12 + $0x28] sm:$0xff]  ;;  %v1689_v43 = vld [vmem:[#allocation12 + $0x320] sm:$0xff] }
 0x1a0   : > { %1726 = vmatpush1.msra.mxu0 %v1633_v28  ;;  %1833 = vmatpush1.msra.mxu1 %v1635_v63  ;;  %v1051_v48 = vadd.f32 %v1031_v40, %v863_v42  ;;  %v5927_v56 = vmax.f32 %v1105_v44, 0.0  ;;  %v1106_v59 = vadd.f32 %v5869_v16, %v1050_v60  ;;  %v1607_v42 = vld [vmem:[#allocation12 + $0x90] sm:$0xff]  ;;  %v1589_v60 = vld [vmem:[#allocation12] sm:$0xff] }
 0x1a1   : > { %1727 = vmatprep.subr.mxu0 %v1630_v32  ;;  %1834 = vmatprep.subr.mxu1 %v1632_v34  ;;  %v1035_v45 = vpop.f32.mrf.mxu1  ;;  %v867_v32 = vadd.f32 %v5865_v14, %v678_v27  ;;  %v1605_v14 = vld [vmem:[#allocation12 + $0x80] sm:$0xff]  ;;  %v1704_v27 = vld [vmem:[#allocation12 + $0x398] sm:$0xff] }
 0x1a2   : > { %1728 = vmatpush1.msra.mxu0 %v1629_v38  ;;  %1835 = vmatpush1.msra.mxu1 %v1631_v39  ;;  %v1107_v4 = vadd.f32 %v5873_v19, %v1051_v48  ;;  %v1052_v28 = vadd.f32 %v1035_v45, %v864_v23  ;;  %v5945_v34 = vmax.f32 %v1106_v59, 0.0  ;;  %v1606_v38 = vld [vmem:[#allocation12 + $0x88] sm:$0xff]  ;;  %v1608_v39 = vld [vmem:[#allocation12 + $0x98] sm:$0xff]  ;;  %v1601_v48 = vld [vmem:[#allocation12 + $0x60] sm:$0xff] }
 0x1a3   : > { %1371 = vmatprep.mubr.f32.mxu0 %v5914_v37  ;;  %1484 = vmatprep.mubr.f32.mxu1 %v5914_v37  ;;  %v1037_v0 = vpop.f32.mrf.mxu1  ;;  %v1111_v44 = vadd.f32 %v5873_v19, %v867_v32  ;;  %v1706_v23 = vld [vmem:[#allocation12 + $0x3a8] sm:$0xff]  ;;  %v1708_v59 = vld [vmem:[#allocation12 + $0x3b8] sm:$0xff]  ;;  %v1697_v32 = vld [vmem:[#allocation12 + $0x360] sm:$0xff] }
 0x1a4   : > { %1729 = vmatprep.subr.mxu0 %v1626_v62  ;;  %1836 = vmatprep.subr.mxu1 %v1628_v30  ;;  %v1053_v18 = vadd.f32 %v1037_v0, %v865_v2  ;;  %v5939_v15 = vmax.f32 %v1107_v4, 0.0  ;;  %v1108_v40 = vadd.f32 %v5869_v16, %v1052_v28  ;;  %v1602_v62 = vld [vmem:[#allocation12 + $0x68] sm:$0xff]  ;;  %v1604_v30 = vld [vmem:[#allocation12 + $0x78] sm:$0xff]  ;;  %v5967_v16 = vmax.f32 %v1110_v10, 0.0  ;;  %v1591_v4 = vld [vmem:[#allocation12 + $0x10] sm:$0xff] }
 0x1a5   : > { %1372 = vmatmul.mubr.f32.gmra.mxu0 %v5920_v46  ;;  %1485 = vmatmul.mubr.f32.gmra.mxu1 %v5920_v46  ;;  %v1590_v0 = vld [vmem:[#allocation12 + $0x8] sm:$0xff]  ;;  %v1592_v2 = vld [vmem:[#allocation12 + $0x18] sm:$0xff]  ;;  %v1701_v28 = vld [vmem:[#allocation12 + $0x380] sm:$0xff] }
 0x1a6   : > { %1730 = vmatpush1.msra.mxu0 %v1625_v49  ;;  %1837 = vmatpush1.msra.mxu1 %v1627_v50  ;;  %v1109_v63 = vadd.f32 %v5873_v19, %v1053_v18  ;;  %v5956_v45 = vmax.f32 %v1108_v40, 0.0  ;;  %v1603_v49 = vld [vmem:[#allocation12 + $0x70] sm:$0xff]  ;;  %v5961_v50 = vmax.f32 %v1111_v44, 0.0  ;;  %v1598_v19 = vld [vmem:[#allocation12 + $0x48] sm:$0xff] }
 0x1a7   : > { %1731 = vmatprep.subr.mxu0 %v1622_v51  ;;  %1838 = vmatprep.subr.mxu1 %v1624_v52  ;;  %v1597_v51 = vld [vmem:[#allocation12 + $0x40] sm:$0xff]  ;;  %v1599_v52 = vld [vmem:[#allocation12 + $0x50] sm:$0xff]  ;;  %v1682_v10 = vld [vmem:[#allocation12 + $0x2e8] sm:$0xff] }
 0x1a8   : > { %1732 = vmatpush1.msra.mxu0 %v1621_v57  ;;  %1839 = vmatpush1.msra.mxu1 %v1623_v58  ;;  %v5950_v41 = vmax.f32 %v1109_v63, 0.0  ;;  %v1593_v57 = vld [vmem:[#allocation12 + $0x20] sm:$0xff]  ;;  %v1595_v58 = vld [vmem:[#allocation12 + $0x30] sm:$0xff] }
 0x1a9   : > { %1377 = vmatprep.mubr.f32.mxu0 %v5927_v56  ;;  %1490 = vmatprep.mubr.f32.mxu1 %v5927_v56  ;;  %v1715_v18 = vld [vmem:[#allocation12 + $0x3f0] sm:$0xff] }
 0x1aa   : > { %1733 = vmatprep.subr.mxu0 %v1618_v1  ;;  %1840 = vmatprep.subr.mxu1 %v1620_v61  ;;  %v1714_v1 = vld [vmem:[#allocation12 + $0x3e8] sm:$0xff]  ;;  %v1716_v61 = vld [vmem:[#allocation12 + $0x3f8] sm:$0xff]  ;;  %v1703_v63 = vld [vmem:[#allocation12 + $0x390] sm:$0xff] }
 0x1ab   : > { %1378 = vmatmul.mubr.f32.gmra.mxu0 %v5933_v17  ;;  %1491 = vmatmul.mubr.f32.gmra.mxu1 %v5933_v17  ;;  %v1695_v40 = vld [vmem:[#allocation12 + $0x350] sm:$0xff] }
 0x1ac   : > { %1734 = vmatpush1.msra.mxu0 %v1617_v20  ;;  %1841 = vmatpush1.msra.mxu1 %v1619_v21  ;;  %v1710_v20 = vld [vmem:[#allocation12 + $0x3c8] sm:$0xff]  ;;  %v1712_v21 = vld [vmem:[#allocation12 + $0x3d8] sm:$0xff]  ;;  %v1691_v44 = vld [vmem:[#allocation12 + $0x330] sm:$0xff] }
 0x1ad   : > { %1735 = vmatprep.subr.mxu0 %v1614_v7  ;;  %1842 = vmatprep.subr.mxu1 %v1616_v22  ;;  %v1709_v7 = vld [vmem:[#allocation12 + $0x3c0] sm:$0xff]  ;;  %v1711_v22 = vld [vmem:[#allocation12 + $0x3d0] sm:$0xff] }
 0x1ae   : > { %1736 = vmatpush1.msra.mxu0 %v1613_v24  ;;  %1843 = vmatpush1.msra.mxu1 %v1615_v25  ;;  %v1705_v24 = vld [vmem:[#allocation12 + $0x3a0] sm:$0xff]  ;;  %v1707_v25 = vld [vmem:[#allocation12 + $0x3b0] sm:$0xff] }
 0x1af   : > { %1383 = vmatprep.mubr.f32.mxu0 %v5939_v15  ;;  %1496 = vmatprep.mubr.f32.mxu1 %v5939_v15 }
 0x1b0   : > { %1737 = vmatprep.subr.mxu0 %v1610_v29  ;;  %1844 = vmatprep.subr.mxu1 %v1612_v5  ;;  %v1698_v29 = vld [vmem:[#allocation12 + $0x368] sm:$0xff]  ;;  %v1700_v5 = vld [vmem:[#allocation12 + $0x378] sm:$0xff] }
 0x1b1   : > { %1384 = vmatmul.mubr.f32.gmra.mxu0 %v5945_v34  ;;  %1497 = vmatmul.mubr.f32.gmra.mxu1 %v5945_v34 }
 0x1b2   : > { %1738 = vmatpush1.msra.mxu0 %v1609_v35  ;;  %1845 = vmatpush1.msra.mxu1 %v1611_v36  ;;  %v1699_v35 = vld [vmem:[#allocation12 + $0x370] sm:$0xff]  ;;  %v1694_v36 = vld [vmem:[#allocation12 + $0x348] sm:$0xff] }
 0x1b3   : > { %1739 = vmatprep.subr.mxu0 %v1606_v38  ;;  %1846 = vmatprep.subr.mxu1 %v1608_v39  ;;  %v1696_v38 = vld [vmem:[#allocation12 + $0x358] sm:$0xff]  ;;  %v1693_v39 = vld [vmem:[#allocation12 + $0x340] sm:$0xff] }
 0x1b4   : > { %1740 = vmatpush1.msra.mxu0 %v1605_v14  ;;  %1847 = vmatpush1.msra.mxu1 %v1607_v42  ;;  %v1690_v14 = vld [vmem:[#allocation12 + $0x328] sm:$0xff]  ;;  %v1692_v42 = vld [vmem:[#allocation12 + $0x338] sm:$0xff] }
 0x1b5   : > { %1389 = vmatprep.mubr.f32.mxu0 %v5950_v41  ;;  %1502 = vmatprep.mubr.f32.mxu1 %v5950_v41 }
 0x1b6   : > { %1741 = vmatprep.subr.mxu0 %v1602_v62  ;;  %1848 = vmatprep.subr.mxu1 %v1604_v30  ;;  %v1686_v62 = vld [vmem:[#allocation12 + $0x308] sm:$0xff]  ;;  %v1688_v30 = vld [vmem:[#allocation12 + $0x318] sm:$0xff] }
 0x1b7   : > { %1390 = vmatmul.mubr.f32.gmra.mxu0 %v5956_v45  ;;  %1503 = vmatmul.mubr.f32.gmra.mxu1 %v5956_v45 }
 0x1b8   : > { %1742 = vmatpush1.msra.mxu0 %v1601_v48  ;;  %1849 = vmatpush1.msra.mxu1 %v1603_v49  ;;  %v1685_v48 = vld [vmem:[#allocation12 + $0x300] sm:$0xff]  ;;  %v1687_v49 = vld [vmem:[#allocation12 + $0x310] sm:$0xff] }
 0x1b9   : > { %1395 = vmatprep.mubr.f32.mxu0 %v5961_v50  ;;  %1508 = vmatprep.mubr.f32.mxu1 %v5961_v50 }
 0x1ba   : > { %1743 = vmatprep.subr.mxu0 %v1598_v19  ;;  %1850 = vmatprep.subr.mxu1 %v1600_v3  ;;  %v1684_v19 = vld [vmem:[#allocation12 + $0x2f8] sm:$0xff]  ;;  %v1681_v3 = vld [vmem:[#allocation12 + $0x2e0] sm:$0xff] }
 0x1bb   : > { %1744 = vmatpush1.msra.mxu0 %v1597_v51  ;;  %1851 = vmatpush1.msra.mxu1 %v1599_v52  ;;  %v1683_v51 = vld [vmem:[#allocation12 + $0x2f0] sm:$0xff]  ;;  %v1678_v52 = vld [vmem:[#allocation12 + $0x2c8] sm:$0xff] }
 0x1bc   : > { %1745 = vmatprep.subr.mxu0 %v1594_v53  ;;  %1852 = vmatprep.subr.mxu1 %v1596_v54  ;;  %v1680_v53 = vld [vmem:[#allocation12 + $0x2d8] sm:$0xff]  ;;  %v1677_v54 = vld [vmem:[#allocation12 + $0x2c0] sm:$0xff] }
 0x1bd   : > { %1396 = vmatmul.mubr.f32.gmra.mxu0 %v5967_v16  ;;  %1509 = vmatmul.mubr.f32.gmra.mxu1 %v5967_v16 }
 0x1be   : > { %1746 = vmatpush1.msra.mxu0 %v1593_v57  ;;  %1853 = vmatpush1.msra.mxu1 %v1595_v58  ;;  %v1679_v57 = vld [vmem:[#allocation12 + $0x2d0] sm:$0xff]  ;;  %v1674_v58 = vld [vmem:[#allocation12 + $0x2a8] sm:$0xff] }
 0x1bf   : > { %1747 = vmatprep.subr.mxu0 %v1590_v0  ;;  %1781 = vmatprep.mubr.f32.mxu0 %v5879_v31  ;;  %v1676_v0 = vld [vmem:[#allocation12 + $0x2b8] sm:$0xff] }
 0x1c0   : > { %1854 = vmatprep.subr.mxu1 %v1592_v2  ;;  %1888 = vmatprep.mubr.f32.mxu1 %v5879_v31  ;;  %v1702_v31 = vld [vmem:[#allocation12 + $0x388] sm:$0xff]  ;;  %v1673_v2 = vld [vmem:[#allocation12 + $0x2a0] sm:$0xff] }
 0x1c1   : > { %1748 = vmatpush1.msra.mxu0 %v1589_v60  ;;  %1855 = vmatpush1.msra.mxu1 %v1591_v4  ;;  %v1675_v60 = vld [vmem:[#allocation12 + $0x2b0] sm:$0xff]  ;;  %v1670_v4 = vld [vmem:[#allocation12 + $0x288] sm:$0xff] }
 0x1c2   : > { %1749 = vmatprep.subr.mxu0 %v1714_v1  ;;  %1856 = vmatprep.subr.mxu1 %v1716_v61  ;;  %v1672_v1 = vld [vmem:[#allocation12 + $0x298] sm:$0xff]  ;;  %v1669_v61 = vld [vmem:[#allocation12 + $0x280] sm:$0xff] }
 0x1c3   : > { %1750 = vmatpush2.msra.mxu0 %v1713_v9  ;;  %1857 = vmatpush2.msra.mxu1 %v1715_v18  ;;  %v1671_v9 = vld [vmem:[#allocation12 + $0x290] sm:$0xff]  ;;  %v1666_v18 = vld [vmem:[#allocation12 + $0x268] sm:$0xff] }
 0x1c4   : > { %1751 = vmatprep.subr.mxu0 %v1710_v20  ;;  %1858 = vmatprep.subr.mxu1 %v1712_v21  ;;  %v1668_v20 = vld [vmem:[#allocation12 + $0x278] sm:$0xff]  ;;  %v1665_v21 = vld [vmem:[#allocation12 + $0x260] sm:$0xff] }
 0x1c5   : > { %1752 = vmatpush2.msra.mxu0 %v1709_v7  ;;  %1859 = vmatpush2.msra.mxu1 %v1711_v22  ;;  %v1667_v7 = vld [vmem:[#allocation12 + $0x270] sm:$0xff]  ;;  %v1662_v22 = vld [vmem:[#allocation12 + $0x248] sm:$0xff] }
 0x1c6   : > { %1753 = vmatprep.subr.mxu0 %v1706_v23  ;;  %1860 = vmatprep.subr.mxu1 %v1708_v59  ;;  %v1664_v23 = vld [vmem:[#allocation12 + $0x258] sm:$0xff]  ;;  %v1661_v59 = vld [vmem:[#allocation12 + $0x240] sm:$0xff] }
 0x1c7   : > { %1754 = vmatpush2.msra.mxu0 %v1705_v24  ;;  %1861 = vmatpush2.msra.mxu1 %v1707_v25  ;;  %v1663_v24 = vld [vmem:[#allocation12 + $0x250] sm:$0xff]  ;;  %v1658_v25 = vld [vmem:[#allocation12 + $0x228] sm:$0xff] }
 0x1c8   : > { %1755 = vmatprep.subr.mxu0 %v1702_v31  ;;  %1862 = vmatprep.subr.mxu1 %v1704_v27  ;;  %v1660_v31 = vld [vmem:[#allocation12 + $0x238] sm:$0xff]  ;;  %v1657_v27 = vld [vmem:[#allocation12 + $0x220] sm:$0xff] }
 0x1c9   : > { %1756 = vmatpush2.msra.mxu0 %v1701_v28  ;;  %1863 = vmatpush2.msra.mxu1 %v1703_v63  ;;  %v1659_v28 = vld [vmem:[#allocation12 + $0x230] sm:$0xff]  ;;  %v1654_v63 = vld [vmem:[#allocation12 + $0x208] sm:$0xff] }
 0x1ca   : > { %1757 = vmatprep.subr.mxu0 %v1698_v29  ;;  %1864 = vmatprep.subr.mxu1 %v1700_v5  ;;  %v1656_v29 = vld [vmem:[#allocation12 + $0x218] sm:$0xff]  ;;  %v1653_v5 = vld [vmem:[#allocation12 + $0x200] sm:$0xff] }
 0x1cb   : > { %1758 = vmatpush2.msra.mxu0 %v1697_v32  ;;  %1865 = vmatpush2.msra.mxu1 %v1699_v35  ;;  %v1655_v32 = vld [vmem:[#allocation12 + $0x210] sm:$0xff]  ;;  %v2091_v35 = vld [vmem:[#allocation12 + $0x9e8] sm:$0xff] }
 0x1cc   : > { %1759 = vmatprep.subr.mxu0 %v1694_v36  ;;  %1866 = vmatprep.subr.mxu1 %v1696_v38  ;;  %v2093_v36 = vld [vmem:[#allocation12 + $0x9f8] sm:$0xff]  ;;  %v2090_v38 = vld [vmem:[#allocation12 + $0x9e0] sm:$0xff] }
 0x1cd   : > { %1760 = vmatpush2.msra.mxu0 %v1693_v39  ;;  %1867 = vmatpush2.msra.mxu1 %v1695_v40  ;;  %v2092_v39 = vld [vmem:[#allocation12 + $0x9f0] sm:$0xff]  ;;  %v2087_v40 = vld [vmem:[#allocation12 + $0x9c8] sm:$0xff] }
 0x1ce   : > { %1761 = vmatprep.subr.mxu0 %v1690_v14  ;;  %1868 = vmatprep.subr.mxu1 %v1692_v42  ;;  %v2089_v14 = vld [vmem:[#allocation12 + $0x9d8] sm:$0xff]  ;;  %v2086_v42 = vld [vmem:[#allocation12 + $0x9c0] sm:$0xff] }
 0x1cf   : > { %1762 = vmatpush2.msra.mxu0 %v1689_v43  ;;  %1869 = vmatpush2.msra.mxu1 %v1691_v44  ;;  %v2088_v43 = vld [vmem:[#allocation12 + $0x9d0] sm:$0xff]  ;;  %v2083_v44 = vld [vmem:[#allocation12 + $0x9a8] sm:$0xff] }
 0x1d0   : > { %1763 = vmatprep.subr.mxu0 %v1686_v62  ;;  %1870 = vmatprep.subr.mxu1 %v1688_v30  ;;  %v2085_v62 = vld [vmem:[#allocation12 + $0x9b8] sm:$0xff]  ;;  %v2084_v30 = vld [vmem:[#allocation12 + $0x9b0] sm:$0xff] }
 0x1d1   : > { %1764 = vmatpush2.msra.mxu0 %v1685_v48  ;;  %1871 = vmatpush2.msra.mxu1 %v1687_v49  ;;  %v2079_v48 = vld [vmem:[#allocation12 + $0x988] sm:$0xff]  ;;  %v2081_v49 = vld [vmem:[#allocation12 + $0x998] sm:$0xff] }
 0x1d2   : > { %1765 = vmatprep.subr.mxu0 %v1682_v10  ;;  %1872 = vmatprep.subr.mxu1 %v1684_v19  ;;  %v2078_v10 = vld [vmem:[#allocation12 + $0x980] sm:$0xff]  ;;  %v2080_v19 = vld [vmem:[#allocation12 + $0x990] sm:$0xff] }
 0x1d3   : > { %1766 = vmatpush2.msra.mxu0 %v1681_v3  ;;  %1873 = vmatpush2.msra.mxu1 %v1683_v51  ;;  %v2075_v3 = vld [vmem:[#allocation12 + $0x968] sm:$0xff]  ;;  %v2077_v51 = vld [vmem:[#allocation12 + $0x978] sm:$0xff] }
 0x1d4   : > { %1767 = vmatprep.subr.mxu0 %v1678_v52  ;;  %1874 = vmatprep.subr.mxu1 %v1680_v53  ;;  %v2074_v52 = vld [vmem:[#allocation12 + $0x960] sm:$0xff]  ;;  %v2076_v53 = vld [vmem:[#allocation12 + $0x970] sm:$0xff] }
 0x1d5   : > { %1768 = vmatpush2.msra.mxu0 %v1677_v54  ;;  %1875 = vmatpush2.msra.mxu1 %v1679_v57  ;;  %v2071_v54 = vld [vmem:[#allocation12 + $0x948] sm:$0xff]  ;;  %v2073_v57 = vld [vmem:[#allocation12 + $0x958] sm:$0xff] }
 0x1d6   : > { %1769 = vmatprep.subr.mxu0 %v1674_v58  ;;  %1876 = vmatprep.subr.mxu1 %v1676_v0  ;;  %v2070_v58 = vld [vmem:[#allocation12 + $0x940] sm:$0xff]  ;;  %v2072_v0 = vld [vmem:[#allocation12 + $0x950] sm:$0xff] }
 0x1d7   : > { %1770 = vmatpush2.msra.mxu0 %v1673_v2  ;;  %1877 = vmatpush2.msra.mxu1 %v1675_v60  ;;  %v2067_v2 = vld [vmem:[#allocation12 + $0x928] sm:$0xff]  ;;  %v2069_v60 = vld [vmem:[#allocation12 + $0x938] sm:$0xff] }
 0x1d8   : > { %1771 = vmatprep.subr.mxu0 %v1670_v4  ;;  %1878 = vmatprep.subr.mxu1 %v1672_v1  ;;  %v2066_v4 = vld [vmem:[#allocation12 + $0x920] sm:$0xff]  ;;  %v2068_v1 = vld [vmem:[#allocation12 + $0x930] sm:$0xff] }
 0x1d9   : > { %1772 = vmatpush2.msra.mxu0 %v1669_v61  ;;  %1879 = vmatpush2.msra.mxu1 %v1671_v9  ;;  %v2063_v61 = vld [vmem:[#allocation12 + $0x908] sm:$0xff]  ;;  %v2065_v9 = vld [vmem:[#allocation12 + $0x918] sm:$0xff] }
 0x1da   : > { %1773 = vmatprep.subr.mxu0 %v1666_v18  ;;  %1880 = vmatprep.subr.mxu1 %v1668_v20  ;;  %v2062_v18 = vld [vmem:[#allocation12 + $0x900] sm:$0xff]  ;;  %v2064_v20 = vld [vmem:[#allocation12 + $0x910] sm:$0xff] }
 0x1db   : > { %1774 = vmatpush2.msra.mxu0 %v1665_v21  ;;  %1881 = vmatpush2.msra.mxu1 %v1667_v7  ;;  %v2059_v21 = vld [vmem:[#allocation12 + $0x8e8] sm:$0xff]  ;;  %v2061_v7 = vld [vmem:[#allocation12 + $0x8f8] sm:$0xff] }
 0x1dc   : > { %1775 = vmatprep.subr.mxu0 %v1662_v22  ;;  %1882 = vmatprep.subr.mxu1 %v1664_v23  ;;  %v2058_v22 = vld [vmem:[#allocation12 + $0x8e0] sm:$0xff]  ;;  %v2060_v23 = vld [vmem:[#allocation12 + $0x8f0] sm:$0xff] }
 0x1dd   : > { %1776 = vmatpush2.msra.mxu0 %v1661_v59  ;;  %1883 = vmatpush2.msra.mxu1 %v1663_v24  ;;  %v2055_v59 = vld [vmem:[#allocation12 + $0x8c8] sm:$0xff]  ;;  %v2057_v24 = vld [vmem:[#allocation12 + $0x8d8] sm:$0xff] }
 0x1de   : > { %1777 = vmatprep.subr.mxu0 %v1658_v25  ;;  %1884 = vmatprep.subr.mxu1 %v1660_v31  ;;  %v2054_v25 = vld [vmem:[#allocation12 + $0x8c0] sm:$0xff]  ;;  %v2056_v31 = vld [vmem:[#allocation12 + $0x8d0] sm:$0xff] }
 0x1df   : > { %1778 = vmatpush2.msra.mxu0 %v1657_v27  ;;  %1885 = vmatpush2.msra.mxu1 %v1659_v28  ;;  %v2051_v27 = vld [vmem:[#allocation12 + $0x8a8] sm:$0xff]  ;;  %v2053_v28 = vld [vmem:[#allocation12 + $0x8b8] sm:$0xff] }
 0x1e0   : > { %1779 = vmatprep.subr.mxu0 %v1654_v63  ;;  %1886 = vmatprep.subr.mxu1 %v1656_v29  ;;  %v2050_v63 = vld [vmem:[#allocation12 + $0x8a0] sm:$0xff]  ;;  %v2052_v29 = vld [vmem:[#allocation12 + $0x8b0] sm:$0xff] }
 0x1e1   : > { %1780 = vmatpush2.msra.mxu0 %v1653_v5  ;;  %1887 = vmatpush2.msra.mxu1 %v1655_v32  ;;  %v2047_v5 = vld [vmem:[#allocation12 + $0x888] sm:$0xff]  ;;  %v2049_v32 = vld [vmem:[#allocation12 + $0x898] sm:$0xff] }
 0x1e2   : > { %1782 = vmatmul.mubr.f32.vlgmr.msra.gmra.mxu0 %v5881_v33  ;;  %1889 = vmatmul.mubr.f32.vlgmr.msra.gmra.mxu1 %v5881_v33  ;;  %v2082_v33 = vld [vmem:[#allocation12 + $0x9a0] sm:$0xff] }
 0x1e3   : > { %2158 = vmatprep.subr.mxu0 %v2091_v35  ;;  %2265 = vmatprep.subr.mxu1 %v2093_v36  ;;  %v2046_v35 = vld [vmem:[#allocation12 + $0x880] sm:$0xff]  ;;  %v2048_v36 = vld [vmem:[#allocation12 + $0x890] sm:$0xff] }
 0x1e4   : > { %1787 = vmatprep.mubr.f32.mxu0 %v5889_v47  ;;  %1894 = vmatprep.mubr.f32.mxu1 %v5889_v47 }
 0x1e5   : > { %2159 = vmatpush1.msra.mxu0 %v2090_v38  ;;  %2266 = vmatpush1.msra.mxu1 %v2092_v39  ;;  %v2043_v38 = vld [vmem:[#allocation12 + $0x868] sm:$0xff]  ;;  %v2045_v39 = vld [vmem:[#allocation12 + $0x878] sm:$0xff] }
 0x1e6   : > { %2160 = vmatprep.subr.mxu0 %v2087_v40  ;;  %2267 = vmatprep.subr.mxu1 %v2089_v14  ;;  %v2042_v40 = vld [vmem:[#allocation12 + $0x860] sm:$0xff]  ;;  %v2044_v14 = vld [vmem:[#allocation12 + $0x870] sm:$0xff] }
 0x1e7   : > { %2161 = vmatpush1.msra.mxu0 %v2086_v42  ;;  %2268 = vmatpush1.msra.mxu1 %v2088_v43  ;;  %v2039_v42 = vld [vmem:[#allocation12 + $0x848] sm:$0xff]  ;;  %v2041_v43 = vld [vmem:[#allocation12 + $0x858] sm:$0xff] }
 0x1e8   : > { %1788 = vmatmul.mubr.f32.gmra.mxu0 %v5893_v55  ;;  %1895 = vmatmul.mubr.f32.gmra.mxu1 %v5893_v55 }
 0x1e9   : > { %2162 = vmatprep.subr.mxu0 %v2083_v44  ;;  %2269 = vmatprep.subr.mxu1 %v2085_v62  ;;  %v2038_v44 = vld [vmem:[#allocation12 + $0x840] sm:$0xff]  ;;  %v2040_v62 = vld [vmem:[#allocation12 + $0x850] sm:$0xff] }
 0x1ea   : > { %1793 = vmatprep.mubr.f32.mxu0 %v5901_v12  ;;  %1900 = vmatprep.mubr.f32.mxu1 %v5901_v12 }
 0x1eb   : > { %2163 = vmatpush1.msra.mxu0 %v2082_v33  ;;  %2270 = vmatpush1.msra.mxu1 %v2084_v30  ;;  %v2035_v33 = vld [vmem:[#allocation12 + $0x828] sm:$0xff]  ;;  %v2037_v30 = vld [vmem:[#allocation12 + $0x838] sm:$0xff] }
 0x1ec   : > { %2164 = vmatprep.subr.mxu0 %v2079_v48  ;;  %2271 = vmatprep.subr.mxu1 %v2081_v49  ;;  %v2034_v48 = vld [vmem:[#allocation12 + $0x820] sm:$0xff]  ;;  %v2036_v49 = vld [vmem:[#allocation12 + $0x830] sm:$0xff] }
 0x1ed   : > { %2165 = vmatpush1.msra.mxu0 %v2078_v10  ;;  %2272 = vmatpush1.msra.mxu1 %v2080_v19  ;;  %v2031_v10 = vld [vmem:[#allocation12 + $0x808] sm:$0xff]  ;;  %v2033_v19 = vld [vmem:[#allocation12 + $0x818] sm:$0xff] }
 0x1ee   : > { %1794 = vmatmul.mubr.f32.gmra.mxu0 %v5907_v26  ;;  %1901 = vmatmul.mubr.f32.gmra.mxu1 %v5907_v26 }
 0x1ef   : > { %2166 = vmatprep.subr.mxu0 %v2075_v3  ;;  %2273 = vmatprep.subr.mxu1 %v2077_v51  ;;  %v2030_v3 = vld [vmem:[#allocation12 + $0x800] sm:$0xff]  ;;  %v2032_v51 = vld [vmem:[#allocation12 + $0x810] sm:$0xff] }
 0x1f0   : > { %1799 = vmatprep.mubr.f32.mxu0 %v5914_v37  ;;  %1906 = vmatprep.mubr.f32.mxu1 %v5914_v37 }
 0x1f1   : > { %2167 = vmatpush1.msra.mxu0 %v2074_v52  ;;  %2274 = vmatpush1.msra.mxu1 %v2076_v53  ;;  %v2155_v52 = vld [vmem:[#allocation12 + $0xbe8] sm:$0xff]  ;;  %v2157_v53 = vld [vmem:[#allocation12 + $0xbf8] sm:$0xff] }
 0x1f2   : > { %2168 = vmatprep.subr.mxu0 %v2071_v54  ;;  %2275 = vmatprep.subr.mxu1 %v2073_v57  ;;  %v2156_v54 = vld [vmem:[#allocation12 + $0xbf0] sm:$0xff]  ;;  %v2151_v57 = vld [vmem:[#allocation12 + $0xbc8] sm:$0xff] }
 0x1f3   : > { %2169 = vmatpush1.msra.mxu0 %v2070_v58  ;;  %2276 = vmatpush1.msra.mxu1 %v2072_v0  ;;  %v2153_v58 = vld [vmem:[#allocation12 + $0xbd8] sm:$0xff]  ;;  %v2150_v0 = vld [vmem:[#allocation12 + $0xbc0] sm:$0xff] }
 0x1f4   : > { %1800 = vmatmul.mubr.f32.gmra.mxu0 %v5920_v46  ;;  %1907 = vmatmul.mubr.f32.gmra.mxu1 %v5920_v46 }
 0x1f5   : > { %2170 = vmatprep.subr.mxu0 %v2067_v2  ;;  %2277 = vmatprep.subr.mxu1 %v2069_v60  ;;  %v2152_v2 = vld [vmem:[#allocation12 + $0xbd0] sm:$0xff]  ;;  %v2147_v60 = vld [vmem:[#allocation12 + $0xba8] sm:$0xff] }
 0x1f6   : > { %1805 = vmatprep.mubr.f32.mxu0 %v5927_v56  ;;  %1912 = vmatprep.mubr.f32.mxu1 %v5927_v56 }
 0x1f7   : > { %2171 = vmatpush1.msra.mxu0 %v2066_v4  ;;  %2278 = vmatpush1.msra.mxu1 %v2068_v1  ;;  %v2149_v4 = vld [vmem:[#allocation12 + $0xbb8] sm:$0xff]  ;;  %v2146_v1 = vld [vmem:[#allocation12 + $0xba0] sm:$0xff] }
 0x1f8   : > { %2172 = vmatprep.subr.mxu0 %v2063_v61  ;;  %2279 = vmatprep.subr.mxu1 %v2065_v9  ;;  %v2148_v61 = vld [vmem:[#allocation12 + $0xbb0] sm:$0xff]  ;;  %v2143_v9 = vld [vmem:[#allocation12 + $0xb88] sm:$0xff] }
 0x1f9   : > { %2173 = vmatpush1.msra.mxu0 %v2062_v18  ;;  %2280 = vmatpush1.msra.mxu1 %v2064_v20  ;;  %v2145_v18 = vld [vmem:[#allocation12 + $0xb98] sm:$0xff]  ;;  %v2142_v20 = vld [vmem:[#allocation12 + $0xb80] sm:$0xff] }
 0x1fa   : > { %1806 = vmatmul.mubr.f32.gmra.mxu0 %v5933_v17  ;;  %1913 = vmatmul.mubr.f32.gmra.mxu1 %v5933_v17 }
 0x1fb   : > { %2174 = vmatprep.subr.mxu0 %v2059_v21  ;;  %2281 = vmatprep.subr.mxu1 %v2061_v7  ;;  %v2144_v21 = vld [vmem:[#allocation12 + $0xb90] sm:$0xff]  ;;  %v2139_v7 = vld [vmem:[#allocation12 + $0xb68] sm:$0xff] }
 0x1fc   : > { %1811 = vmatprep.mubr.f32.mxu0 %v5939_v15  ;;  %1918 = vmatprep.mubr.f32.mxu1 %v5939_v15 }
 0x1fd   : > { %2175 = vmatpush1.msra.mxu0 %v2058_v22  ;;  %2282 = vmatpush1.msra.mxu1 %v2060_v23  ;;  %v2141_v22 = vld [vmem:[#allocation12 + $0xb78] sm:$0xff]  ;;  %v2138_v23 = vld [vmem:[#allocation12 + $0xb60] sm:$0xff] }
 0x1fe   : > { %2176 = vmatprep.subr.mxu0 %v2055_v59  ;;  %2283 = vmatprep.subr.mxu1 %v2057_v24  ;;  %v2140_v59 = vld [vmem:[#allocation12 + $0xb70] sm:$0xff]  ;;  %v2135_v24 = vld [vmem:[#allocation12 + $0xb48] sm:$0xff] }
 0x1ff   : > { %2177 = vmatpush1.msra.mxu0 %v2054_v25  ;;  %2284 = vmatpush1.msra.mxu1 %v2056_v31  ;;  %v2137_v25 = vld [vmem:[#allocation12 + $0xb58] sm:$0xff]  ;;  %v2134_v31 = vld [vmem:[#allocation12 + $0xb40] sm:$0xff] }
 0x200   : > { %1812 = vmatmul.mubr.f32.gmra.mxu0 %v5945_v34  ;;  %1919 = vmatmul.mubr.f32.gmra.mxu1 %v5945_v34 }
 0x201   : > { %2178 = vmatprep.subr.mxu0 %v2051_v27  ;;  %2285 = vmatprep.subr.mxu1 %v2053_v28  ;;  %v2136_v27 = vld [vmem:[#allocation12 + $0xb50] sm:$0xff]  ;;  %v2131_v28 = vld [vmem:[#allocation12 + $0xb28] sm:$0xff] }
 0x202   : > { %1817 = vmatprep.mubr.f32.mxu0 %v5950_v41  ;;  %1924 = vmatprep.mubr.f32.mxu1 %v5950_v41 }
 0x203   : > { %2179 = vmatpush1.msra.mxu0 %v2050_v63  ;;  %2286 = vmatpush1.msra.mxu1 %v2052_v29  ;;  %v2133_v63 = vld [vmem:[#allocation12 + $0xb38] sm:$0xff]  ;;  %v2130_v29 = vld [vmem:[#allocation12 + $0xb20] sm:$0xff] }
 0x204   : > { %2180 = vmatprep.subr.mxu0 %v2047_v5  ;;  %2287 = vmatprep.subr.mxu1 %v2049_v32  ;;  %v2132_v5 = vld [vmem:[#allocation12 + $0xb30] sm:$0xff]  ;;  %v2127_v32 = vld [vmem:[#allocation12 + $0xb08] sm:$0xff] }
 0x205   : > { %2181 = vmatpush1.msra.mxu0 %v2046_v35  ;;  %2288 = vmatpush1.msra.mxu1 %v2048_v36  ;;  %v2129_v35 = vld [vmem:[#allocation12 + $0xb18] sm:$0xff]  ;;  %v2126_v36 = vld [vmem:[#allocation12 + $0xb00] sm:$0xff] }
 0x206   : > { %1818 = vmatmul.mubr.f32.gmra.mxu0 %v5956_v45  ;;  %1925 = vmatmul.mubr.f32.gmra.mxu1 %v5956_v45 }
 0x207   : > { %2182 = vmatprep.subr.mxu0 %v2043_v38  ;;  %2289 = vmatprep.subr.mxu1 %v2045_v39  ;;  %v2128_v38 = vld [vmem:[#allocation12 + $0xb10] sm:$0xff]  ;;  %v2123_v39 = vld [vmem:[#allocation12 + $0xae8] sm:$0xff] }
 0x208   : > { %2183 = vmatpush1.msra.mxu0 %v2042_v40  ;;  %2222 = vmatprep.mubr.f32.mxu0 %v5889_v47  ;;  %v2125_v40 = vld [vmem:[#allocation12 + $0xaf8] sm:$0xff] }
 0x209   : > { %2290 = vmatpush1.msra.mxu1 %v2044_v14  ;;  %2329 = vmatprep.mubr.f32.mxu1 %v5889_v47  ;;  %v2154_v47 = vld [vmem:[#allocation12 + $0xbe0] sm:$0xff] }
 0x20a   : > { %2184 = vmatprep.subr.mxu0 %v2039_v42  ;;  %2291 = vmatprep.subr.mxu1 %v2041_v43  ;;  %v2122_v14 = vld [vmem:[#allocation12 + $0xae0] sm:$0xff]  ;;  %v2124_v42 = vld [vmem:[#allocation12 + $0xaf0] sm:$0xff]  ;;  %v2119_v43 = vld [vmem:[#allocation12 + $0xac8] sm:$0xff] }
 0x20b   : > { %2185 = vmatpush1.msra.mxu0 %v2038_v44  ;;  %2292 = vmatpush1.msra.mxu1 %v2040_v62  ;;  %v2121_v44 = vld [vmem:[#allocation12 + $0xad8] sm:$0xff]  ;;  %v2118_v62 = vld [vmem:[#allocation12 + $0xac0] sm:$0xff] }
 0x20c   : > { %2186 = vmatprep.subr.mxu0 %v2035_v33  ;;  %2293 = vmatprep.subr.mxu1 %v2037_v30  ;;  %v2120_v33 = vld [vmem:[#allocation12 + $0xad0] sm:$0xff]  ;;  %v2115_v30 = vld [vmem:[#allocation12 + $0xaa8] sm:$0xff] }
 0x20d   : > { %2187 = vmatpush1.msra.mxu0 %v2034_v48  ;;  %2294 = vmatpush1.msra.mxu1 %v2036_v49  ;;  %v2117_v48 = vld [vmem:[#allocation12 + $0xab8] sm:$0xff]  ;;  %v2114_v49 = vld [vmem:[#allocation12 + $0xaa0] sm:$0xff] }
 0x20e   : > { %2188 = vmatprep.subr.mxu0 %v2031_v10  ;;  %2295 = vmatprep.subr.mxu1 %v2033_v19  ;;  %v2116_v10 = vld [vmem:[#allocation12 + $0xab0] sm:$0xff]  ;;  %v2111_v19 = vld [vmem:[#allocation12 + $0xa88] sm:$0xff] }
 0x20f   : > { %2189 = vmatpush1.msra.mxu0 %v2030_v3  ;;  %2296 = vmatpush1.msra.mxu1 %v2032_v51  ;;  %v2113_v3 = vld [vmem:[#allocation12 + $0xa98] sm:$0xff]  ;;  %v2110_v51 = vld [vmem:[#allocation12 + $0xa80] sm:$0xff] }
 0x210   : > { %2190 = vmatprep.subr.mxu0 %v2155_v52  ;;  %2297 = vmatprep.subr.mxu1 %v2157_v53  ;;  %v2112_v52 = vld [vmem:[#allocation12 + $0xa90] sm:$0xff]  ;;  %v2107_v53 = vld [vmem:[#allocation12 + $0xa68] sm:$0xff] }
 0x211   : > { %2191 = vmatpush2.msra.mxu0 %v2154_v47  ;;  %2298 = vmatpush2.msra.mxu1 %v2156_v54  ;;  %v2109_v47 = vld [vmem:[#allocation12 + $0xa78] sm:$0xff]  ;;  %v2106_v54 = vld [vmem:[#allocation12 + $0xa60] sm:$0xff] }
 0x212   : > { %2192 = vmatprep.subr.mxu0 %v2151_v57  ;;  %2299 = vmatprep.subr.mxu1 %v2153_v58  ;;  %v2108_v57 = vld [vmem:[#allocation12 + $0xa70] sm:$0xff]  ;;  %v2103_v58 = vld [vmem:[#allocation12 + $0xa48] sm:$0xff] }
 0x213   : > { %2193 = vmatpush2.msra.mxu0 %v2150_v0  ;;  %2300 = vmatpush2.msra.mxu1 %v2152_v2  ;;  %v2105_v0 = vld [vmem:[#allocation12 + $0xa58] sm:$0xff]  ;;  %v2102_v2 = vld [vmem:[#allocation12 + $0xa40] sm:$0xff] }
 0x214   : > { %2194 = vmatprep.subr.mxu0 %v2147_v60  ;;  %2301 = vmatprep.subr.mxu1 %v2149_v4  ;;  %v2104_v60 = vld [vmem:[#allocation12 + $0xa50] sm:$0xff]  ;;  %v2099_v4 = vld [vmem:[#allocation12 + $0xa28] sm:$0xff] }
 0x215   : > { %2195 = vmatpush2.msra.mxu0 %v2146_v1  ;;  %2302 = vmatpush2.msra.mxu1 %v2148_v61  ;;  %v2101_v1 = vld [vmem:[#allocation12 + $0xa38] sm:$0xff]  ;;  %v2098_v61 = vld [vmem:[#allocation12 + $0xa20] sm:$0xff] }
 0x216   : > { %2196 = vmatprep.subr.mxu0 %v2143_v9  ;;  %2303 = vmatprep.subr.mxu1 %v2145_v18  ;;  %v2100_v9 = vld [vmem:[#allocation12 + $0xa30] sm:$0xff]  ;;  %v2095_v18 = vld [vmem:[#allocation12 + $0xa08] sm:$0xff] }
 0x217   : > { %2197 = vmatpush2.msra.mxu0 %v2142_v20  ;;  %2304 = vmatpush2.msra.mxu1 %v2144_v21  ;;  %v2097_v20 = vld [vmem:[#allocation12 + $0xa18] sm:$0xff]  ;;  %v2094_v21 = vld [vmem:[#allocation12 + $0xa00] sm:$0xff] }
 0x218   : > { %2198 = vmatprep.subr.mxu0 %v2139_v7  ;;  %2305 = vmatprep.subr.mxu1 %v2141_v22  ;;  %v2096_v7 = vld [vmem:[#allocation12 + $0xa10] sm:$0xff]  ;;  %v2711_v22 = vld [vmem:[#allocation15 + $0x3e0] sm:$0xff] }
 0x219   : > { %2199 = vmatpush2.msra.mxu0 %v2138_v23  ;;  %2306 = vmatpush2.msra.mxu1 %v2140_v59  ;;  %v2663_v23 = vld [vmem:[#allocation15 + $0x260] sm:$0xff] }
 0x21a   : > { %2200 = vmatprep.subr.mxu0 %v2135_v24  ;;  %2307 = vmatprep.subr.mxu1 %v2137_v25  ;;  %v2695_v59 = vld [vmem:[#allocation15 + $0x360] sm:$0xff]  ;;  %v2678_v24 = vld [vmem:[#allocation15 + $0x2d8] sm:$0xff] }
 0x21b   : > { %2201 = vmatpush2.msra.mxu0 %v2134_v31  ;;  %2308 = vmatpush2.msra.mxu1 %v2136_v27  ;;  %v2710_v25 = vld [vmem:[#allocation15 + $0x3d8] sm:$0xff] }
 0x21c   : > { %2202 = vmatprep.subr.mxu0 %v2131_v28  ;;  %2309 = vmatprep.subr.mxu1 %v2133_v63  ;;  %v2662_v31 = vld [vmem:[#allocation15 + $0x258] sm:$0xff]  ;;  %v2677_v28 = vld [vmem:[#allocation15 + $0x2d0] sm:$0xff] }
 0x21d   : > { %2203 = vmatpush2.msra.mxu0 %v2130_v29  ;;  %2310 = vmatpush2.msra.mxu1 %v2132_v5  ;;  %v2694_v27 = vld [vmem:[#allocation15 + $0x358] sm:$0xff]  ;;  %v2709_v63 = vld [vmem:[#allocation15 + $0x3d0] sm:$0xff] }
 0x21e   : > { %2204 = vmatprep.subr.mxu0 %v2127_v32  ;;  %2311 = vmatprep.subr.mxu1 %v2129_v35  ;;  %v2661_v29 = vld [vmem:[#allocation15 + $0x250] sm:$0xff]  ;;  %v2676_v32 = vld [vmem:[#allocation15 + $0x2c8] sm:$0xff] }
 0x21f   : > { %2205 = vmatpush2.msra.mxu0 %v2126_v36  ;;  %2312 = vmatpush2.msra.mxu1 %v2128_v38  ;;  %v2693_v5 = vld [vmem:[#allocation15 + $0x350] sm:$0xff]  ;;  %v2708_v35 = vld [vmem:[#allocation15 + $0x3c8] sm:$0xff] }
 0x220   : > { %2206 = vmatprep.subr.mxu0 %v2123_v39  ;;  %2313 = vmatprep.subr.mxu1 %v2125_v40  ;;  %v2660_v36 = vld [vmem:[#allocation15 + $0x248] sm:$0xff]  ;;  %v2675_v39 = vld [vmem:[#allocation15 + $0x2c0] sm:$0xff] }
 0x221   : > { %2207 = vmatpush2.msra.mxu0 %v2122_v14  ;;  %2314 = vmatpush2.msra.mxu1 %v2124_v42  ;;  %v2692_v38 = vld [vmem:[#allocation15 + $0x348] sm:$0xff]  ;;  %v2707_v40 = vld [vmem:[#allocation15 + $0x3c0] sm:$0xff] }
 0x222   : > { %2208 = vmatprep.subr.mxu0 %v2119_v43  ;;  %2315 = vmatprep.subr.mxu1 %v2121_v44  ;;  %v2659_v14 = vld [vmem:[#allocation15 + $0x240] sm:$0xff]  ;;  %v2674_v43 = vld [vmem:[#allocation15 + $0x2b8] sm:$0xff] }
 0x223   : > { %2209 = vmatpush2.msra.mxu0 %v2118_v62  ;;  %2316 = vmatpush2.msra.mxu1 %v2120_v33  ;;  %v2691_v42 = vld [vmem:[#allocation15 + $0x340] sm:$0xff]  ;;  %v2706_v44 = vld [vmem:[#allocation15 + $0x3b8] sm:$0xff] }
 0x224   : > { %2210 = vmatprep.subr.mxu0 %v2115_v30  ;;  %2317 = vmatprep.subr.mxu1 %v2117_v48  ;;  %v2658_v62 = vld [vmem:[#allocation15 + $0x238] sm:$0xff]  ;;  %v2673_v30 = vld [vmem:[#allocation15 + $0x2b0] sm:$0xff] }
 0x225   : > { %2211 = vmatpush2.msra.mxu0 %v2114_v49  ;;  %2318 = vmatpush2.msra.mxu1 %v2116_v10  ;;  %v2690_v33 = vld [vmem:[#allocation15 + $0x338] sm:$0xff]  ;;  %v2705_v48 = vld [vmem:[#allocation15 + $0x3b0] sm:$0xff] }
 0x226   : > { %2212 = vmatprep.subr.mxu0 %v2111_v19  ;;  %2319 = vmatprep.subr.mxu1 %v2113_v3 }
 0x227   : > { %2213 = vmatpush2.msra.mxu0 %v2110_v51  ;;  %2320 = vmatpush2.msra.mxu1 %v2112_v52 }
 0x228   : > { %2214 = vmatprep.subr.mxu0 %v2107_v53  ;;  %2321 = vmatprep.subr.mxu1 %v2109_v47  ;;  %v2657_v53 = vld [vmem:[#allocation15 + $0x230] sm:$0xff] }
 0x229   : > { %2215 = vmatpush2.msra.mxu0 %v2106_v54  ;;  %2322 = vmatpush2.msra.mxu1 %v2108_v57  ;;  %v2689_v47 = vld [vmem:[#allocation15 + $0x330] sm:$0xff] }
 0x22a   : > { %2216 = vmatprep.subr.mxu0 %v2103_v58  ;;  %2323 = vmatprep.subr.mxu1 %v2105_v0  ;;  %v2672_v58 = vld [vmem:[#allocation15 + $0x2a8] sm:$0xff] }
 0x22b   : > { %2217 = vmatpush2.msra.mxu0 %v2102_v2  ;;  %2324 = vmatpush2.msra.mxu1 %v2104_v60  ;;  %v2704_v0 = vld [vmem:[#allocation15 + $0x3a8] sm:$0xff] }
 0x22c   : > { %2218 = vmatprep.subr.mxu0 %v2099_v4  ;;  %2325 = vmatprep.subr.mxu1 %v2101_v1  ;;  %v2656_v2 = vld [vmem:[#allocation15 + $0x228] sm:$0xff]  ;;  %v2671_v4 = vld [vmem:[#allocation15 + $0x2a0] sm:$0xff] }
 0x22d   : > { %2219 = vmatpush2.msra.mxu0 %v2098_v61  ;;  %2326 = vmatpush2.msra.mxu1 %v2100_v9  ;;  %v2688_v60 = vld [vmem:[#allocation15 + $0x328] sm:$0xff]  ;;  %v2703_v1 = vld [vmem:[#allocation15 + $0x3a0] sm:$0xff] }
 0x22e   : > { %2220 = vmatprep.subr.mxu0 %v2095_v18  ;;  %2327 = vmatprep.subr.mxu1 %v2097_v20  ;;  %v2655_v18 = vld [vmem:[#allocation15 + $0x220] sm:$0xff] }
 0x22f   : > { %2221 = vmatpush2.msra.mxu0 %v2094_v21  ;;  %2328 = vmatpush2.msra.mxu1 %v2096_v7  ;;  %v2687_v20 = vld [vmem:[#allocation15 + $0x320] sm:$0xff]  ;;  %v2670_v21 = vld [vmem:[#allocation15 + $0x298] sm:$0xff] }
 0x230   : > { %2223 = vmatmul.mubr.f32.vlgmr.msra.gmra.mxu0 %v5893_v55  ;;  %2330 = vmatmul.mubr.f32.vlgmr.msra.gmra.mxu1 %v5893_v55  ;;  %v2682_v55 = vld [vmem:[#allocation15 + $0x2f8] sm:$0xff] }
 0x231   : > { %2228 = vmatprep.mubr.f32.mxu0 %v5901_v12  ;;  %2335 = vmatprep.mubr.f32.mxu1 %v5901_v12  ;;  %v2714_v12 = vld [vmem:[#allocation15 + $0x3f8] sm:$0xff] }
 0x232   : > { %4554 = vmatprep.subr.mxu0 %v2682_v55  ;;  %4589 = vmatprep.subr.mxu1 %v2714_v12  ;;  %v2702_v7 = vld [vmem:[#allocation15 + $0x398] sm:$0xff] }
 0x233   : > { %v2654_v55 = vld [vmem:[#allocation15 + $0x218] sm:$0xff] }
 0x234   : > { %2229 = vmatmul.mubr.f32.gmra.mxu0 %v5907_v26  ;;  %2336 = vmatmul.mubr.f32.gmra.mxu1 %v5907_v26  ;;  %v2666_v26 = vld [vmem:[#allocation15 + $0x278] sm:$0xff] }
 0x235   : > { %2234 = vmatprep.mubr.f32.mxu0 %v5914_v37  ;;  %2341 = vmatprep.mubr.f32.mxu1 %v5914_v37  ;;  %v2698_v37 = vld [vmem:[#allocation15 + $0x378] sm:$0xff] }
 0x236   : > { %4555 = vmatpush3.msra.mxu0 %v2666_v26  ;;  %4590 = vmatpush3.msra.mxu1 %v2698_v37  ;;  %v2686_v12 = vld [vmem:[#allocation15 + $0x318] sm:$0xff]  ;;  %v2669_v26 = vld [vmem:[#allocation15 + $0x290] sm:$0xff] }
 0x237   : > { %v2701_v37 = vld [vmem:[#allocation15 + $0x390] sm:$0xff] }
 0x238   : > { %2235 = vmatmul.mubr.f32.gmra.mxu0 %v5920_v46  ;;  %2342 = vmatmul.mubr.f32.gmra.mxu1 %v5920_v46  ;;  %v2681_v46 = vld [vmem:[#allocation15 + $0x2f0] sm:$0xff] }
 0x239   : > { %2240 = vmatprep.mubr.f32.mxu0 %v5927_v56  ;;  %2347 = vmatprep.mubr.f32.mxu1 %v5927_v56  ;;  %v2713_v56 = vld [vmem:[#allocation15 + $0x3f0] sm:$0xff] }
 0x23a   : > { %4556 = vmatprep.subr.mxu0 %v2681_v46  ;;  %4591 = vmatprep.subr.mxu1 %v2713_v56 }
 0x23c   : > { %2241 = vmatmul.mubr.f32.gmra.mxu0 %v5933_v17  ;;  %2348 = vmatmul.mubr.f32.gmra.mxu1 %v5933_v17  ;;  %v2665_v17 = vld [vmem:[#allocation15 + $0x270] sm:$0xff] }
 0x23d   : > { %2246 = vmatprep.mubr.f32.mxu0 %v5939_v15  ;;  %2353 = vmatprep.mubr.f32.mxu1 %v5939_v15  ;;  %v2697_v15 = vld [vmem:[#allocation15 + $0x370] sm:$0xff] }
 0x23e   : > { %4557 = vmatpush3.msra.mxu0 %v2665_v17  ;;  %4592 = vmatpush3.msra.mxu1 %v2697_v15  ;;  %v2653_v17 = vld [vmem:[#allocation15 + $0x210] sm:$0xff] }
 0x23f   : > { %v2685_v15 = vld [vmem:[#allocation15 + $0x310] sm:$0xff] }
 0x240   : > { %2247 = vmatmul.mubr.f32.gmra.mxu0 %v5945_v34  ;;  %2354 = vmatmul.mubr.f32.gmra.mxu1 %v5945_v34  ;;  %v2680_v34 = vld [vmem:[#allocation15 + $0x2e8] sm:$0xff] }
 0x241   : > { %2252 = vmatprep.mubr.f32.mxu0 %v5950_v41  ;;  %2359 = vmatprep.mubr.f32.mxu1 %v5950_v41  ;;  %v2712_v41 = vld [vmem:[#allocation15 + $0x3e8] sm:$0xff] }
 0x242   : > { %4558 = vmatprep.subr.mxu0 %v2680_v34  ;;  %4593 = vmatprep.subr.mxu1 %v2712_v41  ;;  %v2668_v34 = vld [vmem:[#allocation15 + $0x288] sm:$0xff] }
 0x243   : > { %v2700_v41 = vld [vmem:[#allocation15 + $0x388] sm:$0xff] }
 0x244   : > { %2253 = vmatmul.mubr.f32.gmra.mxu0 %v5956_v45  ;;  %2360 = vmatmul.mubr.f32.gmra.mxu1 %v5956_v45  ;;  %v2664_v45 = vld [vmem:[#allocation15 + $0x268] sm:$0xff] }
 0x245   : > { %2258 = vmatprep.mubr.f32.mxu0 %v5961_v50  ;;  %2365 = vmatprep.mubr.f32.mxu1 %v5961_v50  ;;  %v2696_v50 = vld [vmem:[#allocation15 + $0x368] sm:$0xff] }
 0x246   : > { %4559 = vmatpush3.msra.mxu0 %v2664_v45  ;;  %4594 = vmatpush3.msra.mxu1 %v2696_v50  ;;  %v2652_v45 = vld [vmem:[#allocation15 + $0x208] sm:$0xff] }
 0x247   : > { %4595 = vmatprep.subr.mxu1 %v2711_v22  ;;  %v2684_v50 = vld [vmem:[#allocation15 + $0x308] sm:$0xff]  ;;  %v2699_v22 = vld [vmem:[#allocation15 + $0x380] sm:$0xff] }
 0x248   : > { %2259 = vmatmul.mubr.f32.gmra.mxu0 %v5967_v16  ;;  %2366 = vmatmul.mubr.f32.gmra.mxu1 %v5967_v16  ;;  %v2679_v16 = vld [vmem:[#allocation15 + $0x2e0] sm:$0xff] }
 0x249   : > { %4560 = vmatprep.subr.mxu0 %v2679_v16  ;;  %4596 = vmatpush3.msra.mxu1 %v2695_v59  ;;  %v2667_v16 = vld [vmem:[#allocation15 + $0x280] sm:$0xff] }
 0x24a   : > { %4561 = vmatpush3.msra.mxu0 %v2663_v23  ;;  %4597 = vmatprep.subr.mxu1 %v2710_v25  ;;  %v2683_v25 = vld [vmem:[#allocation15 + $0x300] sm:$0xff] }
 0x24b   : > { %4562 = vmatprep.subr.mxu0 %v2678_v24  ;;  %4598 = vmatpush3.msra.mxu1 %v2694_v27  ;;  %v2651_v24 = vld [vmem:[#allocation15 + $0x200] sm:$0xff]  ;;  %v2645_v27 = vld [vmem:[#allocation15 + $0x1f8] sm:$0xff] }
 0x24c   : > { %4563 = vmatpush3.msra.mxu0 %v2662_v31  ;;  %4599 = vmatprep.subr.mxu1 %v2709_v63  ;;  %v2613_v31 = vld [vmem:[#allocation15 + $0xf8] sm:$0xff] }
 0x24d   : > { %4564 = vmatprep.subr.mxu0 %v2677_v28  ;;  %4600 = vmatpush3.msra.mxu1 %v2693_v5 }
 0x24e   : > { %4565 = vmatpush3.msra.mxu0 %v2661_v29  ;;  %4601 = vmatprep.subr.mxu1 %v2708_v35 }
 0x24f   : > { %4566 = vmatprep.subr.mxu0 %v2676_v32  ;;  %4602 = vmatpush3.msra.mxu1 %v2692_v38 }
 0x250   : > { %4567 = vmatpush3.msra.mxu0 %v2660_v36  ;;  %4603 = vmatprep.subr.mxu1 %v2707_v40 }
 0x251   : > { %4568 = vmatprep.subr.mxu0 %v2675_v39  ;;  %4604 = vmatpush3.msra.mxu1 %v2691_v42 }
 0x252   : > { %4569 = vmatpush3.msra.mxu0 %v2659_v14  ;;  %4605 = vmatprep.subr.mxu1 %v2706_v44 }
 0x253   : > { %4570 = vmatprep.subr.mxu0 %v2674_v43  ;;  %4606 = vmatpush3.msra.mxu1 %v2690_v33  ;;  %v6027_v49 = vpop.f32.mrf.mxu0  ;;  %v6029_v10 = vpop.f32.mrf.mxu1 }
 0x254   : > { %4571 = vmatpush3.msra.mxu0 %v2658_v62  ;;  %4607 = vmatprep.subr.mxu1 %v2705_v48 }
 0x255   : > { %4572 = vmatprep.subr.mxu0 %v2673_v30  ;;  %v6031_v19 = vpop.f32.mrf.mxu0  ;;  %v6033_v3 = vpop.f32.mrf.mxu1  ;;  %4608 = vmatpush3.msra.mxu1 %v2689_v47 }
 0x256   : > { %4573 = vmatpush3.msra.mxu0 %v2657_v53  ;;  %4609 = vmatprep.subr.mxu1 %v2704_v0 }
 0x257   : > { %4574 = vmatprep.subr.mxu0 %v2672_v58  ;;  %4610 = vmatpush3.msra.mxu1 %v2688_v60 }
 0x258   : > { %4575 = vmatpush3.msra.mxu0 %v2656_v2  ;;  %4611 = vmatprep.subr.mxu1 %v2703_v1 }
 0x259   : > { %v6035_v51 = vpop.f32.mrf.mxu0  ;;  %v6037_v52 = vpop.f32.mrf.mxu1  ;;  %4576 = vmatprep.subr.mxu0 %v2671_v4  ;;  %4612 = vmatpush3.msra.mxu1 %v2687_v20 }
 0x25a   : > { %4577 = vmatpush3.msra.mxu0 %v2655_v18  ;;  %4613 = vmatprep.subr.mxu1 %v2702_v7 }
 0x25b   : > { %v6039_v54 = vpop.f32.mrf.mxu0  ;;  %v6041_v57 = vpop.f32.mrf.mxu1  ;;  %4578 = vmatprep.subr.mxu0 %v2670_v21  ;;  %4614 = vmatpush3.msra.mxu1 %v2686_v12 }
 0x25c   : > { %4579 = vmatpush3.msra.mxu0 %v2654_v55  ;;  %4615 = vmatprep.subr.mxu1 %v2701_v37 }
 0x25d   : > { %4580 = vmatprep.subr.mxu0 %v2669_v26  ;;  %4616 = vmatpush3.msra.mxu1 %v2685_v15 }
 0x25e   : > { %4581 = vmatpush3.msra.mxu0 %v2653_v17  ;;  %4617 = vmatprep.subr.mxu1 %v2700_v41 }
 0x25f   : > { %v6043_v61 = vpop.f32.mrf.mxu0  ;;  %v6045_v9 = vpop.f32.mrf.mxu1  ;;  %4582 = vmatprep.subr.mxu0 %v2668_v34  ;;  %4618 = vmatpush3.msra.mxu1 %v2684_v50 }
 0x260   : > { %4583 = vmatpush3.msra.mxu0 %v2652_v45  ;;  %4619 = vmatprep.subr.mxu1 %v2699_v22 }
 0x261   : > { %v6047_v46 = vpop.f32.mrf.mxu0  ;;  %v6049_v56 = vpop.f32.mrf.mxu1  ;;  %4584 = vmatprep.subr.mxu0 %v2667_v16  ;;  %4620 = vmatpush3.msra.mxu1 %v2683_v25 }
 0x262   : > { %4585 = vmatpush3.msra.mxu0 %v2651_v24  ;;  %4659 = vmatprep.subr.mxu1 %v2645_v27 }
 0x263   : > { %4624 = vmatprep.subr.mxu0 %v2613_v31 }
 0x265   : > { %v6051_v23 = vpop.f32.mrf.mxu0  ;;  %v6053_v59 = vpop.f32.mrf.mxu1 }
 0x267   : > { %v6055_v28 = vpop.f32.mrf.mxu0  ;;  %v6057_v63 = vpop.f32.mrf.mxu1 }
 0x26b   : > { %v6059_v29 = vpop.f32.mrf.mxu0  ;;  %v6061_v5 = vpop.f32.mrf.mxu1 }
 0x26d   : > { %v6063_v32 = vpop.f32.mrf.mxu0  ;;  %v6065_v35 = vpop.f32.mrf.mxu1 }
 0x271   : > { %v6067_v36 = vpop.f32.mrf.mxu0  ;;  %v6069_v38 = vpop.f32.mrf.mxu1 }
 0x273   : > { %v6071_v39 = vpop.f32.mrf.mxu0  ;;  %v6073_v40 = vpop.f32.mrf.mxu1 }
 0x277   : > { %v6075_v14 = vpop.f32.mrf.mxu0  ;;  %v6077_v42 = vpop.f32.mrf.mxu1 }
 0x278   : > { %6335 = vst [vmem:[#allocation26_spill] sm:$0xff] %v6075_v14  ;;  %6336 = vst [vmem:[#allocation27_spill] sm:$0xff] %v6077_v42  ;;  %v2476_v14 = vsub.s32 3, %v5857_v6 }
 0x279   : > { %v6079_v43 = vpop.f32.mrf.mxu0  ;;  %v6081_v44 = vpop.f32.mrf.mxu1 }
 0x27a   : > { %6337 = vst [vmem:[#allocation28_spill] sm:$0xff] %v6079_v43  ;;  %6338 = vst [vmem:[#allocation29_spill] sm:$0xff] %v6081_v44  ;;  %v6350_v44 = vsub.s32 1, %v5857_v6 }
 0x27d   : > { %v6083_v62 = vpop.f32.mrf.mxu0  ;;  %v6085_v33 = vpop.f32.mrf.mxu1 }
 0x27e   : > { %6339 = vst [vmem:[#allocation30_spill] sm:$0xff] %v6083_v62  ;;  %6340 = vst [vmem:[#allocation31_spill] sm:$0xff] %v6085_v33  ;;  %v2460_v62 = vld [vmem:[#allocation13] sm:$0xf] }
 0x27f   : > { %v1399_v30 = vpop.f32.mrf.mxu0  ;;  %v1512_v48 = vpop.f32.mrf.mxu1 }
 0x2a2   : > { %v1783_v53 = vpop.f32.mrf.mxu0  ;;  %v1890_v47 = vpop.f32.mrf.mxu1 }
 0x2a4   : > { %v1785_v58 = vpop.f32.mrf.mxu0  ;;  %v1892_v0 = vpop.f32.mrf.mxu1 }
 0x2a8   : > { %v6087_v2 = vpop.f32.mrf.mxu0  ;;  %v6089_v60 = vpop.f32.mrf.mxu1 }
 0x2aa   : > { %v6091_v4 = vpop.f32.mrf.mxu0  ;;  %v6093_v1 = vpop.f32.mrf.mxu1 }
 0x2ae   : > { %v6095_v18 = vpop.f32.mrf.mxu0  ;;  %v6097_v20 = vpop.f32.mrf.mxu1 }
 0x2b0   : > { %v6099_v21 = vpop.f32.mrf.mxu0  ;;  %v6101_v7 = vpop.f32.mrf.mxu1 }
 0x2b4   : > { %v6103_v55 = vpop.f32.mrf.mxu0  ;;  %v6105_v12 = vpop.f32.mrf.mxu1 }
 0x2b6   : > { %v6107_v26 = vpop.f32.mrf.mxu0  ;;  %v6109_v37 = vpop.f32.mrf.mxu1 }
 0x2ba   : > { %v6111_v17 = vpop.f32.mrf.mxu0  ;;  %v6113_v15 = vpop.f32.mrf.mxu1 }
 0x2bc   : > { %v6115_v34 = vpop.f32.mrf.mxu0  ;;  %v6117_v41 = vpop.f32.mrf.mxu1 }
 0x2c0   : > { %v6119_v45 = vpop.f32.mrf.mxu0  ;;  %v6121_v50 = vpop.f32.mrf.mxu1 }
 0x2c1   : > { %6341 = vst [vmem:[#allocation32_spill] sm:$0xff] %v6119_v45  ;;  %6342 = vst [vmem:[#allocation33_spill] sm:$0xff] %v6121_v50  ;;  %v2472_v50 = vsub.s32 2, %v5857_v6 }
 0x2c2   : > { %v6123_v16 = vpop.f32.mrf.mxu0  ;;  %v6125_v22 = vpop.f32.mrf.mxu1 }
 0x2c3   : > { %6343 = vst [vmem:[#allocation34_spill] sm:$0xff] %v6123_v16  ;;  %6344 = vst [vmem:[#allocation35_spill] sm:$0xff] %v6125_v22  ;;  %v6153_v16 = vrot.slane %v2460_v62, %v6350_v44 }
 0x2c6   : > { %v6127_v24 = vpop.f32.mrf.mxu0  ;;  %v6129_v25 = vpop.f32.mrf.mxu1 }
 0x2c7   : > { %6345 = vst [vmem:[#allocation36_spill] sm:$0xff] %v6127_v24  ;;  %6346 = vst [vmem:[#allocation37_spill] sm:$0xff] %v6129_v25  ;;  %v1931_v24 = vadd.f32 %v1783_v53, %v6035_v51  ;;  %v1933_v25 = vadd.f32 %v1890_v47, %v6037_v52  ;;  %v6155_v47 = vrot.slane %v2460_v62, %v2476_v14 }
 0x2c8   : > { %v1821_v31 = vpop.f32.mrf.mxu0  ;;  %v1928_v27 = vpop.f32.mrf.mxu1 }
 0x2c9   : > { %v6131_v8 = vadd.f32 %v1821_v31, %v1399_v30  ;;  %v6133_v13 = vadd.f32 %v1928_v27, %v1512_v48  ;;  %v1932_v48 = vadd.f32 %v1785_v58, %v6039_v54  ;;  %v1934_v31 = vadd.f32 %v1892_v0, %v6041_v57 }
 0x2ca   : > { %v6349_v27 = vsub.s32 0, %v5857_v6 }
 0x2cb   : > { %6347 = vst [vmem:[#allocation38_spill] sm:$0xff] %v6131_v8  ;;  %6348 = vst [vmem:[#allocation39_spill] sm:$0xff] %v6133_v13  ;;  %v6149_v8 = vrot.slane %v2460_v62, %v2472_v50 }
 0x2cc   : > { %v6147_v13 = vrot.slane %v2460_v62, %v6349_v27 }
 0x2f0   : > { %v6135_v11 = vpop.f32.mrf.mxu0  ;;  %v6137_v33 = vpop.f32.mrf.mxu1 }
 0x2f2   : > { %v2226_v42 = vpop.f32.mrf.mxu0  ;;  %v2333_v45 = vpop.f32.mrf.mxu1 }
 0x2f3   : > { %v2373_v54 = vadd.f32 %v2226_v42, %v6031_v19  ;;  %v2375_v0 = vadd.f32 %v2333_v45, %v6033_v3  ;;  %v2597_v42 = vld [vmem:[#allocation15 + $0x78] sm:$0xff]  ;;  %v2612_v45 = vld [vmem:[#allocation15 + $0xf0] sm:$0xff] }
 0x2f4   : > { %v2230_v22 = vpop.f32.mrf.mxu0  ;;  %v2337_v30 = vpop.f32.mrf.mxu1  ;;  %v2629_v3 = vld [vmem:[#allocation15 + $0x178] sm:$0xff] }
 0x2f5   : > { %v2376_v43 = vadd.f32 %v2230_v22, %v1931_v24  ;;  %v2378_v51 = vadd.f32 %v2337_v30, %v1933_v25  ;;  %v2483_v22 = vadd.f32 %v6153_v16, %v2373_v54  ;;  %v2485_v14 = vadd.f32 %v6155_v47, %v2375_v0  ;;  %v2595_v54 = vld [vmem:[#allocation15 + $0x68] sm:$0xff]  ;;  %v2642_v0 = vld [vmem:[#allocation15 + $0x1e0] sm:$0xff] }
 0x2f6   : > { %v2232_v53 = vpop.f32.mrf.mxu0  ;;  %v2339_v52 = vpop.f32.mrf.mxu1 }
 0x2f7   : > { %v2377_v58 = vadd.f32 %v2232_v53, %v1932_v48  ;;  %v2379_v57 = vadd.f32 %v2339_v52, %v1934_v31  ;;  %v2486_v27 = vadd.f32 %v6147_v13, %v2376_v43  ;;  %v2488_v50 = vadd.f32 %v6149_v8, %v2378_v51  ;;  %v2644_v43 = vld [vmem:[#allocation15 + $0x1f0] sm:$0xff]  ;;  %v2611_v53 = vld [vmem:[#allocation15 + $0xe8] sm:$0xff] }
 0x2f8   : > { %v2515_v30 = vmax.f32 %v2483_v22, 0.0  ;;  %v2596_v48 = vld [vmem:[#allocation15 + $0x70] sm:$0xff]  ;;  %v2517_v31 = vmax.f32 %v2485_v14, 0.0  ;;  %v2643_v52 = vld [vmem:[#allocation15 + $0x1e8] sm:$0xff]  ;;  %v2593_v22 = vld [vmem:[#allocation15 + $0x58] sm:$0xff] }
 0x2f9   : > { %v2487_v6 = vadd.f32 %v6153_v16, %v2377_v58  ;;  %v2489_v44 = vadd.f32 %v6155_v47, %v2379_v57  ;;  %v2518_v62 = vmax.f32 %v2486_v27, 0.0  ;;  %v2520_v19 = vmax.f32 %v2488_v50, 0.0  ;;  %v2628_v51 = vld [vmem:[#allocation15 + $0x170] sm:$0xff]  ;;  %v2627_v58 = vld [vmem:[#allocation15 + $0x168] sm:$0xff]  ;;  %v2610_v57 = vld [vmem:[#allocation15 + $0xe0] sm:$0xff] }
 0x2fa   : > { %v2594_v27 = vld [vmem:[#allocation15 + $0x60] sm:$0xff]  ;;  %v2640_v14 = vld [vmem:[#allocation15 + $0x1d0] sm:$0xff] }
 0x2fb   : > { %v2519_v24 = vmax.f32 %v2487_v6, 0.0  ;;  %v2521_v25 = vmax.f32 %v2489_v44, 0.0  ;;  %v2626_v50 = vld [vmem:[#allocation15 + $0x160] sm:$0xff]  ;;  %v2609_v6 = vld [vmem:[#allocation15 + $0xd8] sm:$0xff] }
 0x2fc   : > { %v2641_v44 = vld [vmem:[#allocation15 + $0x1d8] sm:$0xff] }
 0x2fd   : > { %2779 = vmatprep.mubr.f32.mxu0 %v2519_v24  ;;  %2849 = vmatprep.mubr.f32.mxu1 %v2521_v25  ;;  %v2625_v24 = vld [vmem:[#allocation15 + $0x158] sm:$0xff]  ;;  %v2608_v25 = vld [vmem:[#allocation15 + $0xd0] sm:$0xff] }
 0x2fe   : > { %2780 = vmatmul.mubr.f32.vlgmr.msra.gmra.mxu0 %v2518_v62  ;;  %2850 = vmatmul.mubr.f32.vlgmr.msra.gmra.mxu1 %v2520_v19  ;;  %v2592_v62 = vld [vmem:[#allocation15 + $0x50] sm:$0xff] }
 0x2ff   : > { %4625 = vmatpush3.msra.mxu0 %v2597_v42  ;;  %4660 = vmatpush3.msra.mxu1 %v2629_v3  ;;  %v2624_v19 = vld [vmem:[#allocation15 + $0x150] sm:$0xff]  ;;  %v2607_v42 = vld [vmem:[#allocation15 + $0xc8] sm:$0xff] }
 0x300   : > { %4626 = vmatprep.subr.mxu0 %v2612_v45  ;;  %2919 = vmatprep.mubr.f32.mxu0 %v2515_v30  ;;  %v2639_v3 = vld [vmem:[#allocation15 + $0x1c8] sm:$0xff]  ;;  %v2606_v30 = vld [vmem:[#allocation15 + $0xc0] sm:$0xff] }
 0x301   : > { %4661 = vmatprep.subr.mxu1 %v2644_v43  ;;  %2989 = vmatprep.mubr.f32.mxu1 %v2517_v31  ;;  %v2591_v45 = vld [vmem:[#allocation15 + $0x48] sm:$0xff]  ;;  %v2590_v31 = vld [vmem:[#allocation15 + $0x40] sm:$0xff] }
 0x302   : > { %4627 = vmatpush3.msra.mxu0 %v2596_v48  ;;  %4662 = vmatpush3.msra.mxu1 %v2628_v51  ;;  %v2623_v43 = vld [vmem:[#allocation15 + $0x148] sm:$0xff]  ;;  %v2638_v48 = vld [vmem:[#allocation15 + $0x1c0] sm:$0xff] }
 0x303   : > { %4628 = vmatprep.subr.mxu0 %v2611_v53  ;;  %4663 = vmatprep.subr.mxu1 %v2643_v52  ;;  %v2622_v51 = vld [vmem:[#allocation15 + $0x140] sm:$0xff]  ;;  %v2605_v53 = vld [vmem:[#allocation15 + $0xb8] sm:$0xff] }
 0x304   : > { %4629 = vmatpush3.msra.mxu0 %v2595_v54  ;;  %4664 = vmatpush3.msra.mxu1 %v2627_v58  ;;  %v2637_v52 = vld [vmem:[#allocation15 + $0x1b8] sm:$0xff] }
 0x305   : > { %4630 = vmatprep.subr.mxu0 %v2610_v57  ;;  %4665 = vmatprep.subr.mxu1 %v2642_v0  ;;  %v2589_v54 = vld [vmem:[#allocation15 + $0x38] sm:$0xff]  ;;  %v2604_v57 = vld [vmem:[#allocation15 + $0xb0] sm:$0xff] }
 0x306   : > { %4631 = vmatpush3.msra.mxu0 %v2594_v27  ;;  %4666 = vmatpush3.msra.mxu1 %v2626_v50  ;;  %v2621_v58 = vld [vmem:[#allocation15 + $0x138] sm:$0xff]  ;;  %v2636_v0 = vld [vmem:[#allocation15 + $0x1b0] sm:$0xff] }
 0x307   : > { %4632 = vmatprep.subr.mxu0 %v2609_v6  ;;  %4667 = vmatprep.subr.mxu1 %v2641_v44  ;;  %v2588_v27 = vld [vmem:[#allocation15 + $0x30] sm:$0xff]  ;;  %v2603_v6 = vld [vmem:[#allocation15 + $0xa8] sm:$0xff]  ;;  %v6165_v44 = vpop.f32.mrf.mxu0 }
 0x308   : > { %4633 = vmatpush3.msra.mxu0 %v2593_v22  ;;  %4668 = vmatpush3.msra.mxu1 %v2625_v24  ;;  %v2620_v50 = vld [vmem:[#allocation15 + $0x130] sm:$0xff]  ;;  %v2635_v22 = vld [vmem:[#allocation15 + $0x1a8] sm:$0xff] }
 0x309   : > { %4634 = vmatprep.subr.mxu0 %v2608_v25  ;;  %4669 = vmatprep.subr.mxu1 %v2640_v14  ;;  %v2587_v24 = vld [vmem:[#allocation15 + $0x28] sm:$0xff]  ;;  %v6167_v25 = vpop.f32.mrf.mxu1 }
 0x30a   : > { %4635 = vmatpush3.msra.mxu0 %v2592_v62  ;;  %4670 = vmatpush3.msra.mxu1 %v2624_v19  ;;  %v2619_v14 = vld [vmem:[#allocation15 + $0x128] sm:$0xff]  ;;  %v2602_v62 = vld [vmem:[#allocation15 + $0xa0] sm:$0xff] }
 0x30b   : > { %4636 = vmatprep.subr.mxu0 %v2607_v42  ;;  %4671 = vmatprep.subr.mxu1 %v2639_v3  ;;  %v2634_v19 = vld [vmem:[#allocation15 + $0x1a0] sm:$0xff] }
 0x30c   : > { %4637 = vmatpush3.msra.mxu0 %v2591_v45  ;;  %4672 = vmatpush3.msra.mxu1 %v2623_v43  ;;  %v2586_v42 = vld [vmem:[#allocation15 + $0x20] sm:$0xff]  ;;  %v2601_v45 = vld [vmem:[#allocation15 + $0x98] sm:$0xff]  ;;  %v2372_v43 = vadd.f32 %v6135_v11, %v6027_v49  ;;  %v2632_v11 = vld [vmem:[#allocation15 + $0x190] sm:$0xff] }
 0x30d   : > { %4638 = vmatprep.subr.mxu0 %v2606_v30  ;;  %4673 = vmatprep.subr.mxu1 %v2638_v48  ;;  %v2618_v3 = vld [vmem:[#allocation15 + $0x120] sm:$0xff]  ;;  %v2238_v30 = vpop.f32.mrf.mxu0  ;;  %v2633_v48 = vld [vmem:[#allocation15 + $0x198] sm:$0xff]  ;;  %v2584_v49 = vld [vmem:[#allocation15 + $0x10] sm:$0xff] }
 0x30e   : > { %4639 = vmatpush3.msra.mxu0 %v2590_v31  ;;  %4674 = vmatpush3.msra.mxu1 %v2622_v51  ;;  %v2585_v31 = vld [vmem:[#allocation15 + $0x18] sm:$0xff]  ;;  %v1936_v51 = vadd.f32 %v6091_v4, %v6047_v46  ;;  %v2599_v46 = vld [vmem:[#allocation15 + $0x88] sm:$0xff]  ;;  %v2482_v4 = vadd.f32 %v6147_v13, %v2372_v43 }
 0x30f   : > { %4640 = vmatprep.subr.mxu0 %v2605_v53  ;;  %4675 = vmatprep.subr.mxu1 %v2637_v52  ;;  %v2374_v53 = vadd.f32 %v6137_v33, %v6029_v10  ;;  %v2345_v52 = vpop.f32.mrf.mxu1  ;;  %v2631_v33 = vld [vmem:[#allocation15 + $0x188] sm:$0xff]  ;;  %v3063_v43 = vld [vmem:[#allocation15 + $0x5f8] sm:$0xff] }
 0x310   : > { %4641 = vmatpush3.msra.mxu0 %v2589_v54  ;;  %4676 = vmatpush3.msra.mxu1 %v2621_v58  ;;  %v2617_v54 = vld [vmem:[#allocation15 + $0x118] sm:$0xff]  ;;  %v2600_v58 = vld [vmem:[#allocation15 + $0x90] sm:$0xff] }
 0x311   : > { %4642 = vmatprep.subr.mxu0 %v2604_v57  ;;  %4677 = vmatprep.subr.mxu1 %v2636_v0  ;;  %v1938_v57 = vadd.f32 %v6093_v1, %v6049_v56  ;;  %v2381_v0 = vadd.f32 %v2238_v30, %v1936_v51  ;;  %v2615_v56 = vld [vmem:[#allocation15 + $0x108] sm:$0xff]  ;;  %v2598_v1 = vld [vmem:[#allocation15 + $0x80] sm:$0xff]  ;;  %v3015_v30 = vld [vmem:[#allocation15 + $0x478] sm:$0xff] }
 0x312   : > { %4643 = vmatpush3.msra.mxu0 %v2588_v27  ;;  %4678 = vmatpush3.msra.mxu1 %v2620_v50  ;;  %v2616_v27 = vld [vmem:[#allocation15 + $0x110] sm:$0xff]  ;;  %v2583_v50 = vld [vmem:[#allocation15 + $0x8] sm:$0xff] }
 0x313   : > { %4644 = vmatprep.subr.mxu0 %v2603_v6  ;;  %4679 = vmatprep.subr.mxu1 %v2635_v22  ;;  %v2383_v10 = vadd.f32 %v2345_v52, %v1938_v57  ;;  %v2484_v6 = vadd.f32 %v6149_v8, %v2374_v53  ;;  %v2630_v22 = vld [vmem:[#allocation15 + $0x180] sm:$0xff]  ;;  %v3030_v51 = vld [vmem:[#allocation15 + $0x4f0] sm:$0xff]  ;;  %v3029_v57 = vld [vmem:[#allocation15 + $0x4e8] sm:$0xff] }
 0x314   : > { %4645 = vmatpush3.msra.mxu0 %v2587_v24  ;;  %4680 = vmatpush3.msra.mxu1 %v2619_v14  ;;  %v2582_v24 = vld [vmem:[#allocation15] sm:$0xff]  ;;  %v2491_v14 = vadd.f32 %v6153_v16, %v2381_v0  ;;  %v3062_v52 = vld [vmem:[#allocation15 + $0x5f0] sm:$0xff]  ;;  %v3045_v0 = vld [vmem:[#allocation15 + $0x568] sm:$0xff] }
 0x315   : > { %4646 = vmatprep.subr.mxu0 %v2602_v62  ;;  %4681 = vmatprep.subr.mxu1 %v2634_v19  ;;  %v2614_v62 = vld [vmem:[#allocation15 + $0x100] sm:$0xff]  ;;  %v2514_v19 = vmax.f32 %v2482_v4, 0.0 }
 0x316   : > { %4647 = vmatpush3.msra.mxu0 %v2586_v42  ;;  %4682 = vmatpush3.msra.mxu1 %v2618_v3  ;;  %v2493_v42 = vadd.f32 %v6155_v47, %v2383_v10  ;;  %v3031_v3 = vld [vmem:[#allocation15 + $0x4f8] sm:$0xff]  ;;  %v3012_v4 = vld [vmem:[#allocation15 + $0x460] sm:$0xff] }
 0x317   : > { %4648 = vmatprep.subr.mxu0 %v2601_v45  ;;  %4683 = vmatprep.subr.mxu1 %v2633_v48  ;;  %v2516_v45 = vmax.f32 %v2484_v6, 0.0  ;;  %v3047_v48 = vld [vmem:[#allocation15 + $0x578] sm:$0xff]  ;;  %v3044_v10 = vld [vmem:[#allocation15 + $0x560] sm:$0xff] }
 0x318   : > { %4649 = vmatpush3.msra.mxu0 %v2585_v31  ;;  %4684 = vmatpush3.msra.mxu1 %v2617_v54  ;;  %v2523_v31 = vmax.f32 %v2491_v14, 0.0  ;;  %v2525_v53 = vmax.f32 %v2493_v42, 0.0  ;;  %v3014_v54 = vld [vmem:[#allocation15 + $0x470] sm:$0xff]  ;;  %v3011_v6 = vld [vmem:[#allocation15 + $0x458] sm:$0xff]  ;;  %v3009_v42 = vld [vmem:[#allocation15 + $0x448] sm:$0xff] }
 0x319   : > { %4650 = vmatprep.subr.mxu0 %v2600_v58  ;;  %4685 = vmatprep.subr.mxu1 %v2632_v11  ;;  %v3046_v58 = vld [vmem:[#allocation15 + $0x570] sm:$0xff]  ;;  %v3061_v11 = vld [vmem:[#allocation15 + $0x5e8] sm:$0xff] }
 0x31a   : > { %4651 = vmatpush3.msra.mxu0 %v2584_v49  ;;  %4686 = vmatpush3.msra.mxu1 %v2616_v27  ;;  %v3013_v49 = vld [vmem:[#allocation15 + $0x468] sm:$0xff]  ;;  %v3028_v27 = vld [vmem:[#allocation15 + $0x4e0] sm:$0xff]  ;;  %v3042_v14 = vld [vmem:[#allocation15 + $0x550] sm:$0xff] }
 0x31b   : > { %4652 = vmatprep.subr.mxu0 %v2599_v46  ;;  %4687 = vmatprep.subr.mxu1 %v2631_v33  ;;  %v3060_v46 = vld [vmem:[#allocation15 + $0x5e0] sm:$0xff]  ;;  %v3027_v33 = vld [vmem:[#allocation15 + $0x4d8] sm:$0xff] }
 0x31c   : > { %4653 = vmatpush3.msra.mxu0 %v2583_v50  ;;  %4688 = vmatpush3.msra.mxu1 %v2615_v56  ;;  %v3059_v50 = vld [vmem:[#allocation15 + $0x5d8] sm:$0xff] }
 0x31d   : > { %4654 = vmatprep.subr.mxu0 %v2598_v1  ;;  %4689 = vmatprep.subr.mxu1 %v2630_v22  ;;  %v3043_v56 = vld [vmem:[#allocation15 + $0x558] sm:$0xff]  ;;  %v3026_v1 = vld [vmem:[#allocation15 + $0x4d0] sm:$0xff] }
 0x31e   : > { %4655 = vmatpush3.msra.mxu0 %v2582_v24  ;;  %4690 = vmatpush3.msra.mxu1 %v2614_v62  ;;  %v3058_v22 = vld [vmem:[#allocation15 + $0x5d0] sm:$0xff]  ;;  %v3025_v62 = vld [vmem:[#allocation15 + $0x4c8] sm:$0xff] }
 0x31f   : > { %2920 = vmatmul.mubr.f32.vlgmr.msra.gmra.mxu0 %v2514_v19  ;;  %2990 = vmatmul.mubr.f32.vlgmr.msra.gmra.mxu1 %v2516_v45  ;;  %v3010_v24 = vld [vmem:[#allocation15 + $0x450] sm:$0xff]  ;;  %v3057_v19 = vld [vmem:[#allocation15 + $0x5c8] sm:$0xff]  ;;  %v3024_v45 = vld [vmem:[#allocation15 + $0x4c0] sm:$0xff] }
 0x320   : > { %4694 = vmatprep.subr.mxu0 %v3031_v3  ;;  %4729 = vmatprep.subr.mxu1 %v3063_v43  ;;  %v3041_v3 = vld [vmem:[#allocation15 + $0x548] sm:$0xff]  ;;  %v3056_v43 = vld [vmem:[#allocation15 + $0x5c0] sm:$0xff] }
 0x321   : > { %4695 = vmatpush3.msra.mxu0 %v3015_v30  ;;  %3128 = vmatprep.mubr.f32.mxu0 %v2523_v31  ;;  %v3008_v30 = vld [vmem:[#allocation15 + $0x440] sm:$0xff]  ;;  %v3023_v31 = vld [vmem:[#allocation15 + $0x4b8] sm:$0xff] }
 0x322   : > { %4730 = vmatpush3.msra.mxu1 %v3047_v48  ;;  %3198 = vmatprep.mubr.f32.mxu1 %v2525_v53  ;;  %v3040_v48 = vld [vmem:[#allocation15 + $0x540] sm:$0xff]  ;;  %v3007_v53 = vld [vmem:[#allocation15 + $0x438] sm:$0xff] }
 0x323   : > { %4696 = vmatprep.subr.mxu0 %v3030_v51  ;;  %4731 = vmatprep.subr.mxu1 %v3062_v52  ;;  %v3055_v51 = vld [vmem:[#allocation15 + $0x5b8] sm:$0xff] }
 0x324   : > { %4697 = vmatpush3.msra.mxu0 %v3014_v54  ;;  %4732 = vmatpush3.msra.mxu1 %v3046_v58  ;;  %v3039_v52 = vld [vmem:[#allocation15 + $0x538] sm:$0xff]  ;;  %v3022_v54 = vld [vmem:[#allocation15 + $0x4b0] sm:$0xff] }
 0x325   : > { %4698 = vmatprep.subr.mxu0 %v3029_v57  ;;  %4733 = vmatprep.subr.mxu1 %v3061_v11  ;;  %v3054_v58 = vld [vmem:[#allocation15 + $0x5b0] sm:$0xff] }
 0x326   : > { %4699 = vmatpush3.msra.mxu0 %v3013_v49  ;;  %4734 = vmatpush3.msra.mxu1 %v3045_v0  ;;  %v3006_v57 = vld [vmem:[#allocation15 + $0x430] sm:$0xff]  ;;  %v3021_v49 = vld [vmem:[#allocation15 + $0x4a8] sm:$0xff]  ;;  %v6181_v0 = vpop.f32.mrf.mxu0 }
 0x327   : > { %4700 = vmatprep.subr.mxu0 %v3028_v27  ;;  %4735 = vmatprep.subr.mxu1 %v3060_v46  ;;  %v3038_v11 = vld [vmem:[#allocation15 + $0x530] sm:$0xff]  ;;  %v3053_v27 = vld [vmem:[#allocation15 + $0x5a8] sm:$0xff] }
 0x328   : > { %4701 = vmatpush3.msra.mxu0 %v3012_v4  ;;  %4736 = vmatpush3.msra.mxu1 %v3044_v10  ;;  %v3005_v46 = vld [vmem:[#allocation15 + $0x428] sm:$0xff]  ;;  %v6183_v4 = vpop.f32.mrf.mxu1 }
 0x329   : > { %4702 = vmatprep.subr.mxu0 %v3027_v33  ;;  %4737 = vmatprep.subr.mxu1 %v3059_v50  ;;  %v3037_v10 = vld [vmem:[#allocation15 + $0x528] sm:$0xff]  ;;  %v3020_v33 = vld [vmem:[#allocation15 + $0x4a0] sm:$0xff]  ;;  %v1935_v50 = vadd.f32 %v6087_v2, %v6043_v61  ;;  %v1940_v61 = vadd.f32 %v6099_v21, %v6055_v28 }
 0x32a   : > { %4703 = vmatpush3.msra.mxu0 %v3011_v6  ;;  %4738 = vmatpush3.msra.mxu1 %v3043_v56  ;;  %v3052_v6 = vld [vmem:[#allocation15 + $0x5a0] sm:$0xff] }
 0x32b   : > { %4704 = vmatprep.subr.mxu0 %v3026_v1  ;;  %4739 = vmatprep.subr.mxu1 %v3058_v22  ;;  %v3004_v56 = vld [vmem:[#allocation15 + $0x420] sm:$0xff]  ;;  %v1937_v1 = vadd.f32 %v6089_v60, %v6045_v9  ;;  %v3035_v9 = vld [vmem:[#allocation15 + $0x518] sm:$0xff]  ;;  %v3018_v60 = vld [vmem:[#allocation15 + $0x490] sm:$0xff] }
 0x32c   : > { %4705 = vmatpush3.msra.mxu0 %v3010_v24  ;;  %4740 = vmatpush3.msra.mxu1 %v3042_v14  ;;  %v3036_v22 = vld [vmem:[#allocation15 + $0x520] sm:$0xff]  ;;  %v3019_v24 = vld [vmem:[#allocation15 + $0x498] sm:$0xff]  ;;  %v2380_v14 = vadd.f32 %v6165_v44, %v1935_v50  ;;  %v3050_v44 = vld [vmem:[#allocation15 + $0x590] sm:$0xff] }
 0x32d   : > { %4706 = vmatprep.subr.mxu0 %v3025_v62  ;;  %4741 = vmatprep.subr.mxu1 %v3057_v19  ;;  %v2244_v62 = vpop.f32.mrf.mxu0  ;;  %v3051_v19 = vld [vmem:[#allocation15 + $0x598] sm:$0xff]  ;;  %v2382_v2 = vadd.f32 %v6167_v25, %v1937_v1  ;;  %v3049_v25 = vld [vmem:[#allocation15 + $0x588] sm:$0xff] }
 0x32e   : > { %4707 = vmatpush3.msra.mxu0 %v3009_v42  ;;  %4742 = vmatpush3.msra.mxu1 %v3041_v3  ;;  %v3003_v42 = vld [vmem:[#allocation15 + $0x418] sm:$0xff]  ;;  %v2351_v3 = vpop.f32.mrf.mxu1  ;;  %v2490_v28 = vadd.f32 %v6147_v13, %v2380_v14  ;;  %v3256_v14 = vld [vmem:[#allocation15 + $0x770] sm:$0xff] }
 0x32f   : > { %4708 = vmatprep.subr.mxu0 %v3024_v45  ;;  %4743 = vmatprep.subr.mxu1 %v3056_v43  ;;  %v1942_v45 = vadd.f32 %v6101_v7, %v6057_v63  ;;  %v3002_v43 = vld [vmem:[#allocation15 + $0x410] sm:$0xff]  ;;  %v3033_v63 = vld [vmem:[#allocation15 + $0x508] sm:$0xff]  ;;  %v3016_v7 = vld [vmem:[#allocation15 + $0x480] sm:$0xff] }
 0x330   : > { %4709 = vmatpush3.msra.mxu0 %v3008_v30  ;;  %4744 = vmatpush3.msra.mxu1 %v3040_v48  ;;  %v2385_v30 = vadd.f32 %v2244_v62, %v1940_v61  ;;  %v3034_v48 = vld [vmem:[#allocation15 + $0x510] sm:$0xff]  ;;  %v3257_v50 = vld [vmem:[#allocation15 + $0x778] sm:$0xff]  ;;  %v3239_v62 = vld [vmem:[#allocation15 + $0x6e8] sm:$0xff] }
 0x331   : > { %4710 = vmatprep.subr.mxu0 %v3023_v31  ;;  %4745 = vmatprep.subr.mxu1 %v3055_v51  ;;  %v3017_v31 = vld [vmem:[#allocation15 + $0x488] sm:$0xff]  ;;  %v2387_v21 = vadd.f32 %v2351_v3, %v1942_v45  ;;  %v3270_v3 = vld [vmem:[#allocation15 + $0x7e0] sm:$0xff]  ;;  %v3237_v45 = vld [vmem:[#allocation15 + $0x6d8] sm:$0xff] }
 0x332   : > { %4711 = vmatpush3.msra.mxu0 %v3007_v53  ;;  %4746 = vmatpush3.msra.mxu1 %v3039_v52  ;;  %v3001_v51 = vld [vmem:[#allocation15 + $0x408] sm:$0xff]  ;;  %v2492_v53 = vadd.f32 %v6149_v8, %v2382_v2  ;;  %v3048_v52 = vld [vmem:[#allocation15 + $0x580] sm:$0xff] }
 0x333   : > { %4712 = vmatprep.subr.mxu0 %v3022_v54  ;;  %4747 = vmatprep.subr.mxu1 %v3054_v58  ;;  %v3000_v54 = vld [vmem:[#allocation15 + $0x400] sm:$0xff]  ;;  %v2495_v58 = vadd.f32 %v6153_v16, %v2385_v30  ;;  %v3255_v61 = vld [vmem:[#allocation15 + $0x768] sm:$0xff]  ;;  %v3253_v30 = vld [vmem:[#allocation15 + $0x758] sm:$0xff] }
 0x334   : > { %4713 = vmatpush3.msra.mxu0 %v3006_v57  ;;  %4748 = vmatpush3.msra.mxu1 %v3038_v11  ;;  %v3032_v57 = vld [vmem:[#allocation15 + $0x500] sm:$0xff]  ;;  %v2522_v11 = vmax.f32 %v2490_v28, 0.0  ;;  %v3220_v28 = vld [vmem:[#allocation15 + $0x650] sm:$0xff] }
 0x335   : > { %4714 = vmatprep.subr.mxu0 %v3021_v49  ;;  %4749 = vmatprep.subr.mxu1 %v3053_v27  ;;  %v2497_v49 = vadd.f32 %v6155_v47, %v2387_v21  ;;  %v3241_v27 = vld [vmem:[#allocation15 + $0x6f8] sm:$0xff]  ;;  %v3238_v2 = vld [vmem:[#allocation15 + $0x6e0] sm:$0xff]  ;;  %v3252_v21 = vld [vmem:[#allocation15 + $0x750] sm:$0xff] }
 0x336   : > { %4715 = vmatpush3.msra.mxu0 %v3005_v46  ;;  %4750 = vmatpush3.msra.mxu1 %v3037_v10  ;;  %v2524_v46 = vmax.f32 %v2492_v53, 0.0  ;;  %v3273_v10 = vld [vmem:[#allocation15 + $0x7f8] sm:$0xff]  ;;  %v3219_v53 = vld [vmem:[#allocation15 + $0x648] sm:$0xff] }
 0x337   : > { %4716 = vmatprep.subr.mxu0 %v3020_v33  ;;  %4751 = vmatprep.subr.mxu1 %v3052_v6  ;;  %v3225_v33 = vld [vmem:[#allocation15 + $0x678] sm:$0xff]  ;;  %v2527_v6 = vmax.f32 %v2495_v58, 0.0  ;;  %v2529_v1 = vmax.f32 %v2497_v49, 0.0  ;;  %v3250_v58 = vld [vmem:[#allocation15 + $0x740] sm:$0xff] }
 0x338   : > { %4717 = vmatpush3.msra.mxu0 %v3004_v56  ;;  %4752 = vmatpush3.msra.mxu1 %v3036_v22  ;;  %v3240_v56 = vld [vmem:[#allocation15 + $0x6f0] sm:$0xff]  ;;  %v3217_v49 = vld [vmem:[#allocation15 + $0x638] sm:$0xff] }
 0x339   : > { %4718 = vmatprep.subr.mxu0 %v3019_v24  ;;  %4753 = vmatprep.subr.mxu1 %v3051_v19  ;;  %v3272_v22 = vld [vmem:[#allocation15 + $0x7f0] sm:$0xff]  ;;  %v3271_v19 = vld [vmem:[#allocation15 + $0x7e8] sm:$0xff] }
 0x33a   : > { %4719 = vmatpush3.msra.mxu0 %v3003_v42  ;;  %4754 = vmatpush3.msra.mxu1 %v3035_v9  ;;  %v3224_v24 = vld [vmem:[#allocation15 + $0x670] sm:$0xff]  ;;  %v3223_v42 = vld [vmem:[#allocation15 + $0x668] sm:$0xff]  ;;  %v3222_v9 = vld [vmem:[#allocation15 + $0x660] sm:$0xff] }
 0x33b   : > { %4720 = vmatprep.subr.mxu0 %v3018_v60  ;;  %4755 = vmatprep.subr.mxu1 %v3050_v44  ;;  %v3254_v60 = vld [vmem:[#allocation15 + $0x760] sm:$0xff]  ;;  %v3269_v44 = vld [vmem:[#allocation15 + $0x7d8] sm:$0xff] }
 0x33c   : > { %4721 = vmatpush3.msra.mxu0 %v3002_v43  ;;  %4756 = vmatpush3.msra.mxu1 %v3034_v48  ;;  %v3221_v43 = vld [vmem:[#allocation15 + $0x658] sm:$0xff]  ;;  %v3236_v48 = vld [vmem:[#allocation15 + $0x6d0] sm:$0xff] }
 0x33d   : > { %4722 = vmatprep.subr.mxu0 %v3017_v31  ;;  %4757 = vmatprep.subr.mxu1 %v3049_v25  ;;  %v3268_v31 = vld [vmem:[#allocation15 + $0x7d0] sm:$0xff]  ;;  %v3235_v25 = vld [vmem:[#allocation15 + $0x6c8] sm:$0xff] }
 0x33e   : > { %4723 = vmatpush3.msra.mxu0 %v3001_v51  ;;  %4758 = vmatpush3.msra.mxu1 %v3033_v63  ;;  %v3267_v51 = vld [vmem:[#allocation15 + $0x7c8] sm:$0xff] }
 0x33f   : > { %4724 = vmatprep.subr.mxu0 %v3016_v7  ;;  %4759 = vmatprep.subr.mxu1 %v3048_v52  ;;  %v3251_v63 = vld [vmem:[#allocation15 + $0x748] sm:$0xff]  ;;  %v3234_v7 = vld [vmem:[#allocation15 + $0x6c0] sm:$0xff] }
 0x340   : > { %4725 = vmatpush3.msra.mxu0 %v3000_v54  ;;  %4760 = vmatpush3.msra.mxu1 %v3032_v57  ;;  %v3266_v52 = vld [vmem:[#allocation15 + $0x7c0] sm:$0xff]  ;;  %v3233_v57 = vld [vmem:[#allocation15 + $0x6b8] sm:$0xff] }
 0x341   : > { %3129 = vmatmul.mubr.f32.vlgmr.msra.gmra.mxu0 %v2522_v11  ;;  %3199 = vmatmul.mubr.f32.vlgmr.msra.gmra.mxu1 %v2524_v46  ;;  %v3218_v54 = vld [vmem:[#allocation15 + $0x640] sm:$0xff]  ;;  %v3265_v11 = vld [vmem:[#allocation15 + $0x7b8] sm:$0xff]  ;;  %v3232_v46 = vld [vmem:[#allocation15 + $0x6b0] sm:$0xff] }
 0x342   : > { %4764 = vmatprep.subr.mxu0 %v3241_v27  ;;  %4799 = vmatprep.subr.mxu1 %v3273_v10  ;;  %v3249_v27 = vld [vmem:[#allocation15 + $0x738] sm:$0xff]  ;;  %v3264_v10 = vld [vmem:[#allocation15 + $0x7b0] sm:$0xff] }
 0x343   : > { %4765 = vmatpush3.msra.mxu0 %v3225_v33  ;;  %3338 = vmatprep.mubr.f32.mxu0 %v2527_v6  ;;  %v3216_v33 = vld [vmem:[#allocation15 + $0x630] sm:$0xff]  ;;  %v3231_v6 = vld [vmem:[#allocation15 + $0x6a8] sm:$0xff] }
 0x344   : > { %4800 = vmatpush3.msra.mxu1 %v3257_v50  ;;  %3408 = vmatprep.mubr.f32.mxu1 %v2529_v1  ;;  %v3248_v50 = vld [vmem:[#allocation15 + $0x730] sm:$0xff]  ;;  %v3263_v1 = vld [vmem:[#allocation15 + $0x7a8] sm:$0xff] }
 0x345   : > { %4766 = vmatprep.subr.mxu0 %v3240_v56  ;;  %4801 = vmatprep.subr.mxu1 %v3272_v22  ;;  %v6199_v56 = vpop.f32.mrf.mxu0  ;;  %v3215_v22 = vld [vmem:[#allocation15 + $0x628] sm:$0xff] }
 0x346   : > { %4767 = vmatpush3.msra.mxu0 %v3224_v24  ;;  %4802 = vmatpush3.msra.mxu1 %v3256_v14  ;;  %v6201_v24 = vpop.f32.mrf.mxu1  ;;  %v3247_v14 = vld [vmem:[#allocation15 + $0x728] sm:$0xff] }
 0x347   : > { %4768 = vmatprep.subr.mxu0 %v3239_v62  ;;  %4803 = vmatprep.subr.mxu1 %v3271_v19  ;;  %v3230_v62 = vld [vmem:[#allocation15 + $0x6a0] sm:$0xff]  ;;  %v1939_v19 = vadd.f32 %v6095_v18, %v6051_v23  ;;  %v1944_v23 = vadd.f32 %v6107_v26, %v6063_v32 }
 0x348   : > { %4769 = vmatpush3.msra.mxu0 %v3223_v42  ;;  %4804 = vmatpush3.msra.mxu1 %v3255_v61  ;;  %v3262_v42 = vld [vmem:[#allocation15 + $0x7a0] sm:$0xff] }
 0x349   : > { %4770 = vmatprep.subr.mxu0 %v3238_v2  ;;  %4805 = vmatprep.subr.mxu1 %v3270_v3  ;;  %v3214_v61 = vld [vmem:[#allocation15 + $0x620] sm:$0xff]  ;;  %v1941_v2 = vadd.f32 %v6097_v20, %v6053_v59  ;;  %v3245_v59 = vld [vmem:[#allocation15 + $0x718] sm:$0xff]  ;;  %v3228_v20 = vld [vmem:[#allocation15 + $0x690] sm:$0xff] }
 0x34a   : > { %4771 = vmatpush3.msra.mxu0 %v3222_v9  ;;  %4806 = vmatpush3.msra.mxu1 %v3254_v60  ;;  %v3246_v3 = vld [vmem:[#allocation15 + $0x720] sm:$0xff]  ;;  %v3229_v9 = vld [vmem:[#allocation15 + $0x698] sm:$0xff]  ;;  %v2384_v60 = vadd.f32 %v6181_v0, %v1939_v19  ;;  %v3260_v0 = vld [vmem:[#allocation15 + $0x790] sm:$0xff] }
 0x34b   : > { %4772 = vmatprep.subr.mxu0 %v3237_v45  ;;  %4807 = vmatprep.subr.mxu1 %v3269_v44  ;;  %v2250_v45 = vpop.f32.mrf.mxu0  ;;  %v3261_v44 = vld [vmem:[#allocation15 + $0x798] sm:$0xff]  ;;  %v2386_v18 = vadd.f32 %v6183_v4, %v1941_v2  ;;  %v3259_v4 = vld [vmem:[#allocation15 + $0x788] sm:$0xff]  ;;  %v3448_v2 = vld [vmem:[#allocation15 + $0x8e0] sm:$0xff] }
 0x34c   : > { %4773 = vmatpush3.msra.mxu0 %v3221_v43  ;;  %4808 = vmatpush3.msra.mxu1 %v3253_v30  ;;  %v3213_v43 = vld [vmem:[#allocation15 + $0x618] sm:$0xff]  ;;  %v2357_v30 = vpop.f32.mrf.mxu1  ;;  %v2494_v32 = vadd.f32 %v6147_v13, %v2384_v60  ;;  %v3481_v19 = vld [vmem:[#allocation15 + $0x9e8] sm:$0xff]  ;;  %v3464_v60 = vld [vmem:[#allocation15 + $0x960] sm:$0xff] }
 0x34d   : > { %4774 = vmatprep.subr.mxu0 %v3236_v48  ;;  %4809 = vmatprep.subr.mxu1 %v3268_v31  ;;  %v1946_v48 = vadd.f32 %v6109_v37, %v6065_v35  ;;  %v3212_v31 = vld [vmem:[#allocation15 + $0x610] sm:$0xff]  ;;  %v3243_v35 = vld [vmem:[#allocation15 + $0x708] sm:$0xff]  ;;  %v3226_v37 = vld [vmem:[#allocation15 + $0x680] sm:$0xff] }
 0x34e   : > { %4775 = vmatpush3.msra.mxu0 %v3220_v28  ;;  %4810 = vmatpush3.msra.mxu1 %v3252_v21  ;;  %v2389_v28 = vadd.f32 %v2250_v45, %v1944_v23  ;;  %v3244_v21 = vld [vmem:[#allocation15 + $0x710] sm:$0xff]  ;;  %v3447_v45 = vld [vmem:[#allocation15 + $0x8d8] sm:$0xff] }
 0x34f   : > { %4776 = vmatprep.subr.mxu0 %v3235_v25  ;;  %4811 = vmatprep.subr.mxu1 %v3267_v51  ;;  %v3227_v25 = vld [vmem:[#allocation15 + $0x688] sm:$0xff]  ;;  %v2391_v26 = vadd.f32 %v2357_v30, %v1946_v48  ;;  %v3463_v23 = vld [vmem:[#allocation15 + $0x958] sm:$0xff]  ;;  %v3478_v30 = vld [vmem:[#allocation15 + $0x9d0] sm:$0xff] }
 0x350   : > { %4777 = vmatpush3.msra.mxu0 %v3219_v53  ;;  %4812 = vmatpush3.msra.mxu1 %v3251_v63  ;;  %v3211_v51 = vld [vmem:[#allocation15 + $0x608] sm:$0xff]  ;;  %v2496_v53 = vadd.f32 %v6149_v8, %v2386_v18  ;;  %v3258_v63 = vld [vmem:[#allocation15 + $0x780] sm:$0xff]  ;;  %v3446_v18 = vld [vmem:[#allocation15 + $0x8d0] sm:$0xff] }
 0x351   : > { %4778 = vmatprep.subr.mxu0 %v3234_v7  ;;  %4813 = vmatprep.subr.mxu1 %v3266_v52  ;;  %v3210_v7 = vld [vmem:[#allocation15 + $0x600] sm:$0xff]  ;;  %v2499_v52 = vadd.f32 %v6153_v16, %v2389_v28  ;;  %v3445_v48 = vld [vmem:[#allocation15 + $0x8c8] sm:$0xff] }
 0x352   : > { %4779 = vmatpush3.msra.mxu0 %v3218_v54  ;;  %4814 = vmatpush3.msra.mxu1 %v3250_v58  ;;  %v3242_v54 = vld [vmem:[#allocation15 + $0x700] sm:$0xff]  ;;  %v2526_v58 = vmax.f32 %v2494_v32, 0.0  ;;  %v3461_v28 = vld [vmem:[#allocation15 + $0x948] sm:$0xff] }
 0x353   : > { %4780 = vmatprep.subr.mxu0 %v3233_v57  ;;  %4815 = vmatprep.subr.mxu1 %v3265_v11  ;;  %v2501_v57 = vadd.f32 %v6155_v47, %v2391_v26  ;;  %v3451_v11 = vld [vmem:[#allocation15 + $0x8f8] sm:$0xff]  ;;  %v3428_v32 = vld [vmem:[#allocation15 + $0x840] sm:$0xff] }
 0x354   : > { %4781 = vmatpush3.msra.mxu0 %v3217_v49  ;;  %4816 = vmatpush3.msra.mxu1 %v3249_v27  ;;  %v2528_v49 = vmax.f32 %v2496_v53, 0.0  ;;  %v3483_v27 = vld [vmem:[#allocation15 + $0x9f8] sm:$0xff]  ;;  %v3460_v26 = vld [vmem:[#allocation15 + $0x940] sm:$0xff] }
 0x355   : > { %4782 = vmatprep.subr.mxu0 %v3232_v46  ;;  %4817 = vmatprep.subr.mxu1 %v3264_v10  ;;  %v3435_v46 = vld [vmem:[#allocation15 + $0x878] sm:$0xff] }
 0x356   : > { %4783 = vmatpush3.msra.mxu0 %v3216_v33  ;;  %4818 = vmatpush3.msra.mxu1 %v3248_v50  ;;  %v3467_v10 = vld [vmem:[#allocation15 + $0x978] sm:$0xff]  ;;  %v2531_v33 = vmax.f32 %v2499_v52, 0.0  ;;  %v3450_v50 = vld [vmem:[#allocation15 + $0x8f0] sm:$0xff] }
 0x357   : > { %4784 = vmatprep.subr.mxu0 %v3231_v6  ;;  %4819 = vmatprep.subr.mxu1 %v3263_v1  ;;  %v2533_v6 = vmax.f32 %v2501_v57, 0.0  ;;  %v3482_v1 = vld [vmem:[#allocation15 + $0x9f0] sm:$0xff]  ;;  %v3427_v53 = vld [vmem:[#allocation15 + $0x838] sm:$0xff]  ;;  %v3473_v57 = vld [vmem:[#allocation15 + $0x9a8] sm:$0xff] }
 0x358   : > { %4785 = vmatpush3.msra.mxu0 %v3215_v22  ;;  %4820 = vmatpush3.msra.mxu1 %v3247_v14  ;;  %v3434_v22 = vld [vmem:[#allocation15 + $0x870] sm:$0xff] }
 0x359   : > { %4786 = vmatprep.subr.mxu0 %v3230_v62  ;;  %4821 = vmatprep.subr.mxu1 %v3262_v42  ;;  %v3466_v14 = vld [vmem:[#allocation15 + $0x970] sm:$0xff]  ;;  %v3449_v62 = vld [vmem:[#allocation15 + $0x8e8] sm:$0xff] }
 0x35a   : > { %4787 = vmatpush3.msra.mxu0 %v3214_v61  ;;  %4822 = vmatpush3.msra.mxu1 %v3246_v3  ;;  %v3433_v42 = vld [vmem:[#allocation15 + $0x868] sm:$0xff]  ;;  %v3480_v3 = vld [vmem:[#allocation15 + $0x9e0] sm:$0xff]  ;;  %v3458_v52 = vld [vmem:[#allocation15 + $0x930] sm:$0xff] }
 0x35b   : > { %4788 = vmatprep.subr.mxu0 %v3229_v9  ;;  %4823 = vmatprep.subr.mxu1 %v3261_v44  ;;  %v3465_v61 = vld [vmem:[#allocation15 + $0x968] sm:$0xff]  ;;  %v3432_v9 = vld [vmem:[#allocation15 + $0x860] sm:$0xff]  ;;  %v3479_v44 = vld [vmem:[#allocation15 + $0x9d8] sm:$0xff] }
 0x35c   : > { %4789 = vmatpush3.msra.mxu0 %v3213_v43  ;;  %4824 = vmatpush3.msra.mxu1 %v3245_v59  ;;  %v3431_v43 = vld [vmem:[#allocation15 + $0x858] sm:$0xff]  ;;  %v3430_v59 = vld [vmem:[#allocation15 + $0x850] sm:$0xff] }
 0x35d   : > { %4790 = vmatprep.subr.mxu0 %v3228_v20  ;;  %4825 = vmatprep.subr.mxu1 %v3260_v0  ;;  %v3462_v20 = vld [vmem:[#allocation15 + $0x950] sm:$0xff]  ;;  %v3477_v0 = vld [vmem:[#allocation15 + $0x9c8] sm:$0xff] }
 0x35e   : > { %4791 = vmatpush3.msra.mxu0 %v3212_v31  ;;  %4826 = vmatpush3.msra.mxu1 %v3244_v21  ;;  %v3429_v31 = vld [vmem:[#allocation15 + $0x848] sm:$0xff]  ;;  %v3444_v21 = vld [vmem:[#allocation15 + $0x8c0] sm:$0xff] }
 0x35f   : > { %4792 = vmatprep.subr.mxu0 %v3227_v25  ;;  %4827 = vmatprep.subr.mxu1 %v3259_v4  ;;  %v3476_v25 = vld [vmem:[#allocation15 + $0x9c0] sm:$0xff]  ;;  %v3443_v4 = vld [vmem:[#allocation15 + $0x8b8] sm:$0xff] }
 0x360   : > { %4793 = vmatpush3.msra.mxu0 %v3211_v51  ;;  %4828 = vmatpush3.msra.mxu1 %v3243_v35  ;;  %v3475_v51 = vld [vmem:[#allocation15 + $0x9b8] sm:$0xff] }
 0x361   : > { %4794 = vmatprep.subr.mxu0 %v3226_v37  ;;  %4829 = vmatprep.subr.mxu1 %v3258_v63  ;;  %v3459_v35 = vld [vmem:[#allocation15 + $0x938] sm:$0xff]  ;;  %v3442_v37 = vld [vmem:[#allocation15 + $0x8b0] sm:$0xff] }
 0x362   : > { %4795 = vmatpush3.msra.mxu0 %v3210_v7  ;;  %4830 = vmatpush3.msra.mxu1 %v3242_v54  ;;  %v3474_v63 = vld [vmem:[#allocation15 + $0x9b0] sm:$0xff]  ;;  %v3441_v54 = vld [vmem:[#allocation15 + $0x8a8] sm:$0xff] }
 0x363   : > { %3339 = vmatmul.mubr.f32.vlgmr.msra.gmra.mxu0 %v2526_v58  ;;  %3409 = vmatmul.mubr.f32.vlgmr.msra.gmra.mxu1 %v2528_v49  ;;  %v3426_v7 = vld [vmem:[#allocation15 + $0x830] sm:$0xff]  ;;  %v6217_v58 = vpop.f32.mrf.mxu0  ;;  %v6219_v49 = vpop.f32.mrf.mxu1 }
 0x364   : > { %4834 = vmatprep.subr.mxu0 %v3451_v11  ;;  %4869 = vmatprep.subr.mxu1 %v3483_v27  ;;  %v3425_v11 = vld [vmem:[#allocation15 + $0x828] sm:$0xff] }
 0x365   : > { %4835 = vmatpush3.msra.mxu0 %v3435_v46  ;;  %3548 = vmatprep.mubr.f32.mxu0 %v2531_v33  ;;  %v3457_v27 = vld [vmem:[#allocation15 + $0x928] sm:$0xff]  ;;  %v3440_v46 = vld [vmem:[#allocation15 + $0x8a0] sm:$0xff] }
 0x366   : > { %4870 = vmatpush3.msra.mxu1 %v3467_v10  ;;  %3618 = vmatprep.mubr.f32.mxu1 %v2533_v6  ;;  %v1943_v10 = vadd.f32 %v6103_v55, %v6059_v29  ;;  %v3472_v33 = vld [vmem:[#allocation15 + $0x9a0] sm:$0xff]  ;;  %v1945_v6 = vadd.f32 %v6105_v12, %v6061_v5  ;;  %v1948_v29 = vadd.f32 %v6115_v34, %v6071_v39  ;;  %v3455_v5 = vld [vmem:[#allocation15 + $0x918] sm:$0xff]  ;;  %v3438_v12 = vld [vmem:[#allocation15 + $0x890] sm:$0xff] }
 0x367   : > { %4836 = vmatprep.subr.mxu0 %v3450_v50  ;;  %4871 = vmatprep.subr.mxu1 %v3482_v1  ;;  %v3424_v50 = vld [vmem:[#allocation15 + $0x820] sm:$0xff] }
 0x368   : > { %4837 = vmatpush3.msra.mxu0 %v3434_v22  ;;  %4872 = vmatpush3.msra.mxu1 %v3466_v14  ;;  %v3456_v1 = vld [vmem:[#allocation15 + $0x920] sm:$0xff]  ;;  %v3439_v22 = vld [vmem:[#allocation15 + $0x898] sm:$0xff]  ;;  %v2388_v14 = vadd.f32 %v6199_v56, %v1943_v10  ;;  %v2390_v55 = vadd.f32 %v6201_v24, %v1945_v6  ;;  %v3470_v56 = vld [vmem:[#allocation15 + $0x990] sm:$0xff] }
 0x369   : > { %4838 = vmatprep.subr.mxu0 %v3449_v62  ;;  %4873 = vmatprep.subr.mxu1 %v3481_v19  ;;  %v2256_v62 = vpop.f32.mrf.mxu0  ;;  %v3471_v19 = vld [vmem:[#allocation15 + $0x998] sm:$0xff]  ;;  %v3469_v24 = vld [vmem:[#allocation15 + $0x988] sm:$0xff]  ;;  %v3656_v6 = vld [vmem:[#allocation15 + $0xad0] sm:$0xff] }
 0x36a   : > { %4839 = vmatpush3.msra.mxu0 %v3433_v42  ;;  %4874 = vmatpush3.msra.mxu1 %v3465_v61  ;;  %v3423_v42 = vld [vmem:[#allocation15 + $0x818] sm:$0xff]  ;;  %v2363_v61 = vpop.f32.mrf.mxu1  ;;  %v2498_v39 = vadd.f32 %v6147_v13, %v2388_v14  ;;  %v3672_v14 = vld [vmem:[#allocation15 + $0xb50] sm:$0xff] }
 0x36b   : > { %4840 = vmatprep.subr.mxu0 %v3448_v2  ;;  %4875 = vmatprep.subr.mxu1 %v3480_v3  ;;  %v1950_v2 = vadd.f32 %v6117_v41, %v6073_v40  ;;  %v3422_v3 = vld [vmem:[#allocation15 + $0x810] sm:$0xff]  ;;  %v3453_v40 = vld [vmem:[#allocation15 + $0x908] sm:$0xff]  ;;  %v3436_v41 = vld [vmem:[#allocation15 + $0x880] sm:$0xff] }
 0x36c   : > { %4841 = vmatpush3.msra.mxu0 %v3432_v9  ;;  %4876 = vmatpush3.msra.mxu1 %v3464_v60  ;;  %v2393_v9 = vadd.f32 %v2256_v62, %v1948_v29  ;;  %v3454_v60 = vld [vmem:[#allocation15 + $0x910] sm:$0xff]  ;;  %v3689_v10 = vld [vmem:[#allocation15 + $0xbd8] sm:$0xff]  ;;  %v3655_v62 = vld [vmem:[#allocation15 + $0xac8] sm:$0xff] }
 0x36d   : > { %4842 = vmatprep.subr.mxu0 %v3447_v45  ;;  %4877 = vmatprep.subr.mxu1 %v3479_v44  ;;  %v3437_v45 = vld [vmem:[#allocation15 + $0x888] sm:$0xff]  ;;  %v2395_v34 = vadd.f32 %v2363_v61, %v1950_v2  ;;  %v3686_v61 = vld [vmem:[#allocation15 + $0xbc0] sm:$0xff]  ;;  %v3653_v2 = vld [vmem:[#allocation15 + $0xab8] sm:$0xff] }
 0x36e   : > { %4843 = vmatpush3.msra.mxu0 %v3431_v43  ;;  %4878 = vmatpush3.msra.mxu1 %v3463_v23  ;;  %v3421_v44 = vld [vmem:[#allocation15 + $0x808] sm:$0xff]  ;;  %v2500_v43 = vadd.f32 %v6149_v8, %v2390_v55  ;;  %v3468_v23 = vld [vmem:[#allocation15 + $0x980] sm:$0xff] }
 0x36f   : > { %4844 = vmatprep.subr.mxu0 %v3446_v18  ;;  %4879 = vmatprep.subr.mxu1 %v3478_v30  ;;  %v3420_v18 = vld [vmem:[#allocation15 + $0x800] sm:$0xff]  ;;  %v2503_v30 = vadd.f32 %v6153_v16, %v2393_v9  ;;  %v3671_v29 = vld [vmem:[#allocation15 + $0xb48] sm:$0xff]  ;;  %v3669_v9 = vld [vmem:[#allocation15 + $0xb38] sm:$0xff] }
 0x370   : > { %4845 = vmatpush3.msra.mxu0 %v3430_v59  ;;  %4880 = vmatpush3.msra.mxu1 %v3462_v20  ;;  %v3452_v59 = vld [vmem:[#allocation15 + $0x900] sm:$0xff]  ;;  %v2530_v20 = vmax.f32 %v2498_v39, 0.0  ;;  %v3636_v39 = vld [vmem:[#allocation15 + $0xa30] sm:$0xff] }
 0x371   : > { %4846 = vmatprep.subr.mxu0 %v3445_v48  ;;  %4881 = vmatprep.subr.mxu1 %v3477_v0  ;;  %v2505_v48 = vadd.f32 %v6155_v47, %v2395_v34  ;;  %v3661_v0 = vld [vmem:[#allocation15 + $0xaf8] sm:$0xff]  ;;  %v3654_v55 = vld [vmem:[#allocation15 + $0xac0] sm:$0xff]  ;;  %v3668_v34 = vld [vmem:[#allocation15 + $0xb30] sm:$0xff] }
 0x372   : > { %4847 = vmatpush3.msra.mxu0 %v3429_v31  ;;  %4882 = vmatpush3.msra.mxu1 %v3461_v28  ;;  %v2532_v31 = vmax.f32 %v2500_v43, 0.0  ;;  %v3693_v28 = vld [vmem:[#allocation15 + $0xbf8] sm:$0xff]  ;;  %v3683_v43 = vld [vmem:[#allocation15 + $0xba8] sm:$0xff] }
 0x373   : > { %4848 = vmatprep.subr.mxu0 %v3444_v21  ;;  %4883 = vmatprep.subr.mxu1 %v3476_v25  ;;  %v3645_v21 = vld [vmem:[#allocation15 + $0xa78] sm:$0xff] }
 0x374   : > { %4849 = vmatpush3.msra.mxu0 %v3428_v32  ;;  %4884 = vmatpush3.msra.mxu1 %v3460_v26  ;;  %v3677_v25 = vld [vmem:[#allocation15 + $0xb78] sm:$0xff]  ;;  %v2535_v32 = vmax.f32 %v2503_v30, 0.0  ;;  %v3660_v26 = vld [vmem:[#allocation15 + $0xaf0] sm:$0xff]  ;;  %v1947_v30 = vadd.f32 %v6111_v17, %v6067_v36  ;;  %v6352_v36 = vld [vmem:[#allocation34_spill] sm:$0xff] }
 0x375   : > { %4850 = vmatprep.subr.mxu0 %v3443_v4  ;;  %4885 = vmatprep.subr.mxu1 %v3475_v51  ;;  %v2537_v4 = vmax.f32 %v2505_v48, 0.0  ;;  %v3692_v51 = vld [vmem:[#allocation15 + $0xbf0] sm:$0xff]  ;;  %v1949_v48 = vadd.f32 %v6113_v15, %v6069_v38  ;;  %v3665_v38 = vld [vmem:[#allocation15 + $0xb18] sm:$0xff] }
 0x376   : > { %4851 = vmatpush3.msra.mxu0 %v3427_v53  ;;  %4886 = vmatpush3.msra.mxu1 %v3459_v35  ;;  %v3644_v53 = vld [vmem:[#allocation15 + $0xa70] sm:$0xff] }
 0x377   : > { %4852 = vmatprep.subr.mxu0 %v3442_v37  ;;  %4887 = vmatprep.subr.mxu1 %v3474_v63  ;;  %v3676_v35 = vld [vmem:[#allocation15 + $0xb70] sm:$0xff]  ;;  %v3659_v37 = vld [vmem:[#allocation15 + $0xae8] sm:$0xff] }
 0x378   : > { %4853 = vmatpush3.msra.mxu0 %v3426_v7  ;;  %4888 = vmatpush3.msra.mxu1 %v3458_v52  ;;  %v3691_v63 = vld [vmem:[#allocation15 + $0xbe8] sm:$0xff]  ;;  %v3648_v15 = vld [vmem:[#allocation15 + $0xa90] sm:$0xff] }
 0x379   : > { %4854 = vmatprep.subr.mxu0 %v3441_v54  ;;  %4889 = vmatprep.subr.mxu1 %v3473_v57  ;;  %v3643_v7 = vld [vmem:[#allocation15 + $0xa68] sm:$0xff]  ;;  %v3658_v54 = vld [vmem:[#allocation15 + $0xae0] sm:$0xff] }
 0x37a   : > { %4855 = vmatpush3.msra.mxu0 %v3425_v11  ;;  %4890 = vmatpush3.msra.mxu1 %v3457_v27  ;;  %v3675_v52 = vld [vmem:[#allocation15 + $0xb68] sm:$0xff]  ;;  %v3690_v57 = vld [vmem:[#allocation15 + $0xbe0] sm:$0xff] }
 0x37b   : > { %4856 = vmatprep.subr.mxu0 %v3440_v46  ;;  %4891 = vmatprep.subr.mxu1 %v3472_v33  ;;  %v3642_v11 = vld [vmem:[#allocation15 + $0xa60] sm:$0xff]  ;;  %v3657_v46 = vld [vmem:[#allocation15 + $0xad8] sm:$0xff] }
 0x37c   : > { %4857 = vmatpush3.msra.mxu0 %v3424_v50  ;;  %4892 = vmatpush3.msra.mxu1 %v3456_v1  ;;  %v3674_v27 = vld [vmem:[#allocation15 + $0xb60] sm:$0xff]  ;;  %v3641_v33 = vld [vmem:[#allocation15 + $0xa58] sm:$0xff]  ;;  %v3688_v1 = vld [vmem:[#allocation15 + $0xbd0] sm:$0xff] }
 0x37d   : > { %4858 = vmatprep.subr.mxu0 %v3439_v22  ;;  %4893 = vmatprep.subr.mxu1 %v3471_v19  ;;  %v3673_v50 = vld [vmem:[#allocation15 + $0xb58] sm:$0xff]  ;;  %v3640_v22 = vld [vmem:[#allocation15 + $0xa50] sm:$0xff]  ;;  %v3687_v19 = vld [vmem:[#allocation15 + $0xbc8] sm:$0xff] }
 0x37e   : > { %4859 = vmatpush3.msra.mxu0 %v3423_v42  ;;  %4894 = vmatpush3.msra.mxu1 %v3455_v5  ;;  %v3639_v42 = vld [vmem:[#allocation15 + $0xa48] sm:$0xff]  ;;  %v3638_v5 = vld [vmem:[#allocation15 + $0xa40] sm:$0xff] }
 0x37f   : > { %4860 = vmatprep.subr.mxu0 %v3438_v12  ;;  %4895 = vmatprep.subr.mxu1 %v3470_v56  ;;  %v3670_v12 = vld [vmem:[#allocation15 + $0xb40] sm:$0xff]  ;;  %v3685_v56 = vld [vmem:[#allocation15 + $0xbb8] sm:$0xff] }
 0x380   : > { %4861 = vmatpush3.msra.mxu0 %v3422_v3  ;;  %4896 = vmatpush3.msra.mxu1 %v3454_v60  ;;  %v3637_v3 = vld [vmem:[#allocation15 + $0xa38] sm:$0xff]  ;;  %v3652_v60 = vld [vmem:[#allocation15 + $0xab0] sm:$0xff] }
 0x381   : > { %4862 = vmatprep.subr.mxu0 %v3437_v45  ;;  %4897 = vmatprep.subr.mxu1 %v3469_v24  ;;  %v3684_v45 = vld [vmem:[#allocation15 + $0xbb0] sm:$0xff]  ;;  %v3651_v24 = vld [vmem:[#allocation15 + $0xaa8] sm:$0xff] }
 0x382   : > { %4863 = vmatpush3.msra.mxu0 %v3421_v44  ;;  %4898 = vmatpush3.msra.mxu1 %v3453_v40  ;;  %v6235_v44 = vpop.f32.mrf.mxu0  ;;  %v3635_v40 = vld [vmem:[#allocation15 + $0xa28] sm:$0xff] }
 0x383   : > { %4864 = vmatprep.subr.mxu0 %v3436_v41  ;;  %4899 = vmatprep.subr.mxu1 %v3468_v23  ;;  %v6237_v41 = vpop.f32.mrf.mxu1  ;;  %v3667_v23 = vld [vmem:[#allocation15 + $0xb28] sm:$0xff] }
 0x384   : > { %4865 = vmatpush3.msra.mxu0 %v3420_v18  ;;  %4900 = vmatpush3.msra.mxu1 %v3452_v59  ;;  %v3650_v18 = vld [vmem:[#allocation15 + $0xaa0] sm:$0xff] }
 0x385   : > { %3549 = vmatmul.mubr.f32.vlgmr.msra.gmra.mxu0 %v2530_v20  ;;  %3619 = vmatmul.mubr.f32.vlgmr.msra.gmra.mxu1 %v2532_v31  ;;  %v3682_v59 = vld [vmem:[#allocation15 + $0xba0] sm:$0xff]  ;;  %v3649_v31 = vld [vmem:[#allocation15 + $0xa98] sm:$0xff] }
 0x386   : > { %4904 = vmatprep.subr.mxu0 %v3661_v0  ;;  %4939 = vmatprep.subr.mxu1 %v3693_v28  ;;  %v3634_v20 = vld [vmem:[#allocation15 + $0xa20] sm:$0xff]  ;;  %v2392_v28 = vadd.f32 %v6217_v58, %v1947_v30  ;;  %v3680_v58 = vld [vmem:[#allocation15 + $0xb90] sm:$0xff]  ;;  %v3899_v30 = vld [vmem:[#allocation15 + $0xdd8] sm:$0xff] }
 0x387   : > { %4905 = vmatpush3.msra.mxu0 %v3645_v21  ;;  %3758 = vmatprep.mubr.f32.mxu0 %v2535_v32  ;;  %v3666_v0 = vld [vmem:[#allocation15 + $0xb20] sm:$0xff]  ;;  %v2262_v21 = vpop.f32.mrf.mxu0  ;;  %v3633_v32 = vld [vmem:[#allocation15 + $0xa18] sm:$0xff] }
 0x388   : > { %4940 = vmatpush3.msra.mxu1 %v3677_v25  ;;  %3828 = vmatprep.mubr.f32.mxu1 %v2537_v4  ;;  %v3681_v25 = vld [vmem:[#allocation15 + $0xb98] sm:$0xff]  ;;  %v2394_v4 = vadd.f32 %v6219_v49, %v1949_v48  ;;  %v3866_v48 = vld [vmem:[#allocation15 + $0xcd0] sm:$0xff] }
 0x389   : > { %4906 = vmatprep.subr.mxu0 %v3660_v26  ;;  %4941 = vmatprep.subr.mxu1 %v3692_v51  ;;  %v6351_v26 = vld [vmem:[#allocation28_spill] sm:$0xff]  ;;  %v2369_v51 = vpop.f32.mrf.mxu1 }
 0x38a   : > { %4907 = vmatpush3.msra.mxu0 %v3644_v53  ;;  %4942 = vmatpush3.msra.mxu1 %v3676_v35  ;;  %v1952_v17 = vadd.f32 %v6352_v36, %v6351_v26  ;;  %v6353_v53 = vld [vmem:[#allocation29_spill] sm:$0xff]  ;;  %v6354_v35 = vld [vmem:[#allocation35_spill] sm:$0xff] }
 0x38b   : > { %4908 = vmatprep.subr.mxu0 %v3659_v37  ;;  %4943 = vmatprep.subr.mxu1 %v3691_v63  ;;  %v1954_v37 = vadd.f32 %v6354_v35, %v6353_v53  ;;  %v3632_v63 = vld [vmem:[#allocation15 + $0xa10] sm:$0xff]  ;;  %v3881_v26 = vld [vmem:[#allocation15 + $0xd48] sm:$0xff]  ;;  %v3864_v36 = vld [vmem:[#allocation15 + $0xcc0] sm:$0xff] }
 0x38c   : > { %4909 = vmatpush3.msra.mxu0 %v3643_v7  ;;  %4944 = vmatpush3.msra.mxu1 %v3675_v52  ;;  %v2397_v7 = vadd.f32 %v2262_v21, %v1952_v17  ;;  %v3664_v52 = vld [vmem:[#allocation15 + $0xb10] sm:$0xff]  ;;  %v3865_v21 = vld [vmem:[#allocation15 + $0xcc8] sm:$0xff]  ;;  %v3896_v17 = vld [vmem:[#allocation15 + $0xdc0] sm:$0xff] }
 0x38d   : > { %4910 = vmatprep.subr.mxu0 %v3658_v54  ;;  %4945 = vmatprep.subr.mxu1 %v3690_v57  ;;  %v3647_v54 = vld [vmem:[#allocation15 + $0xa88] sm:$0xff]  ;;  %v2502_v57 = vadd.f32 %v6147_v13, %v2392_v28  ;;  %v2399_v49 = vadd.f32 %v2369_v51, %v1954_v37  ;;  %v3882_v28 = vld [vmem:[#allocation15 + $0xd50] sm:$0xff]  ;;  %v3880_v51 = vld [vmem:[#allocation15 + $0xd40] sm:$0xff] }
 0x38e   : > { %4911 = vmatpush3.msra.mxu0 %v3642_v11  ;;  %4946 = vmatpush3.msra.mxu1 %v3674_v27  ;;  %v3679_v11 = vld [vmem:[#allocation15 + $0xb88] sm:$0xff]  ;;  %v3847_v53 = vld [vmem:[#allocation15 + $0xc38] sm:$0xff]  ;;  %v3862_v37 = vld [vmem:[#allocation15 + $0xcb0] sm:$0xff] }
 0x38f   : > { %4912 = vmatprep.subr.mxu0 %v3657_v46  ;;  %4947 = vmatprep.subr.mxu1 %v3689_v10  ;;  %v3631_v27 = vld [vmem:[#allocation15 + $0xa08] sm:$0xff]  ;;  %v2504_v46 = vadd.f32 %v6149_v8, %v2394_v4  ;;  %v3848_v4 = vld [vmem:[#allocation15 + $0xc40] sm:$0xff]  ;;  %v3879_v35 = vld [vmem:[#allocation15 + $0xd38] sm:$0xff] }
 0x390   : > { %4913 = vmatpush3.msra.mxu0 %v3641_v33  ;;  %4948 = vmatpush3.msra.mxu1 %v3673_v50  ;;  %v3663_v10 = vld [vmem:[#allocation15 + $0xb08] sm:$0xff]  ;;  %v3646_v33 = vld [vmem:[#allocation15 + $0xa80] sm:$0xff] }
 0x391   : > { %4914 = vmatprep.subr.mxu0 %v3656_v6  ;;  %4949 = vmatprep.subr.mxu1 %v3688_v1  ;;  %v3678_v50 = vld [vmem:[#allocation15 + $0xb80] sm:$0xff]  ;;  %v2507_v1 = vadd.f32 %v6153_v16, %v2397_v7  ;;  %v3878_v7 = vld [vmem:[#allocation15 + $0xd30] sm:$0xff] }
 0x392   : > { %4915 = vmatpush3.msra.mxu0 %v3640_v22  ;;  %4950 = vmatpush3.msra.mxu1 %v3672_v14  ;;  %v3630_v6 = vld [vmem:[#allocation15 + $0xa00] sm:$0xff]  ;;  %v2534_v14 = vmax.f32 %v2502_v57, 0.0  ;;  %v3845_v57 = vld [vmem:[#allocation15 + $0xc28] sm:$0xff] }
 0x393   : > { %4916 = vmatprep.subr.mxu0 %v3655_v62  ;;  %4951 = vmatprep.subr.mxu1 %v3687_v19  ;;  %v3662_v22 = vld [vmem:[#allocation15 + $0xb00] sm:$0xff]  ;;  %v2509_v62 = vadd.f32 %v6155_v47, %v2399_v49  ;;  %v3871_v19 = vld [vmem:[#allocation15 + $0xcf8] sm:$0xff]  ;;  %v3877_v49 = vld [vmem:[#allocation15 + $0xd28] sm:$0xff] }
 0x394   : > { %4917 = vmatpush3.msra.mxu0 %v3639_v42  ;;  %4952 = vmatpush3.msra.mxu1 %v3671_v29  ;;  %v2536_v42 = vmax.f32 %v2504_v46, 0.0  ;;  %v3903_v29 = vld [vmem:[#allocation15 + $0xdf8] sm:$0xff] }
 0x395   : > { %4918 = vmatprep.subr.mxu0 %v3654_v55  ;;  %4953 = vmatprep.subr.mxu1 %v3686_v61  ;;  %v3855_v55 = vld [vmem:[#allocation15 + $0xc78] sm:$0xff] }
 0x396   : > { %4919 = vmatpush3.msra.mxu0 %v3638_v5  ;;  %4954 = vmatpush3.msra.mxu1 %v3670_v12  ;;  %v3887_v61 = vld [vmem:[#allocation15 + $0xd78] sm:$0xff]  ;;  %v2539_v5 = vmax.f32 %v2507_v1, 0.0  ;;  %v3870_v12 = vld [vmem:[#allocation15 + $0xcf0] sm:$0xff] }
 0x397   : > { %4920 = vmatprep.subr.mxu0 %v3653_v2  ;;  %4955 = vmatprep.subr.mxu1 %v3685_v56  ;;  %v2541_v2 = vmax.f32 %v2509_v62, 0.0  ;;  %v3902_v56 = vld [vmem:[#allocation15 + $0xdf0] sm:$0xff]  ;;  %v6358_v1 = vld [vmem:[#allocation33_spill] sm:$0xff] }
 0x398   : > { %4921 = vmatpush3.msra.mxu0 %v3637_v3  ;;  %4956 = vmatpush3.msra.mxu1 %v3669_v9  ;;  %v3854_v3 = vld [vmem:[#allocation15 + $0xc70] sm:$0xff]  ;;  %v3859_v62 = vld [vmem:[#allocation15 + $0xc98] sm:$0xff] }
 0x399   : > { %4922 = vmatprep.subr.mxu0 %v3652_v60  ;;  %4957 = vmatprep.subr.mxu1 %v3684_v45  ;;  %v3886_v9 = vld [vmem:[#allocation15 + $0xd70] sm:$0xff]  ;;  %v3869_v60 = vld [vmem:[#allocation15 + $0xce8] sm:$0xff] }
 0x39a   : > { %4923 = vmatpush3.msra.mxu0 %v3636_v39  ;;  %4958 = vmatpush3.msra.mxu1 %v3668_v34  ;;  %v3901_v45 = vld [vmem:[#allocation15 + $0xde8] sm:$0xff]  ;;  %v6356_v46 = vld [vmem:[#allocation32_spill] sm:$0xff] }
 0x39b   : > { %4924 = vmatprep.subr.mxu0 %v3651_v24  ;;  %4959 = vmatprep.subr.mxu1 %v3683_v43  ;;  %v3853_v39 = vld [vmem:[#allocation15 + $0xc68] sm:$0xff]  ;;  %v3868_v24 = vld [vmem:[#allocation15 + $0xce0] sm:$0xff] }
 0x39c   : > { %4925 = vmatpush3.msra.mxu0 %v3635_v40  ;;  %4960 = vmatpush3.msra.mxu1 %v3667_v23  ;;  %v3885_v34 = vld [vmem:[#allocation15 + $0xd68] sm:$0xff]  ;;  %v3900_v43 = vld [vmem:[#allocation15 + $0xde0] sm:$0xff] }
 0x39d   : > { %4926 = vmatprep.subr.mxu0 %v3650_v18  ;;  %4961 = vmatprep.subr.mxu1 %v3682_v59  ;;  %v3852_v40 = vld [vmem:[#allocation15 + $0xc60] sm:$0xff]  ;;  %v3867_v18 = vld [vmem:[#allocation15 + $0xcd8] sm:$0xff] }
 0x39e   : > { %4927 = vmatpush3.msra.mxu0 %v3634_v20  ;;  %4962 = vmatpush3.msra.mxu1 %v3666_v0  ;;  %v3884_v23 = vld [vmem:[#allocation15 + $0xd60] sm:$0xff]  ;;  %v3851_v59 = vld [vmem:[#allocation15 + $0xc58] sm:$0xff]  ;;  %v3898_v0 = vld [vmem:[#allocation15 + $0xdd0] sm:$0xff] }
 0x39f   : > { %4928 = vmatprep.subr.mxu0 %v3649_v31  ;;  %4963 = vmatprep.subr.mxu1 %v3681_v25  ;;  %v3883_v20 = vld [vmem:[#allocation15 + $0xd58] sm:$0xff]  ;;  %v3850_v31 = vld [vmem:[#allocation15 + $0xc50] sm:$0xff]  ;;  %v3897_v25 = vld [vmem:[#allocation15 + $0xdc8] sm:$0xff] }
 0x3a0   : > { %4929 = vmatpush3.msra.mxu0 %v3633_v32  ;;  %4964 = vmatpush3.msra.mxu1 %v3665_v38  ;;  %v3849_v32 = vld [vmem:[#allocation15 + $0xc48] sm:$0xff]  ;;  %v3863_v38 = vld [vmem:[#allocation15 + $0xcb8] sm:$0xff] }
 0x3a1   : > { %4930 = vmatprep.subr.mxu0 %v3648_v15  ;;  %4965 = vmatprep.subr.mxu1 %v3680_v58  ;;  %v3895_v15 = vld [vmem:[#allocation15 + $0xdb8] sm:$0xff]  ;;  %v3894_v58 = vld [vmem:[#allocation15 + $0xdb0] sm:$0xff] }
 0x3a2   : > { %4931 = vmatpush3.msra.mxu0 %v3632_v63  ;;  %4966 = vmatpush3.msra.mxu1 %v3664_v52  ;;  %v3846_v63 = vld [vmem:[#allocation15 + $0xc30] sm:$0xff]  ;;  %v3861_v52 = vld [vmem:[#allocation15 + $0xca8] sm:$0xff] }
 0x3a3   : > { %4932 = vmatprep.subr.mxu0 %v3647_v54  ;;  %4967 = vmatprep.subr.mxu1 %v3679_v11  ;;  %v3893_v54 = vld [vmem:[#allocation15 + $0xda8] sm:$0xff]  ;;  %v3860_v11 = vld [vmem:[#allocation15 + $0xca0] sm:$0xff] }
 0x3a4   : > { %4933 = vmatpush3.msra.mxu0 %v3631_v27  ;;  %4968 = vmatpush3.msra.mxu1 %v3663_v10  ;;  %v6355_v27 = vld [vmem:[#allocation26_spill] sm:$0xff] }
 0x3a5   : > { %4934 = vmatprep.subr.mxu0 %v3646_v33  ;;  %4969 = vmatprep.subr.mxu1 %v3678_v50  ;;  %v1951_v10 = vadd.f32 %v6356_v46, %v6355_v27  ;;  %v3892_v33 = vld [vmem:[#allocation15 + $0xda0] sm:$0xff]  ;;  %v4107_v27 = vld [vmem:[#allocation15 + $0xfc8] sm:$0xff] }
 0x3a6   : > { %4935 = vmatpush3.msra.mxu0 %v3630_v6  ;;  %4970 = vmatpush3.msra.mxu1 %v3662_v22  ;;  %v3844_v50 = vld [vmem:[#allocation15 + $0xc20] sm:$0xff]  ;;  %v6357_v6 = vld [vmem:[#allocation27_spill] sm:$0xff] }
 0x3a7   : > { %3759 = vmatmul.mubr.f32.vlgmr.msra.gmra.mxu0 %v2534_v14  ;;  %3829 = vmatmul.mubr.f32.vlgmr.msra.gmra.mxu1 %v2536_v42  ;;  %v1953_v22 = vadd.f32 %v6358_v1, %v6357_v6  ;;  %v3876_v14 = vld [vmem:[#allocation15 + $0xd20] sm:$0xff]  ;;  %v3891_v42 = vld [vmem:[#allocation15 + $0xd98] sm:$0xff]  ;;  %v4059_v46 = vld [vmem:[#allocation15 + $0xe48] sm:$0xff] }
 0x3a8   : > { %4974 = vmatprep.subr.mxu0 %v3871_v19  ;;  %5009 = vmatprep.subr.mxu1 %v3903_v29  ;;  %v2396_v19 = vadd.f32 %v6235_v44, %v1951_v10  ;;  %v3843_v29 = vld [vmem:[#allocation15 + $0xc18] sm:$0xff]  ;;  %v4091_v10 = vld [vmem:[#allocation15 + $0xf48] sm:$0xff]  ;;  %v4058_v6 = vld [vmem:[#allocation15 + $0xe40] sm:$0xff] }
 0x3a9   : > { %4975 = vmatpush3.msra.mxu0 %v3855_v55  ;;  %3968 = vmatprep.mubr.f32.mxu0 %v2539_v5  ;;  %v2398_v55 = vadd.f32 %v6237_v41, %v1953_v22  ;;  %v3858_v5 = vld [vmem:[#allocation15 + $0xc90] sm:$0xff]  ;;  %v4090_v1 = vld [vmem:[#allocation15 + $0xf40] sm:$0xff]  ;;  %v4073_v22 = vld [vmem:[#allocation15 + $0xeb8] sm:$0xff] }
 0x3aa   : > { %5010 = vmatpush3.msra.mxu1 %v3887_v61  ;;  %4038 = vmatprep.mubr.f32.mxu1 %v2541_v2  ;;  %v3875_v61 = vld [vmem:[#allocation15 + $0xd18] sm:$0xff]  ;;  %v3842_v2 = vld [vmem:[#allocation15 + $0xc10] sm:$0xff]  ;;  %v2506_v44 = vadd.f32 %v6147_v13, %v2396_v19 }
 0x3ab   : > { %4976 = vmatprep.subr.mxu0 %v3870_v12  ;;  %5011 = vmatprep.subr.mxu1 %v3902_v56  ;;  %v3890_v12 = vld [vmem:[#allocation15 + $0xd90] sm:$0xff]  ;;  %v2508_v41 = vadd.f32 %v6149_v8, %v2398_v55  ;;  %v4089_v19 = vld [vmem:[#allocation15 + $0xf38] sm:$0xff] }
 0x3ac   : > { %4977 = vmatpush3.msra.mxu0 %v3854_v3  ;;  %5012 = vmatpush3.msra.mxu1 %v3886_v9  ;;  %v3874_v56 = vld [vmem:[#allocation15 + $0xd10] sm:$0xff]  ;;  %v3857_v3 = vld [vmem:[#allocation15 + $0xc88] sm:$0xff] }
 0x3ad   : > { %4978 = vmatprep.subr.mxu0 %v3869_v60  ;;  %5013 = vmatprep.subr.mxu1 %v3901_v45  ;;  %v3889_v9 = vld [vmem:[#allocation15 + $0xd88] sm:$0xff]  ;;  %v4056_v55 = vld [vmem:[#allocation15 + $0xe30] sm:$0xff] }
 0x3ae   : > { %4979 = vmatpush3.msra.mxu0 %v3853_v39  ;;  %5014 = vmatpush3.msra.mxu1 %v3885_v34  ;;  %v3841_v60 = vld [vmem:[#allocation15 + $0xc08] sm:$0xff]  ;;  %v3856_v39 = vld [vmem:[#allocation15 + $0xc80] sm:$0xff] }
 0x3af   : > { %4980 = vmatprep.subr.mxu0 %v3868_v24  ;;  %5015 = vmatprep.subr.mxu1 %v3900_v43  ;;  %v3873_v45 = vld [vmem:[#allocation15 + $0xd08] sm:$0xff]  ;;  %v3888_v34 = vld [vmem:[#allocation15 + $0xd80] sm:$0xff] }
 0x3b0   : > { %4981 = vmatpush3.msra.mxu0 %v3852_v40  ;;  %5016 = vmatpush3.msra.mxu1 %v3884_v23  ;;  %v3840_v24 = vld [vmem:[#allocation15 + $0xc00] sm:$0xff] }
 0x3b1   : > { %4982 = vmatprep.subr.mxu0 %v3867_v18  ;;  %5017 = vmatprep.subr.mxu1 %v3899_v30  ;;  %v6359_v43 = vld [vmem:[#allocation38_spill] sm:$0xff]  ;;  %v6360_v18 = vld [vmem:[#allocation39_spill] sm:$0xff] }
 0x3b2   : > { %4983 = vmatpush3.msra.mxu0 %v3851_v59  ;;  %5018 = vmatpush3.msra.mxu1 %v3883_v20  ;;  %v2511_v40 = vadd.f32 %v6153_v16, %v6359_v43  ;;  %v3872_v23 = vld [vmem:[#allocation15 + $0xd00] sm:$0xff]  ;;  %v2513_v30 = vadd.f32 %v6155_v47, %v6360_v18  ;;  %v2538_v59 = vmax.f32 %v2506_v44, 0.0  ;;  %v4081_v20 = vld [vmem:[#allocation15 + $0xef8] sm:$0xff]  ;;  %v4080_v16 = vld [vmem:[#allocation15 + $0xef0] sm:$0xff] }
 0x3b3   : > { %4984 = vmatprep.subr.mxu0 %v3866_v48  ;;  %5019 = vmatprep.subr.mxu1 %v3898_v0  ;;  %v2540_v48 = vmax.f32 %v2508_v41, 0.0  ;;  %v4113_v0 = vld [vmem:[#allocation15 + $0xff8] sm:$0xff]  ;;  %v4112_v47 = vld [vmem:[#allocation15 + $0xff0] sm:$0xff]  ;;  %v4102_v44 = vld [vmem:[#allocation15 + $0xfa0] sm:$0xff] }
 0x3b4   : > { %4985 = vmatpush3.msra.mxu0 %v3850_v31  ;;  %5020 = vmatpush3.msra.mxu1 %v3882_v28  ;;  %v4065_v31 = vld [vmem:[#allocation15 + $0xe78] sm:$0xff] }
 0x3b5   : > { %4986 = vmatprep.subr.mxu0 %v3865_v21  ;;  %5021 = vmatprep.subr.mxu1 %v3897_v25  ;;  %v4097_v28 = vld [vmem:[#allocation15 + $0xf78] sm:$0xff]  ;;  %v2543_v21 = vmax.f32 %v2511_v40, 0.0  ;;  %v2545_v25 = vmax.f32 %v2513_v30, 0.0  ;;  %v6363_v40 = vld [vmem:[#allocation31_spill] sm:$0xff] }
 0x3b6   : > { %4987 = vmatpush3.msra.mxu0 %v3849_v32  ;;  %5022 = vmatpush3.msra.mxu1 %v3881_v26  ;;  %v4064_v32 = vld [vmem:[#allocation15 + $0xe70] sm:$0xff]  ;;  %v4069_v41 = vld [vmem:[#allocation15 + $0xe98] sm:$0xff] }
 0x3b7   : > { %4988 = vmatprep.subr.mxu0 %v3864_v36  ;;  %5023 = vmatprep.subr.mxu1 %v3896_v17  ;;  %v4096_v26 = vld [vmem:[#allocation15 + $0xf70] sm:$0xff]  ;;  %v4079_v36 = vld [vmem:[#allocation15 + $0xee8] sm:$0xff]  ;;  %v4053_v43 = vld [vmem:[#allocation15 + $0xe18] sm:$0xff] }
 0x3b8   : > { %4989 = vmatpush3.msra.mxu0 %v3848_v4  ;;  %5024 = vmatpush3.msra.mxu1 %v3880_v51  ;;  %v4111_v17 = vld [vmem:[#allocation15 + $0xfe8] sm:$0xff]  ;;  %v4085_v30 = vld [vmem:[#allocation15 + $0xf18] sm:$0xff] }
 0x3b9   : > { %4990 = vmatprep.subr.mxu0 %v3863_v38  ;;  %5025 = vmatprep.subr.mxu1 %v3895_v15  ;;  %v4063_v4 = vld [vmem:[#allocation15 + $0xe68] sm:$0xff]  ;;  %v4078_v38 = vld [vmem:[#allocation15 + $0xee0] sm:$0xff] }
 0x3ba   : > { %4991 = vmatpush3.msra.mxu0 %v3847_v53  ;;  %5026 = vmatpush3.msra.mxu1 %v3879_v35  ;;  %v4095_v51 = vld [vmem:[#allocation15 + $0xf68] sm:$0xff]  ;;  %v4110_v15 = vld [vmem:[#allocation15 + $0xfe0] sm:$0xff] }
 0x3bb   : > { %4992 = vmatprep.subr.mxu0 %v3862_v37  ;;  %5027 = vmatprep.subr.mxu1 %v3894_v58  ;;  %v4062_v53 = vld [vmem:[#allocation15 + $0xe60] sm:$0xff]  ;;  %v4077_v37 = vld [vmem:[#allocation15 + $0xed8] sm:$0xff] }
 0x3bc   : > { %4993 = vmatpush3.msra.mxu0 %v3846_v63  ;;  %5028 = vmatpush3.msra.mxu1 %v3878_v7  ;;  %v4094_v35 = vld [vmem:[#allocation15 + $0xf60] sm:$0xff]  ;;  %v4109_v58 = vld [vmem:[#allocation15 + $0xfd8] sm:$0xff] }
 0x3bd   : > { %4994 = vmatprep.subr.mxu0 %v3861_v52  ;;  %5029 = vmatprep.subr.mxu1 %v3893_v54  ;;  %v4061_v63 = vld [vmem:[#allocation15 + $0xe58] sm:$0xff]  ;;  %v4076_v52 = vld [vmem:[#allocation15 + $0xed0] sm:$0xff] }
 0x3be   : > { %4995 = vmatpush3.msra.mxu0 %v3845_v57  ;;  %5030 = vmatpush3.msra.mxu1 %v3877_v49  ;;  %v4093_v7 = vld [vmem:[#allocation15 + $0xf58] sm:$0xff]  ;;  %v4108_v54 = vld [vmem:[#allocation15 + $0xfd0] sm:$0xff] }
 0x3bf   : > { %4996 = vmatprep.subr.mxu0 %v3860_v11  ;;  %5031 = vmatprep.subr.mxu1 %v3892_v33  ;;  %v4060_v57 = vld [vmem:[#allocation15 + $0xe50] sm:$0xff]  ;;  %v4075_v11 = vld [vmem:[#allocation15 + $0xec8] sm:$0xff]  ;;  %v4074_v33 = vld [vmem:[#allocation15 + $0xec0] sm:$0xff] }
 0x3c0   : > { %4997 = vmatpush3.msra.mxu0 %v3844_v50  ;;  %5032 = vmatpush3.msra.mxu1 %v3876_v14  ;;  %v4092_v49 = vld [vmem:[#allocation15 + $0xf50] sm:$0xff]  ;;  %v4106_v50 = vld [vmem:[#allocation15 + $0xfc0] sm:$0xff]  ;;  %v4105_v14 = vld [vmem:[#allocation15 + $0xfb8] sm:$0xff] }
 0x3c1   : > { %4998 = vmatprep.subr.mxu0 %v3859_v62  ;;  %5033 = vmatprep.subr.mxu1 %v3891_v42  ;;  %v4057_v62 = vld [vmem:[#allocation15 + $0xe38] sm:$0xff]  ;;  %v4072_v42 = vld [vmem:[#allocation15 + $0xeb0] sm:$0xff] }
 0x3c2   : > { %4999 = vmatpush3.msra.mxu0 %v3843_v29  ;;  %5034 = vmatpush3.msra.mxu1 %v3875_v61  ;;  %v4104_v29 = vld [vmem:[#allocation15 + $0xfb0] sm:$0xff] }
 0x3c3   : > { %5000 = vmatprep.subr.mxu0 %v3858_v5  ;;  %5035 = vmatprep.subr.mxu1 %v3890_v12  ;;  %v4088_v61 = vld [vmem:[#allocation15 + $0xf30] sm:$0xff]  ;;  %v4071_v5 = vld [vmem:[#allocation15 + $0xea8] sm:$0xff] }
 0x3c4   : > { %5001 = vmatpush3.msra.mxu0 %v3842_v2  ;;  %5036 = vmatpush3.msra.mxu1 %v3874_v56  ;;  %v4103_v12 = vld [vmem:[#allocation15 + $0xfa8] sm:$0xff] }
 0x3c5   : > { %5002 = vmatprep.subr.mxu0 %v3857_v3  ;;  %5037 = vmatprep.subr.mxu1 %v3889_v9  ;;  %v4055_v2 = vld [vmem:[#allocation15 + $0xe28] sm:$0xff]  ;;  %v4070_v3 = vld [vmem:[#allocation15 + $0xea0] sm:$0xff] }
 0x3c6   : > { %5003 = vmatpush3.msra.mxu0 %v3841_v60  ;;  %5038 = vmatpush3.msra.mxu1 %v3873_v45  ;;  %v4087_v56 = vld [vmem:[#allocation15 + $0xf28] sm:$0xff]  ;;  %v4054_v9 = vld [vmem:[#allocation15 + $0xe20] sm:$0xff] }
 0x3c7   : > { %5004 = vmatprep.subr.mxu0 %v3856_v39  ;;  %5039 = vmatprep.subr.mxu1 %v3888_v34  ;;  %v4086_v60 = vld [vmem:[#allocation15 + $0xf20] sm:$0xff]  ;;  %v6362_v39 = vld [vmem:[#allocation36_spill] sm:$0xff] }
 0x3c8   : > { %5005 = vmatpush3.msra.mxu0 %v3840_v24  ;;  %5040 = vmatpush3.msra.mxu1 %v3872_v23  ;;  %v6361_v45 = vld [vmem:[#allocation30_spill] sm:$0xff]  ;;  %v4101_v24 = vld [vmem:[#allocation15 + $0xf98] sm:$0xff] }
 0x3c9   : > { %3969 = vmatmul.mubr.f32.vlgmr.msra.gmra.mxu0 %v2538_v59  ;;  %4039 = vmatmul.mubr.f32.vlgmr.msra.gmra.mxu1 %v2540_v48  ;;  %v1955_v34 = vadd.f32 %v6362_v39, %v6361_v45  ;;  %v6364_v23 = vld [vmem:[#allocation37_spill] sm:$0xff]  ;;  %v4068_v59 = vld [vmem:[#allocation15 + $0xe90] sm:$0xff] }
 0x3ca   : > { %5044 = vmatprep.subr.mxu0 %v4081_v20  ;;  %5079 = vmatprep.subr.mxu1 %v4113_v0  ;;  %v1957_v18 = vadd.f32 %v6364_v23, %v6363_v40  ;;  %v4100_v20 = vld [vmem:[#allocation15 + $0xf90] sm:$0xff] }
 0x3cb   : > { %5045 = vmatpush3.msra.mxu0 %v4065_v31  ;;  %4178 = vmatprep.mubr.f32.mxu0 %v2543_v21  ;;  %v4052_v48 = vld [vmem:[#allocation15 + $0xe10] sm:$0xff]  ;;  %v4067_v31 = vld [vmem:[#allocation15 + $0xe88] sm:$0xff] }
 0x3cc   : > { %5080 = vmatpush3.msra.mxu1 %v4097_v28  ;;  %4248 = vmatprep.mubr.f32.mxu1 %v2545_v25  ;;  %v4084_v0 = vld [vmem:[#allocation15 + $0xf10] sm:$0xff]  ;;  %v2510_v28 = vadd.f32 %v6147_v13, %v1955_v34  ;;  %v4099_v21 = vld [vmem:[#allocation15 + $0xf88] sm:$0xff]  ;;  %v2512_v25 = vadd.f32 %v6149_v8, %v1957_v18  ;;  %v6365_v8 = vmov 0.0  }
 0x3cd   : > { %5046 = vmatprep.subr.mxu0 %v4080_v16  ;;  %5081 = vmatprep.subr.mxu1 %v4112_v47  ;;  %v4051_v16 = vld [vmem:[#allocation15 + $0xe08] sm:$0xff] }
 0x3ce   : > { %5047 = vmatpush3.msra.mxu0 %v4064_v32  ;;  %5082 = vmatpush3.msra.mxu1 %v4096_v26  ;;  %v4083_v47 = vld [vmem:[#allocation15 + $0xf08] sm:$0xff]  ;;  %v4066_v32 = vld [vmem:[#allocation15 + $0xe80] sm:$0xff]  ;;  %v2544_v13 = vmax.f32 %v2512_v25, 0.0 }
 0x3cf   : > { %5048 = vmatprep.subr.mxu0 %v4079_v36  ;;  %5083 = vmatprep.subr.mxu1 %v4111_v17  ;;  %v4098_v26 = vld [vmem:[#allocation15 + $0xf80] sm:$0xff] }
 0x3d0   : > { %5049 = vmatpush3.msra.mxu0 %v4063_v4  ;;  %5084 = vmatpush3.msra.mxu1 %v4095_v51  ;;  %v4050_v36 = vld [vmem:[#allocation15 + $0xe00] sm:$0xff]  ;;  %v2542_v4 = vmax.f32 %v2510_v28, 0.0 }
 0x3d1   : > { %5050 = vmatprep.subr.mxu0 %v4078_v38  ;;  %5085 = vmatprep.subr.mxu1 %v4110_v15  ;;  %v4082_v17 = vld [vmem:[#allocation15 + $0xf00] sm:$0xff]  ;;  %v4278_v38 = vld [vmem:[#allocation18 + $0x70] sm:$0xff]  ;;  %v4277_v15 = vld [vmem:[#allocation18 + $0x68] sm:$0xff] }
 0x3d2   : > { %5051 = vmatpush3.msra.mxu0 %v4062_v53  ;;  %5086 = vmatpush3.msra.mxu1 %v4094_v35  ;;  %v4279_v51 = vld [vmem:[#allocation18 + $0x78] sm:$0xff]  ;;  %v4276_v53 = vld [vmem:[#allocation18 + $0x60] sm:$0xff] }
 0x3d3   : > { %5052 = vmatprep.subr.mxu0 %v4077_v37  ;;  %5087 = vmatprep.subr.mxu1 %v4109_v58  ;;  %v4275_v35 = vld [vmem:[#allocation18 + $0x58] sm:$0xff]  ;;  %v4274_v37 = vld [vmem:[#allocation18 + $0x50] sm:$0xff]  ;;  %v4273_v58 = vld [vmem:[#allocation18 + $0x48] sm:$0xff] }
 0x3d4   : > { %5053 = vmatpush3.msra.mxu0 %v4061_v63  ;;  %5088 = vmatpush3.msra.mxu1 %v4093_v7  ;;  %v4272_v63 = vld [vmem:[#allocation18 + $0x40] sm:$0xff]  ;;  %v4271_v7 = vld [vmem:[#allocation18 + $0x38] sm:$0xff] }
 0x3d5   : > { %5054 = vmatprep.subr.mxu0 %v4076_v52  ;;  %5089 = vmatprep.subr.mxu1 %v4108_v54  ;;  %v4270_v52 = vld [vmem:[#allocation18 + $0x30] sm:$0xff]  ;;  %v4269_v54 = vld [vmem:[#allocation18 + $0x28] sm:$0xff] }
 0x3d6   : > { %5055 = vmatpush3.msra.mxu0 %v4060_v57  ;;  %5090 = vmatpush3.msra.mxu1 %v4092_v49  ;;  %v4268_v57 = vld [vmem:[#allocation18 + $0x20] sm:$0xff]  ;;  %v4267_v49 = vld [vmem:[#allocation18 + $0x18] sm:$0xff] }
 0x3d7   : > { %5056 = vmatprep.subr.mxu0 %v4075_v11  ;;  %5091 = vmatprep.subr.mxu1 %v4107_v27  ;;  %v4266_v11 = vld [vmem:[#allocation18 + $0x10] sm:$0xff]  ;;  %v4265_v27 = vld [vmem:[#allocation18 + $0x8] sm:$0xff] }
 0x3d8   : > { %5057 = vmatpush3.msra.mxu0 %v4059_v46  ;;  %5092 = vmatpush3.msra.mxu1 %v4091_v10  ;;  %v4264_v46 = vld [vmem:[#allocation18] sm:$0xff]  ;;  %v4586_v10 = vpop.f32.mrf.mxu0 }
 0x3d9   : > { %5058 = vmatprep.subr.mxu0 %v4074_v33  ;;  %5093 = vmatprep.subr.mxu1 %v4106_v50  ;;  %v4621_v33 = vpop.f32.mrf.mxu1 }
 0x3da   : > { %5059 = vmatpush3.msra.mxu0 %v4058_v6  ;;  %5094 = vmatpush3.msra.mxu1 %v4090_v1  ;;  %v4587_v50 = vpop.f32.mrf.mxu0 }
 0x3db   : > { %5060 = vmatprep.subr.mxu0 %v4073_v22  ;;  %5095 = vmatprep.subr.mxu1 %v4105_v14  ;;  %v4622_v6 = vpop.f32.mrf.mxu1  ;;  %v4588_v45 = vadd.f32 %v4587_v50, %v4586_v10  ;;  %v4551_v50 = vld [vmem:[#allocation19] ss:$0 sm:$0xff] }
 0x3dc   : > { %5061 = vmatpush3.msra.mxu0 %v4057_v62  ;;  %5096 = vmatpush3.msra.mxu1 %v4089_v19  ;;  %v4623_v39 = vadd.f32 %v4622_v6, %v4621_v33 }
 0x3dd   : > { %5062 = vmatprep.subr.mxu0 %v4072_v42  ;;  %5097 = vmatprep.subr.mxu1 %v4104_v29 }
 0x3de   : > { %5063 = vmatpush3.msra.mxu0 %v4056_v55  ;;  %5098 = vmatpush3.msra.mxu1 %v4088_v61  ;;  %v2852_v40 = vadd.f32 %v4623_v39, %v4588_v45 }
 0x3df   : > { %5064 = vmatprep.subr.mxu0 %v4071_v5  ;;  %5099 = vmatprep.subr.mxu1 %v4103_v12  ;;  %v4656_v1 = vpop.f32.mrf.mxu0  ;;  %v4691_v22 = vpop.f32.mrf.mxu1 }
 0x3e0   : > { %5065 = vmatpush3.msra.mxu0 %v4055_v2  ;;  %5100 = vmatpush3.msra.mxu1 %v4087_v56 }
 0x3e1   : > { %5066 = vmatprep.subr.mxu0 %v4070_v3  ;;  %5101 = vmatprep.subr.mxu1 %v4102_v44  ;;  %v4657_v14 = vpop.f32.mrf.mxu0  ;;  %v4692_v62 = vpop.f32.mrf.mxu1 }
 0x3e2   : > { %5067 = vmatpush3.msra.mxu0 %v4054_v9  ;;  %5102 = vmatpush3.msra.mxu1 %v4086_v60  ;;  %v4658_v34 = vadd.f32 %v4657_v14, %v4656_v1 }
 0x3e3   : > { %5068 = vmatprep.subr.mxu0 %v4069_v41  ;;  %5103 = vmatprep.subr.mxu1 %v4101_v24 }
 0x3e4   : > { %5069 = vmatpush3.msra.mxu0 %v4053_v43  ;;  %5104 = vmatpush3.msra.mxu1 %v4085_v30 }
 0x3e5   : > { %5070 = vmatprep.subr.mxu0 %v4068_v59  ;;  %5105 = vmatprep.subr.mxu1 %v4100_v20  ;;  %v2922_v20 = vadd.f32 %v4658_v34, %v2852_v40 }
 0x3e6   : > { %5071 = vmatpush3.msra.mxu0 %v4052_v48  ;;  %5106 = vmatpush3.msra.mxu1 %v4084_v0 }
 0x3e7   : > { %5072 = vmatprep.subr.mxu0 %v4067_v31  ;;  %5107 = vmatprep.subr.mxu1 %v4099_v21  ;;  %v4693_v31 = vadd.f32 %v4692_v62, %v4691_v22 }
 0x3e8   : > { %5073 = vmatpush3.msra.mxu0 %v4051_v16  ;;  %5108 = vmatpush3.msra.mxu1 %v4083_v47 }
 0x3e9   : > { %5074 = vmatprep.subr.mxu0 %v4066_v32  ;;  %5109 = vmatprep.subr.mxu1 %v4098_v26  ;;  %v2992_v32 = vadd.f32 %v4693_v31, %v2922_v20 }
 0x3ea   : > { %5075 = vmatpush3.msra.mxu0 %v4050_v36  ;;  %5110 = vmatpush3.msra.mxu1 %v4082_v17 }
 0x3eb   : > { %4179 = vmatmul.mubr.f32.vlgmr.msra.gmra.mxu0 %v2542_v4  ;;  %4249 = vmatmul.mubr.f32.vlgmr.msra.gmra.mxu1 %v2544_v13 }
 0x3ec   : > { %5131 = vmatprep.subr.mxu0 %v6365_v8  ;;  %5163 = vmatprep.mubr.msk.f32.mxu0 %vm5546_vm1, %v6365_v8 }
 0x3ed   : > { %5132 = vmatpush3.msra.mxu0 %v4279_v51 }
 0x3ee   : > { %5133 = vmatprep.subr.mxu0 %v6365_v8 }
 0x3ef   : > { %5134 = vmatpush3.msra.mxu0 %v4278_v38 }
 0x3f0   : > { %5135 = vmatprep.subr.mxu0 %v6365_v8 }
 0x3f1   : > { %5136 = vmatpush3.msra.mxu0 %v4277_v15 }
 0x3f2   : > { %5137 = vmatprep.subr.mxu0 %v6365_v8 }
 0x3f3   : > { %5138 = vmatpush3.msra.mxu0 %v4276_v53 }
 0x3f4   : > { %5139 = vmatprep.subr.mxu0 %v6365_v8 }
 0x3f5   : > { %5140 = vmatpush3.msra.mxu0 %v4275_v35 }
 0x3f6   : > { %5141 = vmatprep.subr.mxu0 %v6365_v8 }
 0x3f7   : > { %5142 = vmatpush3.msra.mxu0 %v4274_v37 }
 0x3f8   : > { %5143 = vmatprep.subr.mxu0 %v6365_v8 }
 0x3f9   : > { %5144 = vmatpush3.msra.mxu0 %v4273_v58 }
 0x3fa   : > { %5145 = vmatprep.subr.mxu0 %v6365_v8 }
 0x3fb   : > { %5146 = vmatpush3.msra.mxu0 %v4272_v63 }
 0x3fc   : > { %5147 = vmatprep.subr.mxu0 %v6365_v8 }
 0x3fd   : > { %5148 = vmatpush3.msra.mxu0 %v4271_v7 }
 0x3fe   : > { %5149 = vmatprep.subr.mxu0 %v6365_v8 }
 0x3ff   : > { %5150 = vmatpush3.msra.mxu0 %v4270_v52 }
 0x400   : > { %5151 = vmatprep.subr.mxu0 %v6365_v8 }
 0x401   : > { %5152 = vmatpush3.msra.mxu0 %v4269_v54  ;;  %v4726_v19 = vpop.f32.mrf.mxu0  ;;  %v4761_v42 = vpop.f32.mrf.mxu1 }
 0x402   : > { %5153 = vmatprep.subr.mxu0 %v6365_v8 }
 0x403   : > { %5154 = vmatpush3.msra.mxu0 %v4268_v57  ;;  %v4727_v29 = vpop.f32.mrf.mxu0  ;;  %v4762_v55 = vpop.f32.mrf.mxu1 }
 0x404   : > { %5155 = vmatprep.subr.mxu0 %v6365_v8  ;;  %v4728_v23 = vadd.f32 %v4727_v29, %v4726_v19  ;;  %v4763_v18 = vadd.f32 %v4762_v55, %v4761_v42 }
 0x405   : > { %5156 = vmatpush3.msra.mxu0 %v4267_v49 }
 0x406   : > { %5157 = vmatprep.subr.mxu0 %v6365_v8  ;;  %v3201_v28 = vadd.f32 %v4763_v18, %v4728_v23 }
 0x407   : > { %5158 = vmatpush3.msra.mxu0 %v4266_v11 }
 0x408   : > { %5159 = vmatprep.subr.mxu0 %v6365_v8  ;;  %v3204_v4 = vadd.f32 %v3201_v28, %v2992_v32 }
 0x409   : > { %5160 = vmatpush3.msra.mxu0 %v4265_v27  ;;  %v4550_v27 = vld [vmem:[#allocation16] ss:$0 sm:$0xff] }
 0x40a   : > { %5161 = vmatprep.subr.mxu0 %v6365_v8 }
 0x40b   : > { %5162 = vmatpush3.msra.mxu0 %v4264_v46 }
 0x423   : > { %v4796_v61 = vpop.f32.mrf.mxu0  ;;  %v4831_v5 = vpop.f32.mrf.mxu1 }
 0x425   : > { %v4797_v12 = vpop.f32.mrf.mxu0  ;;  %v4832_v2 = vpop.f32.mrf.mxu1 }
 0x426   : > { %v4798_v48 = vadd.f32 %v4797_v12, %v4796_v61  ;;  %v4833_v0 = vadd.f32 %v4832_v2, %v4831_v5 }
 0x428   : > { %v3411_v26 = vadd.f32 %v4833_v0, %v4798_v48 }
 0x42a   : > { %v3414_v38 = vadd.f32 %v3411_v26, %v3204_v4 }
 0x445   : > { %v4866_v56 = vpop.f32.mrf.mxu0  ;;  %v4901_v3 = vpop.f32.mrf.mxu1 }
 0x447   : > { %v4867_v44 = vpop.f32.mrf.mxu0  ;;  %v4902_v9 = vpop.f32.mrf.mxu1 }
 0x448   : > { %v4868_v21 = vadd.f32 %v4867_v44, %v4866_v56  ;;  %v4903_v16 = vadd.f32 %v4902_v9, %v4901_v3 }
 0x44a   : > { %v3621_v13 = vadd.f32 %v4903_v16, %v4868_v21 }
 0x44c   : > { %v3624_v37 = vadd.f32 %v3621_v13, %v3414_v38 }
 0x467   : > { %v4936_v60 = vpop.f32.mrf.mxu0  ;;  %v4971_v41 = vpop.f32.mrf.mxu1 }
 0x469   : > { %v4937_v24 = vpop.f32.mrf.mxu0  ;;  %v4972_v43 = vpop.f32.mrf.mxu1 }
 0x46a   : > { %v4938_v36 = vadd.f32 %v4937_v24, %v4936_v60  ;;  %v4973_v17 = vadd.f32 %v4972_v43, %v4971_v41 }
 0x46c   : > { %v3831_v15 = vadd.f32 %v4973_v17, %v4938_v36 }
 0x46e   : > { %v3834_v54 = vadd.f32 %v3831_v15, %v3624_v37 }
 0x489   : > { %v5006_v30 = vpop.f32.mrf.mxu0  ;;  %v5041_v59 = vpop.f32.mrf.mxu1 }
 0x48b   : > { %v5007_v25 = vpop.f32.mrf.mxu0  ;;  %v5042_v47 = vpop.f32.mrf.mxu1 }
 0x48c   : > { %v5008_v8 = vadd.f32 %v5007_v25, %v5006_v30  ;;  %v5043_v51 = vadd.f32 %v5042_v47, %v5041_v59 }
 0x48e   : > { %v4041_v58 = vadd.f32 %v5043_v51, %v5008_v8 }
 0x490   : > { %v4044_v49 = vadd.f32 %v4041_v58, %v3834_v54 }
 0x4ab   : > { %v5076_v53 = vpop.f32.mrf.mxu0  ;;  %v5111_v35 = vpop.f32.mrf.mxu1 }
 0x4ad   : > { %v5077_v63 = vpop.f32.mrf.mxu0  ;;  %v5112_v52 = vpop.f32.mrf.mxu1 }
 0x4ae   : > { %v5078_v7 = vadd.f32 %v5077_v63, %v5076_v53  ;;  %v5113_v57 = vadd.f32 %v5112_v52, %v5111_v35 }
 0x4b0   : > { %v4251_v11 = vadd.f32 %v5113_v57, %v5078_v7 }
 0x4b2   : > { %v4254_v46 = vadd.f32 %v4251_v11, %v4044_v49 }
 0x4b4   : > { %v4262_v10 = vadd.f32 %v4550_v27, %v4254_v46 }
 0x4b6   : > { %v4263_v33 = vmax.f32 %v4262_v10, 0.0 }
 0x4b8   : > { %5164 = vmatmul.mubr.f32.vlgmr.msra.gmra.mxu0 %v4263_v33 }
 0x578   : > { %v4353_v6 = vpop.f32.mrf.mxu0 }
 0x579   : > { %v4354_v1 = vadd.f32 %v4551_v50, %v4353_v6 }
 0x57a   : > { %v5165_v22 = vpop.f32.mrf.mxu0 }
 0x57b   : > { %4357 = vst [vmem:[%s502_s24] sm:$0xff] %v4354_v1 }
 0x57c PF: > { %p21_p2 = scmp.ge.s32.totalorder %s5616_s13, 4   ;;  %s6366_s30 = smov %s5525_s10 }
 0x57d   : > { %s6367_s10 = smov %s5626_s16  ;;  %s6368_s11 = smov %s5616_s13 }
 0x57e   :  { %23 = sbr.rel (!%p21_p2) target bundleno = 6 (0x6), region = 180 }
 0x583   :  { %4377 = vsyncpa [#allocation9], 1 }
 0x584   :  { %4379 = vsyncpa [#allocation9 + $0x1], 1 }
 0x585   :  { %4380 = vsyncpa [#allocation11], 1 }
 0x586   :  { %4381 = vsyncpa [#allocation14], 1 }
 0x587   :  { %4382 = vsyncpa [#allocation17], 1 }
 0x588   :  { %4383 = vsyncpa [#allocation20], 1 }

</bundles_post_ra>
